<compile_context>
chip_gen: v6e
topology: v6e:2x2x1
jax: 0.10.0
libtpu: 0.0.40
codegen_flags: <defaults>
</compile_context>

<pallas_src>
import jax
import jax.numpy as jnp
from jax.experimental import pallas as pl
from jax.experimental.pallas import tpu as pltpu

# f32-accurate matmuls everywhere (reference + any jnp fallback); the kernel dots also
# carry an explicit precision=HIGHEST so they do not depend on this config.
jax.config.update("jax_default_matmul_precision", "highest")

EMB = 32            # embedding_dim
HID = 32            # hidden_dim
VOCAB = 50
NUM_FILTERS = 3
NGRAMS = (2, 3, 4)
NUM_CLASSES = 9     # decoder Linear(hidden, 9) -> pointer indices are always < 9
DEC_STEPS = 5       # fixed 5 decode steps in Decoder.forward
MAX_K = NGRAMS[-1]  # 4 taps in the im2col window

_HIGH = jax.lax.Precision.HIGHEST


# --------------------------- fused kernel ---------------------------
# tokens -> embedding (one-hot matmul) -> im2col conv + ReLU + masked max-pool ->
# Linear(9, HID) -> 5 x (LSTMCell + pointer Linear fused in one MXU pass -> argmax ->
# 9-candidate gather from the precomputed gate slab)
def pointer_net_kernel(tok_ref, table_ref, wc_ref, bc_ref, wp_ref, bp_ref,
                       wih_ref, wstep_ref, bg_ref, bo_ref, x0_ref,
                       out_ref, ptr_ref):
    B, S = tok_ref.shape
    V, E = table_ref.shape
    H = wp_ref.shape[1]
    H4 = wih_ref.shape[1]             # 4 * hidden
    NG = wc_ref.shape[1]              # 9 = num_filters * len(ngrams)
    NC = bo_ref.shape[1]              # 9 pointer classes
    BS = B * S

    # ---- embedding lookup: one-hot matmul, result stays in VMEM ----
    tok = tok_ref[...]                                               # [B, S] i32
    v_iota = jax.lax.broadcasted_iota(jnp.int32, (B, S, V), 2)
    onehot_tok = (v_iota == tok[:, :, None]).astype(jnp.float32).reshape(BS, V)
    slab = jnp.dot(onehot_tok, table_ref[...], precision=_HIGH,
                   preferred_element_type=jnp.float32)               # [BS, E]

    # ---- CNN encoder: single im2col matmul, K = MAX_K * E = 128 ----
    # TODO(synk): if lowering shows VMEM copies for the shifted slices, build the
    # window with pltpu.roll(slab_pad, -j, axis=0) so the shifts ride the XLU slot.
    pad = jnp.zeros((MAX_K - 1, E), jnp.float32)
    slab_pad = jnp.concatenate([slab, pad], axis=0)                  # [BS+3, E]
    window = jnp.concatenate([slab_pad[j:j + BS, :] for j in range(MAX_K)],
                             axis=1)                                 # [BS, 4E]
    conv = (jnp.dot(window, wc_ref[...], precision=_HIGH,
                    preferred_element_type=jnp.float32)
            + bc_ref[...])                                           # [BS, 9]
    conv = jnp.maximum(conv, 0.0).reshape(B, S, NG)
    # mask positions t > S - k for each ngram group (cols 0-2:k=2, 3-5:k=3, 6-8:k=4).
    # Masking with 0.0 is only valid because ReLU guarantees non-negative values.
    t_iota = jax.lax.broadcasted_iota(jnp.int32, (B, S, NG), 1)
    c_iota = jax.lax.broadcasted_iota(jnp.int32, (B, S, NG), 2)
    thresh = jnp.where(c_iota < NUM_FILTERS, S - 2,
                       jnp.where(c_iota < 2 * NUM_FILTERS, S - 3, S - 4))
    conv = jnp.where(t_iota <= thresh, conv, 0.0)
    pooled = jnp.max(conv, axis=1)                                   # [B, 9]
    enc = (jnp.dot(pooled, wp_ref[...], precision=_HIGH,
                   preferred_element_type=jnp.float32)
           + bp_ref[...])                                            # [B, H]

    # ---- decoder prep: everything not on the serial chain is hoisted ----
    wih = wih_ref[...]                                               # [E, 4H]
    bias = bg_ref[...]                                               # [1, 4H] (bih + bhh)
    # gate slab = emb @ W_ih + bias; only the first NC rows of each sequence can
    # ever be gathered (pointer index < NC <= S).
    G = (jnp.dot(slab, wih, precision=_HIGH,
                 preferred_element_type=jnp.float32) + bias)         # [BS, 4H]
    G9 = G.reshape(B, S, H4)[:, :NC, :]                              # [B, NC, 4H]
    gx = jnp.broadcast_to(
        jnp.dot(x0_ref[...], wih, precision=_HIGH,
                preferred_element_type=jnp.float32) + bias, (B, H4)) # [B, 4H]
    wstep = wstep_ref[...]                                           # [H, 4H+NC] = [whh.T|wo.T]
    bo = jnp.broadcast_to(bo_ref[...], (B, NC))                      # hoisted broadcast
    col9 = jax.lax.broadcasted_iota(jnp.int32, (B, NC), 1)

    h = enc
    c = enc
    # prologue: h_{-1} = enc drives the step-0 gates (the wo columns are unused here).
    fused_prev = jnp.dot(h, wstep, precision=_HIGH,
                         preferred_element_type=jnp.float32)         # [B, 4H+NC]

    outs = []
    ptrs = []
    for _ in range(DEC_STEPS):
        gates = gx + fused_prev[:, :H4]
        sg = jax.nn.sigmoid(gates)                                   # one EUP pass, i|f|_|o
        tg = jnp.tanh(gates)                                         # one EUP pass, _|_|g|_
        c = sg[:, H:2 * H] * c + sg[:, 0 * H:1 * H] * tg[:, 2 * H:3 * H]
        h = sg[:, 3 * H:4 * H] * jnp.tanh(c)

        # single fused MXU pass: recurrent part (next step's gates) + pointer logits.
        fused = jnp.dot(h, wstep, precision=_HIGH,
                        preferred_element_type=jnp.float32)          # [B, 4H+NC]
        prob = fused[:, H4:] + bo                                    # [B, NC]
        m = jnp.max(prob, axis=1, keepdims=True)
        masked_col = jnp.where(prob >= m, col9, NC)
        idx = jnp.min(masked_col, axis=1, keepdims=True)             # first argmax, [B, 1]
        onehot = (masked_col == idx).astype(jnp.float32)             # [B, NC], exactly one-hot

        outs.append(h.reshape(B, 1, H))
        ptrs.append(idx)

        # next-step input gates: 9-candidate gather from the precomputed gate slab
        gx = jnp.sum(onehot[:, :, None] * G9, axis=1)                # [B, 4H]
        fused_prev = fused

    out_ref[...] = jnp.concatenate(outs, axis=1)                     # [B, 5, H], one store
    ptr_ref[...] = jnp.concatenate(ptrs, axis=1)                     # [B, 5],   one store


# -------------------- one-time parameter preprocessing --------------------
def prepare_params(p):
    """Build kernel-ready (pre-transposed / fused / zero-padded) weights once."""
    blocks = []
    for k_sz in NGRAMS:
        w = p[f'conv{k_sz}_w']                                        # [F, E, k]
        taps = jnp.concatenate([w[:, :, j].T for j in range(k_sz)], axis=0)  # [k*E, F]
        blocks.append(jnp.pad(taps, ((0, (MAX_K - k_sz) * EMB), (0, 0))))
    w_conv = jnp.concatenate(blocks, axis=1)                          # [MAX_K*E, 9]
    b_conv = jnp.concatenate([p[f'conv{k_sz}_b'] for k_sz in NGRAMS]).reshape(1, -1)

    w_step = jnp.concatenate([p['lstm_whh'].T, p['out_w'].T], axis=1)  # [H, 4H+9]

    return dict(
        table=p['embedding'].astype(jnp.float32),
        w_conv=w_conv.astype(jnp.float32),
        b_conv=b_conv.astype(jnp.float32),
        w_proj=p['proj_w'].T.astype(jnp.float32),
        b_proj=p['proj_b'].reshape(1, HID).astype(jnp.float32),
        w_ih=p['lstm_wih'].T.astype(jnp.float32),
        w_step=w_step.astype(jnp.float32),
        b_gate=(p['lstm_bih'] + p['lstm_bhh']).reshape(1, -1).astype(jnp.float32),
        b_out=p['out_b'].reshape(1, -1).astype(jnp.float32),
        x0=p['dec_input0'].reshape(1, EMB).astype(jnp.float32),
    )


def _pick_batch_tile(B):
    # <=128 rows/core keeps the live intermediates well under v5e's 16 MiB scoped VMEM
    # and v7x's 32 MiB scoped / 64 MiB physical VMEM; tiles must be 8-aligned unless
    # they cover the full batch.
    for t in (128, 64, 32, 16, 8):
        if B % t == 0:
            return t
    return B


def _const_spec(shape):
    return pl.BlockSpec(shape, lambda b: (0,) * len(shape))


# ------------------------------ wrapper ------------------------------
@jax.jit
def pointer_net_pallas(tokens, prep):
    B, S = tokens.shape
    assert S >= NUM_CLASSES, "pointer gather assumes pointer index < 9 <= seq_len"
    assert S >= MAX_K, "sequence must cover the widest conv filter"
    bt = _pick_batch_tile(B)
    nb = B // bt

    BS = B * S
    H4 = 4 * HID
    NC = NUM_CLASSES
    flops = 2 * (BS * VOCAB * EMB                        # embedding one-hot matmul
                 + BS * (MAX_K * EMB) * NC               # im2col conv
                 + B * NC * HID                          # encoder projection
                 + BS * EMB * H4                         # hoisted gate slab
                 + B * HID * (H4 + NC)                   # prologue fused matmul
                 + DEC_STEPS * (B * HID * (H4 + NC)      # per-step fused matmul
                                + B * NC * H4))          # 9-candidate gather
    transcendentals = DEC_STEPS * B * (2 * H4 + HID)
    bytes_accessed = 4 * (B * S + VOCAB * EMB + MAX_K * EMB * NC + NC
                          + NC * HID + HID + EMB * H4 + HID * (H4 + NC) + H4
                          + NC + EMB + B * DEC_STEPS * HID + B * DEC_STEPS)

    grid_spec = pltpu.PrefetchScalarGridSpec(
        num_scalar_prefetch=0,
        grid=(nb,),
        in_specs=[
            pl.BlockSpec((bt, S), lambda b: (b, 0)),                 # tokens (batch-tiled)
            _const_spec(prep['table'].shape),
            _const_spec(prep['w_conv'].shape),
            _const_spec(prep['b_conv'].shape),
            _const_spec(prep['w_proj'].shape),
            _const_spec(prep['b_proj'].shape),
            _const_spec(prep['w_ih'].shape),
            _const_spec(prep['w_step'].shape),
            _const_spec(prep['b_gate'].shape),
            _const_spec(prep['b_out'].shape),
            _const_spec(prep['x0'].shape),
        ],
        out_specs=(pl.BlockSpec((bt, DEC_STEPS, HID), lambda b: (b, 0, 0)),
                   pl.BlockSpec((bt, DEC_STEPS), lambda b: (b, 0))),
    )

    out, ptr = pl.pallas_call(
        pointer_net_kernel,
        out_shape=(jax.ShapeDtypeStruct((B, DEC_STEPS, HID), jnp.float32),
                   jax.ShapeDtypeStruct((B, DEC_STEPS), jnp.int32)),
        grid_spec=grid_spec,
        compiler_params=pltpu.CompilerParams(
            dimension_semantics=("parallel",),
            vmem_limit_bytes=32 * 1024 * 1024),
        cost_estimate=pl.CostEstimate(flops=flops,
                                      transcendentals=transcendentals,
                                      bytes_accessed=bytes_accessed),
    )(tokens.astype(jnp.int32),
      prep['table'], prep['w_conv'], prep['b_conv'],
      prep['w_proj'], prep['b_proj'], prep['w_ih'], prep['w_step'],
      prep['b_gate'], prep['b_out'], prep['x0'])
    return out, ptr                                       # already in final layout


# ------------------------ pure-JAX reference -------------------------
def reference_forward(tokens, p):
    B, S = tokens.shape
    emb = p['embedding'][tokens]
    x = jnp.transpose(emb, (0, 2, 1))                     # [B, E, S] like torch NCW
    feats = []
    for k_sz in NGRAMS:
        w, b = p[f'conv{k_sz}_w'], p[f'conv{k_sz}_b']
        lout = S - k_sz + 1
        conv = jnp.zeros((B, NUM_FILTERS, lout), jnp.float32)
        for j in range(k_sz):
            conv = conv + jnp.einsum('bes,fe->bfs', x[:, :, j:j + lout], w[:, :, j])
        conv = conv + b[None, :, None]
        feats.append(jnp.max(jax.nn.relu(conv), axis=2))
    mp = jnp.concatenate(feats, axis=1)
    enc = mp @ p['proj_w'].T + p['proj_b']
    h, c = enc, enc
    xdec = jnp.broadcast_to(p['dec_input0'][None, :], (B, EMB))
    outs, ptrs = [], []
    for _ in range(DEC_STEPS):
        gates = xdec @ p['lstm_wih'].T + p['lstm_bih'] + h @ p['lstm_whh'].T + p['lstm_bhh']
        i_g = jax.nn.sigmoid(gates[:, :HID]); f_g = jax.nn.sigmoid(gates[:, HID:2 * HID])
        g_g = jnp.tanh(gates[:, 2 * HID:3 * HID]); o_g = jax.nn.sigmoid(gates[:, 3 * HID:])
        c = f_g * c + i_g * g_g
        h = o_g * jnp.tanh(c)
        prob = h @ p['out_w'].T + p['out_b']
        idx = jnp.argmax(prob, axis=-1)
        ptrs.append(idx); outs.append(h)
        xdec = emb[jnp.arange(B), idx, :]
    return jnp.stack(outs, axis=1), jnp.stack(ptrs, axis=1).astype(jnp.int32)


# ----------------------- deterministic params ------------------------
def init_params(key):
    ks = jax.random.split(key, 16)
    p = {}
    p['embedding'] = 0.1 * jax.random.normal(ks[0], (VOCAB, EMB), jnp.float32)
    i = 1
    for k_sz in NGRAMS:
        p[f'conv{k_sz}_w'] = jax.random.uniform(ks[i], (NUM_FILTERS, EMB, k_sz),
                                                jnp.float32, -0.3, 0.3); i += 1
        p[f'conv{k_sz}_b'] = jax.random.uniform(ks[i], (NUM_FILTERS,),
                                                jnp.float32, -0.3, 0.3); i += 1
    p['proj_w'] = jax.random.uniform(ks[i], (HID, NUM_FILTERS * len(NGRAMS)),
                                     jnp.float32, -0.3, 0.3); i += 1
    p['proj_b'] = jax.random.uniform(ks[i], (HID,), jnp.float32, -0.3, 0.3); i += 1
    p['lstm_wih'] = jax.random.uniform(ks[i], (4 * HID, EMB), jnp.float32, -0.15, 0.15); i += 1
    p['lstm_whh'] = jax.random.uniform(ks[i], (4 * HID, HID), jnp.float32, -0.15, 0.15); i += 1
    p['lstm_bih'] = jax.random.uniform(ks[i], (4 * HID,), jnp.float32, -0.15, 0.15); i += 1
    p['lstm_bhh'] = jax.random.uniform(ks[i], (4 * HID,), jnp.float32, -0.15, 0.15); i += 1
    p['out_w'] = jax.random.uniform(ks[i], (NUM_CLASSES, HID), jnp.float32, -0.15, 0.15); i += 1
    p['out_b'] = jax.random.uniform(ks[i], (NUM_CLASSES,), jnp.float32, -0.15, 0.15); i += 1
    p['dec_input0'] = jax.random.uniform(ks[i], (EMB,), jnp.float32, -1.0, 1.0)
    return p


if __name__ == "__main__":
    key = jax.random.PRNGKey(0)
    pkey, dkey = jax.random.split(key)
    params = init_params(pkey)
    prep = prepare_params(params)                 # one-time, outside the jitted call path

    B, S = 2, 16                                  # seq_len >= 9 so the pointer gather is valid
    tokens = jax.random.randint(dkey, (B, S), 0, VOCAB, dtype=jnp.int32)

    outputs, pointers = pointer_net_pallas(tokens, prep)
    outputs = jax.block_until_ready(outputs)
    pointers = jax.block_until_ready(pointers)

    ref_out, ref_ptr = reference_forward(tokens, params)
    assert outputs.shape == (B, DEC_STEPS, HID)
    assert pointers.shape == (B, DEC_STEPS)
    assert jnp.allclose(outputs, ref_out, atol=2e-3, rtol=2e-3), \
        float(jnp.max(jnp.abs(outputs - ref_out)))
    assert jnp.array_equal(pointers, ref_ptr)
    print("KERNEL_OK")
</pallas_src>

<mosaic_0001>
module attributes {stable_mosaic.version = 11 : i64} {
  func.func @pointer_net_kernel(%arg0: i32, %arg1: memref<2x16xi32, #tpu.memory_space<vmem>>, %arg2: memref<50x32xf32, #tpu.memory_space<vmem>>, %arg3: memref<128x9xf32, #tpu.memory_space<vmem>>, %arg4: memref<1x9xf32, #tpu.memory_space<vmem>>, %arg5: memref<9x32xf32, #tpu.memory_space<vmem>>, %arg6: memref<1x32xf32, #tpu.memory_space<vmem>>, %arg7: memref<32x128xf32, #tpu.memory_space<vmem>>, %arg8: memref<32x137xf32, #tpu.memory_space<vmem>>, %arg9: memref<1x128xf32, #tpu.memory_space<vmem>>, %arg10: memref<1x9xf32, #tpu.memory_space<vmem>>, %arg11: memref<1x32xf32, #tpu.memory_space<vmem>>, %arg12: memref<2x5x32xf32, #tpu.memory_space<vmem>>, %arg13: memref<2x5xi32, #tpu.memory_space<vmem>>) attributes {dimension_semantics = [#tpu.dimension_semantics<parallel>], iteration_bounds = array<i64: 1>, scalar_prefetch = 0 : i64, scratch_operands = 0 : i64, tpu.core_type = #tpu.core_type<tc>, window_params = [{transform_indices = @transform_0, window_bounds = array<i64: 2, 16>}, {pipeline_mode = #tpu.pipeline_mode<synchronous>, transform_indices = @transform_1, window_bounds = array<i64: 50, 32>}, {pipeline_mode = #tpu.pipeline_mode<synchronous>, transform_indices = @transform_2, window_bounds = array<i64: 128, 9>}, {pipeline_mode = #tpu.pipeline_mode<synchronous>, transform_indices = @transform_3, window_bounds = array<i64: 1, 9>}, {pipeline_mode = #tpu.pipeline_mode<synchronous>, transform_indices = @transform_4, window_bounds = array<i64: 9, 32>}, {pipeline_mode = #tpu.pipeline_mode<synchronous>, transform_indices = @transform_5, window_bounds = array<i64: 1, 32>}, {pipeline_mode = #tpu.pipeline_mode<synchronous>, transform_indices = @transform_6, window_bounds = array<i64: 32, 128>}, {pipeline_mode = #tpu.pipeline_mode<synchronous>, transform_indices = @transform_7, window_bounds = array<i64: 32, 137>}, {pipeline_mode = #tpu.pipeline_mode<synchronous>, transform_indices = @transform_8, window_bounds = array<i64: 1, 128>}, {pipeline_mode = #tpu.pipeline_mode<synchronous>, transform_indices = @transform_9, window_bounds = array<i64: 1, 9>}, {pipeline_mode = #tpu.pipeline_mode<synchronous>, transform_indices = @transform_10, window_bounds = array<i64: 1, 32>}, {transform_indices = @transform_11, window_bounds = array<i64: 2, 5, 32>}, {transform_indices = @transform_12, window_bounds = array<i64: 2, 5>}]} {
    %c0 = arith.constant 0 : index
    %c0_0 = arith.constant 0 : index
    %0 = vector.load %arg1[%c0, %c0_0] : memref<2x16xi32, #tpu.memory_space<vmem>>, vector<2x16xi32>
    %1 = tpu.iota {dimensions = array<i32: 2>} : vector<2x16x50xi32>
    %2 = vector.shape_cast %0 : vector<2x16xi32> to vector<2x16x1xi32>
    %3 = vector.broadcast %2 : vector<2x16x1xi32> to vector<2x16x50xi32>
    %4 = arith.cmpi eq, %1, %3 : vector<2x16x50xi32>
    %5 = arith.extui %4 : vector<2x16x50xi1> to vector<2x16x50xi32>
    %6 = arith.sitofp %5 : vector<2x16x50xi32> to vector<2x16x50xf32>
    %7 = vector.shape_cast %6 : vector<2x16x50xf32> to vector<32x50xf32>
    %c0_1 = arith.constant 0 : index
    %c0_2 = arith.constant 0 : index
    %8 = vector.load %arg2[%c0_1, %c0_2] : memref<50x32xf32, #tpu.memory_space<vmem>>, vector<50x32xf32>
    %cst = arith.constant dense<0.000000e+00> : vector<32x32xf32>
    %9 = tpu.matmul %7, %8, %cst {dimension_numbers = #tpu.dot_dimension_numbers<[1], [0], [0], [1], [0, 0, 1, 1], [], []>, precision = #tpu.contract_precision<fp32>} : vector<32x50xf32>, vector<50x32xf32>, vector<32x32xf32> -> vector<32x32xf32>
    %cst_3 = arith.constant 0.000000e+00 : f32
    %10 = vector.broadcast %cst_3 : f32 to vector<3x32xf32>
    %11 = tpu.concatenate %9, %10 in 0 : vector<32x32xf32>, vector<3x32xf32> -> vector<35x32xf32>
    %12 = vector.extract_strided_slice %11 {offsets = [0, 0], sizes = [32, 32], strides = [1, 1]} : vector<35x32xf32> to vector<32x32xf32>
    %13 = vector.extract_strided_slice %11 {offsets = [1, 0], sizes = [32, 32], strides = [1, 1]} : vector<35x32xf32> to vector<32x32xf32>
    %14 = vector.extract_strided_slice %11 {offsets = [2, 0], sizes = [32, 32], strides = [1, 1]} : vector<35x32xf32> to vector<32x32xf32>
    %15 = vector.extract_strided_slice %11 {offsets = [3, 0], sizes = [32, 32], strides = [1, 1]} : vector<35x32xf32> to vector<32x32xf32>
    %16 = tpu.concatenate %12, %13, %14, %15 in 1 : vector<32x32xf32>, vector<32x32xf32>, vector<32x32xf32>, vector<32x32xf32> -> vector<32x128xf32>
    %c0_4 = arith.constant 0 : index
    %c0_5 = arith.constant 0 : index
    %17 = vector.load %arg3[%c0_4, %c0_5] : memref<128x9xf32, #tpu.memory_space<vmem>>, vector<128x9xf32>
    %cst_6 = arith.constant dense<0.000000e+00> : vector<32x9xf32>
    %18 = tpu.matmul %16, %17, %cst_6 {dimension_numbers = #tpu.dot_dimension_numbers<[1], [0], [0], [1], [0, 0, 1, 1], [], []>, precision = #tpu.contract_precision<fp32>} : vector<32x128xf32>, vector<128x9xf32>, vector<32x9xf32> -> vector<32x9xf32>
    %c0_7 = arith.constant 0 : index
    %c0_8 = arith.constant 0 : index
    %19 = vector.load %arg4[%c0_7, %c0_8] : memref<1x9xf32, #tpu.memory_space<vmem>>, vector<1x9xf32>
    %20 = vector.broadcast %19 : vector<1x9xf32> to vector<32x9xf32>
    %21 = arith.addf %18, %20 : vector<32x9xf32>
    %cst_9 = arith.constant 0.000000e+00 : f32
    %22 = vector.broadcast %cst_9 : f32 to vector<32x9xf32>
    %23 = arith.maximumf %21, %22 : vector<32x9xf32>
    %24 = vector.shape_cast %23 : vector<32x9xf32> to vector<2x16x9xf32>
    %25 = tpu.iota {dimensions = array<i32: 1>} : vector<2x16x9xi32>
    %26 = tpu.iota {dimensions = array<i32: 2>} : vector<2x16x9xi32>
    %c3_i32 = arith.constant 3 : i32
    %27 = vector.broadcast %c3_i32 : i32 to vector<2x16x9xi32>
    %28 = arith.cmpi slt, %26, %27 : vector<2x16x9xi32>
    %c6_i32 = arith.constant 6 : i32
    %29 = vector.broadcast %c6_i32 : i32 to vector<2x16x9xi32>
    %30 = arith.cmpi slt, %26, %29 : vector<2x16x9xi32>
    %c13_i32 = arith.constant 13 : i32
    %c12_i32 = arith.constant 12 : i32
    %31 = vector.broadcast %c13_i32 : i32 to vector<2x16x9xi32>
    %32 = vector.broadcast %c12_i32 : i32 to vector<2x16x9xi32>
    %33 = arith.select %30, %31, %32 : vector<2x16x9xi1>, vector<2x16x9xi32>
    %c14_i32 = arith.constant 14 : i32
    %34 = vector.broadcast %c14_i32 : i32 to vector<2x16x9xi32>
    %35 = arith.select %28, %34, %33 : vector<2x16x9xi1>, vector<2x16x9xi32>
    %36 = arith.cmpi sle, %25, %35 : vector<2x16x9xi32>
    %cst_10 = arith.constant 0.000000e+00 : f32
    %37 = vector.broadcast %cst_10 : f32 to vector<2x16x9xf32>
    %38 = arith.select %36, %24, %37 : vector<2x16x9xi1>, vector<2x16x9xf32>
    %cst_11 = arith.constant dense<0xFF800000> : vector<2x9xf32>
    %39 = vector.multi_reduction <maximumf>, %38, %cst_11 [1] : vector<2x16x9xf32> to vector<2x9xf32>
    %c0_12 = arith.constant 0 : index
    %c0_13 = arith.constant 0 : index
    %40 = vector.load %arg5[%c0_12, %c0_13] : memref<9x32xf32, #tpu.memory_space<vmem>>, vector<9x32xf32>
    %cst_14 = arith.constant dense<0.000000e+00> : vector<2x32xf32>
    %41 = tpu.matmul %39, %40, %cst_14 {dimension_numbers = #tpu.dot_dimension_numbers<[1], [0], [0], [1], [0, 0, 1, 1], [], []>, precision = #tpu.contract_precision<fp32>} : vector<2x9xf32>, vector<9x32xf32>, vector<2x32xf32> -> vector<2x32xf32>
    %c0_15 = arith.constant 0 : index
    %c0_16 = arith.constant 0 : index
    %42 = vector.load %arg6[%c0_15, %c0_16] : memref<1x32xf32, #tpu.memory_space<vmem>>, vector<1x32xf32>
    %43 = vector.broadcast %42 : vector<1x32xf32> to vector<2x32xf32>
    %44 = arith.addf %41, %43 : vector<2x32xf32>
    %c0_17 = arith.constant 0 : index
    %c0_18 = arith.constant 0 : index
    %45 = vector.load %arg7[%c0_17, %c0_18] : memref<32x128xf32, #tpu.memory_space<vmem>>, vector<32x128xf32>
    %c0_19 = arith.constant 0 : index
    %c0_20 = arith.constant 0 : index
    %46 = vector.load %arg9[%c0_19, %c0_20] : memref<1x128xf32, #tpu.memory_space<vmem>>, vector<1x128xf32>
    %cst_21 = arith.constant dense<0.000000e+00> : vector<32x128xf32>
    %47 = tpu.matmul %9, %45, %cst_21 {dimension_numbers = #tpu.dot_dimension_numbers<[1], [0], [0], [1], [0, 0, 1, 1], [], []>, precision = #tpu.contract_precision<fp32>} : vector<32x32xf32>, vector<32x128xf32>, vector<32x128xf32> -> vector<32x128xf32>
    %48 = vector.broadcast %46 : vector<1x128xf32> to vector<32x128xf32>
    %49 = arith.addf %47, %48 : vector<32x128xf32>
    %50 = vector.shape_cast %49 : vector<32x128xf32> to vector<2x16x128xf32>
    %51 = vector.extract_strided_slice %50 {offsets = [0, 0, 0], sizes = [2, 9, 128], strides = [1, 1, 1]} : vector<2x16x128xf32> to vector<2x9x128xf32>
    %c0_22 = arith.constant 0 : index
    %c0_23 = arith.constant 0 : index
    %52 = vector.load %arg11[%c0_22, %c0_23] : memref<1x32xf32, #tpu.memory_space<vmem>>, vector<1x32xf32>
    %cst_24 = arith.constant dense<0.000000e+00> : vector<1x128xf32>
    %53 = tpu.matmul %52, %45, %cst_24 {dimension_numbers = #tpu.dot_dimension_numbers<[1], [0], [0], [1], [0, 0, 1, 1], [], []>, precision = #tpu.contract_precision<fp32>} : vector<1x32xf32>, vector<32x128xf32>, vector<1x128xf32> -> vector<1x128xf32>
    %54 = arith.addf %53, %46 : vector<1x128xf32>
    %55 = vector.shape_cast %54 : vector<1x128xf32> to vector<1x128xf32>
    %56 = vector.broadcast %55 : vector<1x128xf32> to vector<2x128xf32>
    %c0_25 = arith.constant 0 : index
    %c0_26 = arith.constant 0 : index
    %57 = vector.load %arg8[%c0_25, %c0_26] : memref<32x137xf32, #tpu.memory_space<vmem>>, vector<32x137xf32>
    %c0_27 = arith.constant 0 : index
    %c0_28 = arith.constant 0 : index
    %58 = vector.load %arg10[%c0_27, %c0_28] : memref<1x9xf32, #tpu.memory_space<vmem>>, vector<1x9xf32>
    %59 = vector.shape_cast %58 : vector<1x9xf32> to vector<1x9xf32>
    %60 = vector.broadcast %59 : vector<1x9xf32> to vector<2x9xf32>
    %61 = tpu.iota {dimensions = array<i32: 1>} : vector<2x9xi32>
    %cst_29 = arith.constant dense<0.000000e+00> : vector<2x137xf32>
    %62 = tpu.matmul %44, %57, %cst_29 {dimension_numbers = #tpu.dot_dimension_numbers<[1], [0], [0], [1], [0, 0, 1, 1], [], []>, precision = #tpu.contract_precision<fp32>} : vector<2x32xf32>, vector<32x137xf32>, vector<2x137xf32> -> vector<2x137xf32>
    %63 = vector.extract_strided_slice %62 {offsets = [0, 0], sizes = [2, 128], strides = [1, 1]} : vector<2x137xf32> to vector<2x128xf32>
    %64 = arith.addf %56, %63 : vector<2x128xf32>
    %65 = arith.negf %64 : vector<2x128xf32>
    %66 = math.exp %65 : vector<2x128xf32>
    %cst_30 = arith.constant 1.000000e+00 : f32
    %67 = vector.broadcast %cst_30 : f32 to vector<2x128xf32>
    %68 = arith.addf %67, %66 : vector<2x128xf32>
    %69 = arith.divf %67, %68 : vector<2x128xf32>
    %70 = math.tanh %64 : vector<2x128xf32>
    %71 = vector.extract_strided_slice %69 {offsets = [0, 32], sizes = [2, 32], strides = [1, 1]} : vector<2x128xf32> to vector<2x32xf32>
    %72 = arith.mulf %71, %44 : vector<2x32xf32>
    %73 = vector.extract_strided_slice %69 {offsets = [0, 0], sizes = [2, 32], strides = [1, 1]} : vector<2x128xf32> to vector<2x32xf32>
    %74 = vector.extract_strided_slice %70 {offsets = [0, 64], sizes = [2, 32], strides = [1, 1]} : vector<2x128xf32> to vector<2x32xf32>
    %75 = arith.mulf %73, %74 : vector<2x32xf32>
    %76 = arith.addf %72, %75 : vector<2x32xf32>
    %77 = vector.extract_strided_slice %69 {offsets = [0, 96], sizes = [2, 32], strides = [1, 1]} : vector<2x128xf32> to vector<2x32xf32>
    %78 = math.tanh %76 : vector<2x32xf32>
    %79 = arith.mulf %77, %78 : vector<2x32xf32>
    %cst_31 = arith.constant dense<0.000000e+00> : vector<2x137xf32>
    %80 = tpu.matmul %79, %57, %cst_31 {dimension_numbers = #tpu.dot_dimension_numbers<[1], [0], [0], [1], [0, 0, 1, 1], [], []>, precision = #tpu.contract_precision<fp32>} : vector<2x32xf32>, vector<32x137xf32>, vector<2x137xf32> -> vector<2x137xf32>
    %81 = vector.extract_strided_slice %80 {offsets = [0, 128], sizes = [2, 9], strides = [1, 1]} : vector<2x137xf32> to vector<2x9xf32>
    %82 = arith.addf %81, %60 : vector<2x9xf32>
    %cst_32 = arith.constant dense<0xFF800000> : vector<2xf32>
    %83 = vector.multi_reduction <maximumf>, %82, %cst_32 [1] : vector<2x9xf32> to vector<2xf32>
    %84 = vector.shape_cast %83 : vector<2xf32> to vector<2x1xf32>
    %85 = vector.broadcast %84 : vector<2x1xf32> to vector<2x9xf32>
    %86 = arith.cmpf oge, %82, %85 : vector<2x9xf32>
    %c9_i32 = arith.constant 9 : i32
    %87 = vector.broadcast %c9_i32 : i32 to vector<2x9xi32>
    %88 = arith.select %86, %61, %87 : vector<2x9xi1>, vector<2x9xi32>
    %cst_33 = arith.constant dense<2147483647> : vector<2xi32>
    %89 = vector.multi_reduction <minsi>, %88, %cst_33 [1] : vector<2x9xi32> to vector<2xi32>
    %90 = vector.shape_cast %89 : vector<2xi32> to vector<2x1xi32>
    %91 = vector.broadcast %90 : vector<2x1xi32> to vector<2x9xi32>
    %92 = arith.cmpi eq, %88, %91 : vector<2x9xi32>
    %93 = arith.extui %92 : vector<2x9xi1> to vector<2x9xi32>
    %94 = arith.sitofp %93 : vector<2x9xi32> to vector<2x9xf32>
    %95 = vector.shape_cast %79 : vector<2x32xf32> to vector<2x1x32xf32>
    %96 = vector.shape_cast %94 : vector<2x9xf32> to vector<2x9x1xf32>
    %97 = vector.broadcast %96 : vector<2x9x1xf32> to vector<2x9x128xf32>
    %98 = arith.mulf %97, %51 : vector<2x9x128xf32>
    %cst_34 = arith.constant dense<0.000000e+00> : vector<2x128xf32>
    %99 = vector.multi_reduction <add>, %98, %cst_34 [1] : vector<2x9x128xf32> to vector<2x128xf32>
    %100 = vector.extract_strided_slice %80 {offsets = [0, 0], sizes = [2, 128], strides = [1, 1]} : vector<2x137xf32> to vector<2x128xf32>
    %101 = arith.addf %99, %100 : vector<2x128xf32>
    %102 = arith.negf %101 : vector<2x128xf32>
    %103 = math.exp %102 : vector<2x128xf32>
    %cst_35 = arith.constant 1.000000e+00 : f32
    %104 = vector.broadcast %cst_35 : f32 to vector<2x128xf32>
    %105 = arith.addf %104, %103 : vector<2x128xf32>
    %106 = arith.divf %104, %105 : vector<2x128xf32>
    %107 = math.tanh %101 : vector<2x128xf32>
    %108 = vector.extract_strided_slice %106 {offsets = [0, 32], sizes = [2, 32], strides = [1, 1]} : vector<2x128xf32> to vector<2x32xf32>
    %109 = arith.mulf %108, %76 : vector<2x32xf32>
    %110 = vector.extract_strided_slice %106 {offsets = [0, 0], sizes = [2, 32], strides = [1, 1]} : vector<2x128xf32> to vector<2x32xf32>
    %111 = vector.extract_strided_slice %107 {offsets = [0, 64], sizes = [2, 32], strides = [1, 1]} : vector<2x128xf32> to vector<2x32xf32>
    %112 = arith.mulf %110, %111 : vector<2x32xf32>
    %113 = arith.addf %109, %112 : vector<2x32xf32>
    %114 = vector.extract_strided_slice %106 {offsets = [0, 96], sizes = [2, 32], strides = [1, 1]} : vector<2x128xf32> to vector<2x32xf32>
    %115 = math.tanh %113 : vector<2x32xf32>
    %116 = arith.mulf %114, %115 : vector<2x32xf32>
    %cst_36 = arith.constant dense<0.000000e+00> : vector<2x137xf32>
    %117 = tpu.matmul %116, %57, %cst_36 {dimension_numbers = #tpu.dot_dimension_numbers<[1], [0], [0], [1], [0, 0, 1, 1], [], []>, precision = #tpu.contract_precision<fp32>} : vector<2x32xf32>, vector<32x137xf32>, vector<2x137xf32> -> vector<2x137xf32>
    %118 = vector.extract_strided_slice %117 {offsets = [0, 128], sizes = [2, 9], strides = [1, 1]} : vector<2x137xf32> to vector<2x9xf32>
    %119 = arith.addf %118, %60 : vector<2x9xf32>
    %cst_37 = arith.constant dense<0xFF800000> : vector<2xf32>
    %120 = vector.multi_reduction <maximumf>, %119, %cst_37 [1] : vector<2x9xf32> to vector<2xf32>
    %121 = vector.shape_cast %120 : vector<2xf32> to vector<2x1xf32>
    %122 = vector.broadcast %121 : vector<2x1xf32> to vector<2x9xf32>
    %123 = arith.cmpf oge, %119, %122 : vector<2x9xf32>
    %c9_i32_38 = arith.constant 9 : i32
    %124 = vector.broadcast %c9_i32_38 : i32 to vector<2x9xi32>
    %125 = arith.select %123, %61, %124 : vector<2x9xi1>, vector<2x9xi32>
    %cst_39 = arith.constant dense<2147483647> : vector<2xi32>
    %126 = vector.multi_reduction <minsi>, %125, %cst_39 [1] : vector<2x9xi32> to vector<2xi32>
    %127 = vector.shape_cast %126 : vector<2xi32> to vector<2x1xi32>
    %128 = vector.broadcast %127 : vector<2x1xi32> to vector<2x9xi32>
    %129 = arith.cmpi eq, %125, %128 : vector<2x9xi32>
    %130 = arith.extui %129 : vector<2x9xi1> to vector<2x9xi32>
    %131 = arith.sitofp %130 : vector<2x9xi32> to vector<2x9xf32>
    %132 = vector.shape_cast %116 : vector<2x32xf32> to vector<2x1x32xf32>
    %133 = vector.shape_cast %131 : vector<2x9xf32> to vector<2x9x1xf32>
    %134 = vector.broadcast %133 : vector<2x9x1xf32> to vector<2x9x128xf32>
    %135 = arith.mulf %134, %51 : vector<2x9x128xf32>
    %cst_40 = arith.constant dense<0.000000e+00> : vector<2x128xf32>
    %136 = vector.multi_reduction <add>, %135, %cst_40 [1] : vector<2x9x128xf32> to vector<2x128xf32>
    %137 = vector.extract_strided_slice %117 {offsets = [0, 0], sizes = [2, 128], strides = [1, 1]} : vector<2x137xf32> to vector<2x128xf32>
    %138 = arith.addf %136, %137 : vector<2x128xf32>
    %139 = arith.negf %138 : vector<2x128xf32>
    %140 = math.exp %139 : vector<2x128xf32>
    %cst_41 = arith.constant 1.000000e+00 : f32
    %141 = vector.broadcast %cst_41 : f32 to vector<2x128xf32>
    %142 = arith.addf %141, %140 : vector<2x128xf32>
    %143 = arith.divf %141, %142 : vector<2x128xf32>
    %144 = math.tanh %138 : vector<2x128xf32>
    %145 = vector.extract_strided_slice %143 {offsets = [0, 32], sizes = [2, 32], strides = [1, 1]} : vector<2x128xf32> to vector<2x32xf32>
    %146 = arith.mulf %145, %113 : vector<2x32xf32>
    %147 = vector.extract_strided_slice %143 {offsets = [0, 0], sizes = [2, 32], strides = [1, 1]} : vector<2x128xf32> to vector<2x32xf32>
    %148 = vector.extract_strided_slice %144 {offsets = [0, 64], sizes = [2, 32], strides = [1, 1]} : vector<2x128xf32> to vector<2x32xf32>
    %149 = arith.mulf %147, %148 : vector<2x32xf32>
    %150 = arith.addf %146, %149 : vector<2x32xf32>
    %151 = vector.extract_strided_slice %143 {offsets = [0, 96], sizes = [2, 32], strides = [1, 1]} : vector<2x128xf32> to vector<2x32xf32>
    %152 = math.tanh %150 : vector<2x32xf32>
    %153 = arith.mulf %151, %152 : vector<2x32xf32>
    %cst_42 = arith.constant dense<0.000000e+00> : vector<2x137xf32>
    %154 = tpu.matmul %153, %57, %cst_42 {dimension_numbers = #tpu.dot_dimension_numbers<[1], [0], [0], [1], [0, 0, 1, 1], [], []>, precision = #tpu.contract_precision<fp32>} : vector<2x32xf32>, vector<32x137xf32>, vector<2x137xf32> -> vector<2x137xf32>
    %155 = vector.extract_strided_slice %154 {offsets = [0, 128], sizes = [2, 9], strides = [1, 1]} : vector<2x137xf32> to vector<2x9xf32>
    %156 = arith.addf %155, %60 : vector<2x9xf32>
    %cst_43 = arith.constant dense<0xFF800000> : vector<2xf32>
    %157 = vector.multi_reduction <maximumf>, %156, %cst_43 [1] : vector<2x9xf32> to vector<2xf32>
    %158 = vector.shape_cast %157 : vector<2xf32> to vector<2x1xf32>
    %159 = vector.broadcast %158 : vector<2x1xf32> to vector<2x9xf32>
    %160 = arith.cmpf oge, %156, %159 : vector<2x9xf32>
    %c9_i32_44 = arith.constant 9 : i32
    %161 = vector.broadcast %c9_i32_44 : i32 to vector<2x9xi32>
    %162 = arith.select %160, %61, %161 : vector<2x9xi1>, vector<2x9xi32>
    %cst_45 = arith.constant dense<2147483647> : vector<2xi32>
    %163 = vector.multi_reduction <minsi>, %162, %cst_45 [1] : vector<2x9xi32> to vector<2xi32>
    %164 = vector.shape_cast %163 : vector<2xi32> to vector<2x1xi32>
    %165 = vector.broadcast %164 : vector<2x1xi32> to vector<2x9xi32>
    %166 = arith.cmpi eq, %162, %165 : vector<2x9xi32>
    %167 = arith.extui %166 : vector<2x9xi1> to vector<2x9xi32>
    %168 = arith.sitofp %167 : vector<2x9xi32> to vector<2x9xf32>
    %169 = vector.shape_cast %153 : vector<2x32xf32> to vector<2x1x32xf32>
    %170 = vector.shape_cast %168 : vector<2x9xf32> to vector<2x9x1xf32>
    %171 = vector.broadcast %170 : vector<2x9x1xf32> to vector<2x9x128xf32>
    %172 = arith.mulf %171, %51 : vector<2x9x128xf32>
    %cst_46 = arith.constant dense<0.000000e+00> : vector<2x128xf32>
    %173 = vector.multi_reduction <add>, %172, %cst_46 [1] : vector<2x9x128xf32> to vector<2x128xf32>
    %174 = vector.extract_strided_slice %154 {offsets = [0, 0], sizes = [2, 128], strides = [1, 1]} : vector<2x137xf32> to vector<2x128xf32>
    %175 = arith.addf %173, %174 : vector<2x128xf32>
    %176 = arith.negf %175 : vector<2x128xf32>
    %177 = math.exp %176 : vector<2x128xf32>
    %cst_47 = arith.constant 1.000000e+00 : f32
    %178 = vector.broadcast %cst_47 : f32 to vector<2x128xf32>
    %179 = arith.addf %178, %177 : vector<2x128xf32>
    %180 = arith.divf %178, %179 : vector<2x128xf32>
    %181 = math.tanh %175 : vector<2x128xf32>
    %182 = vector.extract_strided_slice %180 {offsets = [0, 32], sizes = [2, 32], strides = [1, 1]} : vector<2x128xf32> to vector<2x32xf32>
    %183 = arith.mulf %182, %150 : vector<2x32xf32>
    %184 = vector.extract_strided_slice %180 {offsets = [0, 0], sizes = [2, 32], strides = [1, 1]} : vector<2x128xf32> to vector<2x32xf32>
    %185 = vector.extract_strided_slice %181 {offsets = [0, 64], sizes = [2, 32], strides = [1, 1]} : vector<2x128xf32> to vector<2x32xf32>
    %186 = arith.mulf %184, %185 : vector<2x32xf32>
    %187 = arith.addf %183, %186 : vector<2x32xf32>
    %188 = vector.extract_strided_slice %180 {offsets = [0, 96], sizes = [2, 32], strides = [1, 1]} : vector<2x128xf32> to vector<2x32xf32>
    %189 = math.tanh %187 : vector<2x32xf32>
    %190 = arith.mulf %188, %189 : vector<2x32xf32>
    %cst_48 = arith.constant dense<0.000000e+00> : vector<2x137xf32>
    %191 = tpu.matmul %190, %57, %cst_48 {dimension_numbers = #tpu.dot_dimension_numbers<[1], [0], [0], [1], [0, 0, 1, 1], [], []>, precision = #tpu.contract_precision<fp32>} : vector<2x32xf32>, vector<32x137xf32>, vector<2x137xf32> -> vector<2x137xf32>
    %192 = vector.extract_strided_slice %191 {offsets = [0, 128], sizes = [2, 9], strides = [1, 1]} : vector<2x137xf32> to vector<2x9xf32>
    %193 = arith.addf %192, %60 : vector<2x9xf32>
    %cst_49 = arith.constant dense<0xFF800000> : vector<2xf32>
    %194 = vector.multi_reduction <maximumf>, %193, %cst_49 [1] : vector<2x9xf32> to vector<2xf32>
    %195 = vector.shape_cast %194 : vector<2xf32> to vector<2x1xf32>
    %196 = vector.broadcast %195 : vector<2x1xf32> to vector<2x9xf32>
    %197 = arith.cmpf oge, %193, %196 : vector<2x9xf32>
    %c9_i32_50 = arith.constant 9 : i32
    %198 = vector.broadcast %c9_i32_50 : i32 to vector<2x9xi32>
    %199 = arith.select %197, %61, %198 : vector<2x9xi1>, vector<2x9xi32>
    %cst_51 = arith.constant dense<2147483647> : vector<2xi32>
    %200 = vector.multi_reduction <minsi>, %199, %cst_51 [1] : vector<2x9xi32> to vector<2xi32>
    %201 = vector.shape_cast %200 : vector<2xi32> to vector<2x1xi32>
    %202 = vector.broadcast %201 : vector<2x1xi32> to vector<2x9xi32>
    %203 = arith.cmpi eq, %199, %202 : vector<2x9xi32>
    %204 = arith.extui %203 : vector<2x9xi1> to vector<2x9xi32>
    %205 = arith.sitofp %204 : vector<2x9xi32> to vector<2x9xf32>
    %206 = vector.shape_cast %190 : vector<2x32xf32> to vector<2x1x32xf32>
    %207 = vector.shape_cast %205 : vector<2x9xf32> to vector<2x9x1xf32>
    %208 = vector.broadcast %207 : vector<2x9x1xf32> to vector<2x9x128xf32>
    %209 = arith.mulf %208, %51 : vector<2x9x128xf32>
    %cst_52 = arith.constant dense<0.000000e+00> : vector<2x128xf32>
    %210 = vector.multi_reduction <add>, %209, %cst_52 [1] : vector<2x9x128xf32> to vector<2x128xf32>
    %211 = vector.extract_strided_slice %191 {offsets = [0, 0], sizes = [2, 128], strides = [1, 1]} : vector<2x137xf32> to vector<2x128xf32>
    %212 = arith.addf %210, %211 : vector<2x128xf32>
    %213 = arith.negf %212 : vector<2x128xf32>
    %214 = math.exp %213 : vector<2x128xf32>
    %cst_53 = arith.constant 1.000000e+00 : f32
    %215 = vector.broadcast %cst_53 : f32 to vector<2x128xf32>
    %216 = arith.addf %215, %214 : vector<2x128xf32>
    %217 = arith.divf %215, %216 : vector<2x128xf32>
    %218 = math.tanh %212 : vector<2x128xf32>
    %219 = vector.extract_strided_slice %217 {offsets = [0, 32], sizes = [2, 32], strides = [1, 1]} : vector<2x128xf32> to vector<2x32xf32>
    %220 = arith.mulf %219, %187 : vector<2x32xf32>
    %221 = vector.extract_strided_slice %217 {offsets = [0, 0], sizes = [2, 32], strides = [1, 1]} : vector<2x128xf32> to vector<2x32xf32>
    %222 = vector.extract_strided_slice %218 {offsets = [0, 64], sizes = [2, 32], strides = [1, 1]} : vector<2x128xf32> to vector<2x32xf32>
    %223 = arith.mulf %221, %222 : vector<2x32xf32>
    %224 = arith.addf %220, %223 : vector<2x32xf32>
    %225 = vector.extract_strided_slice %217 {offsets = [0, 96], sizes = [2, 32], strides = [1, 1]} : vector<2x128xf32> to vector<2x32xf32>
    %226 = math.tanh %224 : vector<2x32xf32>
    %227 = arith.mulf %225, %226 : vector<2x32xf32>
    %cst_54 = arith.constant dense<0.000000e+00> : vector<2x137xf32>
    %228 = tpu.matmul %227, %57, %cst_54 {dimension_numbers = #tpu.dot_dimension_numbers<[1], [0], [0], [1], [0, 0, 1, 1], [], []>, precision = #tpu.contract_precision<fp32>} : vector<2x32xf32>, vector<32x137xf32>, vector<2x137xf32> -> vector<2x137xf32>
    %229 = vector.extract_strided_slice %228 {offsets = [0, 128], sizes = [2, 9], strides = [1, 1]} : vector<2x137xf32> to vector<2x9xf32>
    %230 = arith.addf %229, %60 : vector<2x9xf32>
    %cst_55 = arith.constant dense<0xFF800000> : vector<2xf32>
    %231 = vector.multi_reduction <maximumf>, %230, %cst_55 [1] : vector<2x9xf32> to vector<2xf32>
    %232 = vector.shape_cast %231 : vector<2xf32> to vector<2x1xf32>
    %233 = vector.broadcast %232 : vector<2x1xf32> to vector<2x9xf32>
    %234 = arith.cmpf oge, %230, %233 : vector<2x9xf32>
    %c9_i32_56 = arith.constant 9 : i32
    %235 = vector.broadcast %c9_i32_56 : i32 to vector<2x9xi32>
    %236 = arith.select %234, %61, %235 : vector<2x9xi1>, vector<2x9xi32>
    %cst_57 = arith.constant dense<2147483647> : vector<2xi32>
    %237 = vector.multi_reduction <minsi>, %236, %cst_57 [1] : vector<2x9xi32> to vector<2xi32>
    %238 = vector.shape_cast %237 : vector<2xi32> to vector<2x1xi32>
    %239 = vector.shape_cast %227 : vector<2x32xf32> to vector<2x1x32xf32>
    %240 = tpu.concatenate %95, %132, %169, %206, %239 in 1 : vector<2x1x32xf32>, vector<2x1x32xf32>, vector<2x1x32xf32>, vector<2x1x32xf32>, vector<2x1x32xf32> -> vector<2x5x32xf32>
    %c0_58 = arith.constant 0 : index
    %c0_59 = arith.constant 0 : index
    %c0_60 = arith.constant 0 : index
    %241 = vector.load %arg12[%c0_58, %c0_59, %c0_60] : memref<2x5x32xf32, #tpu.memory_space<vmem>>, vector<2x5x32xf32>
    tpu.vector_store %arg12[%c0_58, %c0_59, %c0_60], %240 {strides = array<i32>} : memref<2x5x32xf32, #tpu.memory_space<vmem>>, vector<2x5x32xf32>,
    %242 = tpu.concatenate %90, %127, %164, %201, %238 in 1 : vector<2x1xi32>, vector<2x1xi32>, vector<2x1xi32>, vector<2x1xi32>, vector<2x1xi32> -> vector<2x5xi32>
    %c0_61 = arith.constant 0 : index
    %c0_62 = arith.constant 0 : index
    %243 = vector.load %arg13[%c0_61, %c0_62] : memref<2x5xi32, #tpu.memory_space<vmem>>, vector<2x5xi32>
    tpu.vector_store %arg13[%c0_61, %c0_62], %242 {strides = array<i32>} : memref<2x5xi32, #tpu.memory_space<vmem>>, vector<2x5xi32>,
    return
  }
  func.func @transform_0(%arg0: i32) -> (i32, i32) {
    %c0_i32 = arith.constant 0 : i32
    %c0_i32_0 = arith.constant 0 : i32
    return %arg0, %c0_i32 : i32, i32
  }
  func.func @transform_1(%arg0: i32) -> (i32, i32) {
    %c0_i32 = arith.constant 0 : i32
    %c0_i32_0 = arith.constant 0 : i32
    %c0_i32_1 = arith.constant 0 : i32
    return %c0_i32, %c0_i32_0 : i32, i32
  }
  func.func @transform_2(%arg0: i32) -> (i32, i32) {
    %c0_i32 = arith.constant 0 : i32
    %c0_i32_0 = arith.constant 0 : i32
    %c0_i32_1 = arith.constant 0 : i32
    return %c0_i32, %c0_i32_0 : i32, i32
  }
  func.func @transform_3(%arg0: i32) -> (i32, i32) {
    %c0_i32 = arith.constant 0 : i32
    %c0_i32_0 = arith.constant 0 : i32
    %c0_i32_1 = arith.constant 0 : i32
    return %c0_i32, %c0_i32_0 : i32, i32
  }
  func.func @transform_4(%arg0: i32) -> (i32, i32) {
    %c0_i32 = arith.constant 0 : i32
    %c0_i32_0 = arith.constant 0 : i32
    %c0_i32_1 = arith.constant 0 : i32
    return %c0_i32, %c0_i32_0 : i32, i32
  }
  func.func @transform_5(%arg0: i32) -> (i32, i32) {
    %c0_i32 = arith.constant 0 : i32
    %c0_i32_0 = arith.constant 0 : i32
    %c0_i32_1 = arith.constant 0 : i32
    return %c0_i32, %c0_i32_0 : i32, i32
  }
  func.func @transform_6(%arg0: i32) -> (i32, i32) {
    %c0_i32 = arith.constant 0 : i32
    %c0_i32_0 = arith.constant 0 : i32
    %c0_i32_1 = arith.constant 0 : i32
    return %c0_i32, %c0_i32_0 : i32, i32
  }
  func.func @transform_7(%arg0: i32) -> (i32, i32) {
    %c0_i32 = arith.constant 0 : i32
    %c0_i32_0 = arith.constant 0 : i32
    %c0_i32_1 = arith.constant 0 : i32
    return %c0_i32, %c0_i32_0 : i32, i32
  }
  func.func @transform_8(%arg0: i32) -> (i32, i32) {
    %c0_i32 = arith.constant 0 : i32
    %c0_i32_0 = arith.constant 0 : i32
    %c0_i32_1 = arith.constant 0 : i32
    return %c0_i32, %c0_i32_0 : i32, i32
  }
  func.func @transform_9(%arg0: i32) -> (i32, i32) {
    %c0_i32 = arith.constant 0 : i32
    %c0_i32_0 = arith.constant 0 : i32
    %c0_i32_1 = arith.constant 0 : i32
    return %c0_i32, %c0_i32_0 : i32, i32
  }
  func.func @transform_10(%arg0: i32) -> (i32, i32) {
    %c0_i32 = arith.constant 0 : i32
    %c0_i32_0 = arith.constant 0 : i32
    %c0_i32_1 = arith.constant 0 : i32
    return %c0_i32, %c0_i32_0 : i32, i32
  }
  func.func @transform_11(%arg0: i32) -> (i32, i32, i32) {
    %c0_i32 = arith.constant 0 : i32
    %c0_i32_0 = arith.constant 0 : i32
    %c0_i32_1 = arith.constant 0 : i32
    return %arg0, %c0_i32, %c0_i32_0 : i32, i32, i32
  }
  func.func @transform_12(%arg0: i32) -> (i32, i32) {
    %c0_i32 = arith.constant 0 : i32
    %c0_i32_0 = arith.constant 0 : i32
    return %arg0, %c0_i32 : i32, i32
  }
}

</mosaic_0001>

<bundles_post_ra>
// kernel: pointer_net_pallas.1
= control target key start
LH: loop header
LB: loop body
LE: loop exit
PB: predicated region body
PF: predicated region fallthrough
CT: control target
= control target key end

     0   :  { %v42_v0 = vlaneseq  ;;  %vm98_vm0 = vcmask 1041408   ;;  %s9940_s0 = inlined_call_operand.vmem [shape: s32[2,16], index: 0, kind: input, shape index: {}]   ;;  %s9941_s1 = inlined_call_operand.vmem [shape: f32[50,32], index: 1, kind: input, shape index: {}]   ;;  %s9942_s2 = inlined_call_operand.vmem [shape: f32[128,9], index: 2, kind: input, shape index: {}]   ;;  %s9943_s3 = inlined_call_operand.vmem [shape: f32[1,9], index: 3, kind: input, shape index: {}]   ;;  %s9944_s4 = inlined_call_operand.vmem [shape: f32[9,32], index: 4, kind: input, shape index: {}]   ;;  %s9945_s5 = inlined_call_operand.vmem [shape: f32[1,32], index: 5, kind: input, shape index: {}]   ;;  %s9946_s6 = inlined_call_operand.vmem [shape: f32[32,128], index: 6, kind: input, shape index: {}]   ;;  %s9947_s7 = inlined_call_operand.vmem [shape: f32[32,137], index: 7, kind: input, shape index: {}]   ;;  %s9948_s8 = inlined_call_operand.vmem [shape: f32[1,128], index: 8, kind: input, shape index: {}]   ;;  %s9949_s9 = inlined_call_operand.vmem [shape: f32[1,9], index: 9, kind: input, shape index: {}]   ;;  %s9950_s10 = inlined_call_operand.vmem [shape: f32[1,32], index: 10, kind: input, shape index: {}]   ;;  %s9951_s11 = inlined_call_operand.vmem [shape: f32[2,5,32], index: 11, kind: output, shape index: {0}]   ;;  %s9952_s12 = inlined_call_operand.hbm [shape: s32[2,5], index: 12, kind: output, shape index: {1}]  }
   0x1   :  { %v84_v1 = vld [vmem:[%s9941_s1 + $0x30] sm:$0x3]  ;;  %v83_v2 = vld [vmem:[%s9941_s1 + $0x28] sm:$0xff]  ;;  %v82_v5 = vld [vmem:[%s9941_s1 + $0x20] sm:$0xff] }
   0x2   :  { %v100_v3 = vsel %vm98_vm0, %v84_v1, 0  ;;  %v8234_v4 = vand.u32 4294901760, %v83_v2  ;;  %v81_v6 = vld [vmem:[%s9941_s1 + $0x18] sm:$0xff]  ;;  %v80_v7 = vld [vmem:[%s9941_s1 + $0x10] sm:$0xff]  ;;  %v41_v8 = vld [vmem:[%s9940_s0] sm:$0x3] }
   0x3   :  { %v8249_v9 = vshrl.u32 %v42_v0, 7  ;;  %v8251_v10 = vand.u32 4294901760, %v100_v3  ;;  %v8253_v11 = vand.u32 4294901760, %v82_v5  ;;  %v79_v12 = vld [vmem:[%s9941_s1 + $0x8] sm:$0xff]  ;;  %v8261_v14 = vand.u32 4294901760, %v81_v6 }
   0x4   :  { %v8259_v13 = vsub.f32 %v83_v2, %v8234_v4  ;;  %v8263_v15 = vand.u32 4294901760, %v80_v7  ;;  %v8265_v16 = vand.u32 4294901760, %v79_v12 }
   0x5   :  { %9984 = vst [vmem:[#allocation5_spill] sm:$0xff] %v8249_v9 }
   0x6   :  { %18 = vsyncpa [#allocation3], 0  ;;  %v8268_v17 = vsub.s32 0, %v8249_v9  ;;  %v8271_v18 = vsub.s32 1, %v8249_v9  ;;  %v8274_v19 = vsub.f32 %v100_v3, %v8251_v10  ;;  %v8277_v20 = vsub.f32 %v82_v5, %v8253_v11  ;;  %7511 = vmatprep.subr.mxu0 %v8251_v10  ;;  %v78_v24 = vld [vmem:[%s9941_s1] sm:$0xff]  ;;  %s8156_s29 = smov 64  }
   0x7   :  { %v8281_v21 = vand.u32 4294901760, %v8259_v13  ;;  %v8284_v22 = vsub.f32 %v81_v6, %v8261_v14  ;;  %v8287_v23 = vsub.f32 %v80_v7, %v8263_v15  ;;  %7512 = vmatpush3.msra.mxu0 %v8251_v10  ;;  %v8308_v31 = vsub.f32 %v79_v12, %v8265_v16  ;;  %s8157_s30 = smov 96  }
   0x8   :  { %9985 = vst [vmem:[#allocation6_spill] sm:$0xff] %v8268_v17  ;;  %9986 = vst [vmem:[#allocation7_spill] sm:$0xff] %v8271_v18  ;;  %v47_v25 = vrot.slane %v41_v8, %v8268_v17  ;;  %v58_v26 = vrot.slane %v41_v8, %v8271_v18  ;;  %v8296_v27 = vand.u32 4294901760, %v8274_v19  ;;  %v8299_v28 = vand.u32 4294901760, %v8277_v20  ;;  %7513 = vmatprep.subr.mxu0 %v8234_v4 }
   0x9   :  { %v243_v29 = vsub.f32 %v8259_v13, %v8281_v21  ;;  %v8305_v30 = vand.u32 4294901760, %v8284_v22  ;;  %7514 = vmatpush3.msra.mxu0 %v8234_v4  ;;  %v8313_v33 = vand.u32 4294901760, %v78_v24  ;;  %v8318_v35 = vand.u32 4294901760, %v8287_v23 }
   0xa   :  { %49 = vbcast.lane.b32.xlu0 %v47_v25, 256  ;;  %60 = vbcast.lane.b32.xlu1 %v58_v26, 256  ;;  %v236_v32 = vsub.f32 %v8274_v19, %v8296_v27  ;;  %v250_v34 = vsub.f32 %v8277_v20, %v8299_v28  ;;  %v8328_v40 = vand.u32 4294901760, %v8308_v31  ;;  %v8350_v50 = vand.u32 127, %v42_v0 }
   0xb   :  { %7515 = vmatprep.subr.mxu0 %v8253_v11  ;;  %v8322_v37 = vsub.f32 %v78_v24, %v8313_v33  ;;  %v244_v38 = vand.u32 4294901760, %v243_v29  ;;  %v257_v39 = vsub.f32 %v8284_v22, %v8305_v30  ;;  %v264_v42 = vsub.f32 %v8287_v23, %v8318_v35 }
   0xc   :  { %v237_v36 = vand.u32 4294901760, %v236_v32  ;;  %7516 = vmatpush3.msra.mxu0 %v8253_v11  ;;  %v251_v41 = vand.u32 4294901760, %v250_v34  ;;  %v271_v45 = vsub.f32 %v8308_v31, %v8328_v40  ;;  %9987 = vst [vmem:[#allocation8_spill] sm:$0xff] %v8350_v50  ;;  %vm85_vm1 = vcmask 408576  }
   0xd   :  { %7517 = vmatprep.subr.mxu0 %v8261_v14  ;;  %v8334_v43 = vand.u32 4294901760, %v8322_v37  ;;  %v258_v44 = vand.u32 4294901760, %v257_v39  ;;  %v265_v46 = vand.u32 4294901760, %v264_v42  ;;  %v9953_v53 = vmov 0.0  }
   0xe   :  { %53 = vbcast.lane.b32.xlu0 %v47_v25, 264  ;;  %64 = vbcast.lane.b32.xlu1 %v58_v26, 264  ;;  %v272_v48 = vand.u32 4294901760, %v271_v45  ;;  %vm760_vm6 = vcmask 1046528   ;;  %vm782_vm7 = vcmask 1045504   ;;  %vm804_vm8 = vcmask 1044480  }
   0xf   :  { %7531 = vmatprep.subr.mxu1 %v237_v36  ;;  %7518 = vmatpush3.msra.mxu0 %v8261_v14  ;;  %v278_v47 = vsub.f32 %v8322_v37, %v8334_v43  ;;  %vm831_vm9 = vcmask 523264   ;;  %vm826_vm10 = vcmask 261120   ;;  %vm836_vm11 = vcmask 785408  }
  0x10   :  { %7532 = vmatpush3.msra.mxu1 %v237_v36  ;;  %7519 = vmatprep.subr.mxu0 %v8263_v15  ;;  %vm1685_vm12 = vcmask 1040384   ;;  %vm8158_vm13 = vmmov 0  }
  0x11   :  { %7533 = vmatprep.subr.mxu1 %v244_v38  ;;  %7520 = vmatpush3.msra.mxu0 %v8263_v15  ;;  %v279_v49 = vand.u32 4294901760, %v278_v47 }
  0x12   :  { %7534 = vmatpush3.msra.mxu1 %v244_v38  ;;  %7521 = vmatprep.subr.mxu0 %v8265_v16 }
  0x13   :  { %7535 = vmatprep.subr.mxu1 %v251_v41  ;;  %7522 = vmatpush3.msra.mxu0 %v8265_v16 }
  0x14   :  { %7536 = vmatpush3.msra.mxu1 %v251_v41  ;;  %7523 = vmatprep.subr.mxu0 %v8313_v33 }
  0x15   :  { %7537 = vmatprep.subr.mxu1 %v258_v44  ;;  %7524 = vmatpush3.msra.mxu0 %v8313_v33 }
  0x16   :  { %7538 = vmatpush3.msra.mxu1 %v258_v44  ;;  %7551 = vmatprep.subr.mxu0 %v8274_v19 }
  0x17   :  { %7539 = vmatprep.subr.mxu1 %v265_v46 }
  0x18   :  { %7540 = vmatpush3.msra.mxu1 %v265_v46 }
  0x19   :  { %7541 = vmatprep.subr.mxu1 %v272_v48 }
  0x1a   :  { %7542 = vmatpush3.msra.mxu1 %v272_v48 }
  0x1b   :  { %7543 = vmatprep.subr.mxu1 %v279_v49 }
  0x1c   :  { %7544 = vmatpush3.msra.mxu1 %v279_v49 }
  0x1d   :  { %7571 = vmatprep.subr.mxu1 %v8251_v10 }
  0x7c   :  { %v50_v51 = vpop.permute.xlu0 %49  ;;  %v61_v52 = vpop.permute.xlu1 %60 }
  0x7d   :  { %vm66_vm2 = vcmp.eq.s32.totalorder %v8350_v50, %v50_v51  ;;  %vm68_vm3 = vcmp.eq.s32.totalorder %v8350_v50, %v61_v52  ;;  %v848_v52 = vld [vmem:[%s9942_s2 + $0x38] sm:$0xff] }
  0x7e   :  { %v8355_v54 = vsel %vm66_vm2, 1.0, %v9953_v53  ;;  %v8358_v55 = vsel %vm68_vm3, 1.0, %v9953_v53  ;;  %vm1651_vm2 = vcmask 72704   ;;  %vm1681_vm3 = vcmask 1041409  }
  0x7f   :  { %7545 = vmatprep.mubr.msk.f32.mxu1 %vm85_vm1, %v8355_v54  ;;  %v93_v56 = vsel %vm85_vm1, %v8358_v55, 0  ;;  %v87_v57 = vsel %vm85_vm1, %v8355_v54, 0 }
  0x80   :  { %v8366_v58 = vsub.f32 %v93_v56, %v93_v56  ;;  %v54_v59 = vpop.permute.xlu0 %53  ;;  %v65_v60 = vpop.permute.xlu1 %64  ;;  %v175_v61 = vsub.f32 %v87_v57, %v87_v57 }
  0x81   :  { %vm67_vm4 = vcmp.eq.s32.totalorder %v8350_v50, %v54_v59  ;;  %vm69_vm5 = vcmp.eq.s32.totalorder %v8350_v50, %v65_v60 }
  0x82   :  { %v8371_v62 = vsel %vm67_vm4, 1.0, %v9953_v53  ;;  %v8374_v63 = vsel %vm69_vm5, 1.0, %v9953_v53  ;;  %v176_v0 = vand.u32 4294901760, %v175_v61  ;;  %v196_v7 = vand.u32 4294901760, %v8366_v58 }
  0x83   :  { %v90_v1 = vsel %vm85_vm1, %v8371_v62, 0  ;;  %7546 = vmatmul.mubr.msk.f32.vlgmr.msra.gmra.mxu1 %vm85_vm1, %v8371_v62  ;;  %v96_v2 = vsel %vm85_vm1, %v8374_v63, 0  ;;  %vm4406_vm4 = vcmask 66560  }
  0x84   :  { %v185_v3 = vsub.f32 %v90_v1, %v90_v1  ;;  %7572 = vmatpush3.msra.mxu1 %v8251_v10  ;;  %v8383_v5 = vsub.f32 %v96_v2, %v96_v2  ;;  %7548 = vmatprep.mubr.msk.f32.mxu1 %vm85_vm1, %v8358_v55  ;;  %v177_v6 = vsub.f32 %v175_v61, %v176_v0 }
  0x85   :  { %7573 = vmatprep.subr.mxu1 %v8234_v4  ;;  %v197_v26 = vsub.f32 %v8366_v58, %v196_v7 }
  0x86   :  { %7574 = vmatpush3.msra.mxu1 %v8234_v4  ;;  %v178_v8 = vand.u32 4294901760, %v177_v6  ;;  %v186_v12 = vand.u32 4294901760, %v185_v3  ;;  %v206_v24 = vand.u32 4294901760, %v8383_v5 }
  0x87   :  { %7575 = vmatprep.subr.mxu1 %v8253_v11  ;;  %7549 = vmatmul.mubr.msk.f32.gmra.mxu1 %vm85_vm1, %v8374_v63  ;;  %v198_v34 = vand.u32 4294901760, %v197_v26 }
  0x88   :  { %7576 = vmatpush3.msra.mxu1 %v8253_v11  ;;  %7525 = vmatprep.mubr.f32.mxu0 %v178_v8  ;;  %v187_v25 = vsub.f32 %v185_v3, %v186_v12  ;;  %v207_v29 = vsub.f32 %v8383_v5, %v206_v24 }
  0x89   :  { %7577 = vmatprep.subr.mxu1 %v8261_v14  ;;  %7585 = vmatprep.mubr.f32.mxu1 %v176_v0 }
  0x8a   :  { %7578 = vmatpush3.msra.mxu1 %v8261_v14  ;;  %v188_v32 = vand.u32 4294901760, %v187_v25  ;;  %v208_v36 = vand.u32 4294901760, %v207_v29 }
  0x8b   :  { %7579 = vmatprep.subr.mxu1 %v8263_v15 }
  0x8c   :  { %7580 = vmatpush3.msra.mxu1 %v8263_v15  ;;  %7526 = vmatmul.mubr.f32.vlgmr.msra.gmra.mxu0 %v188_v32 }
  0x8d   :  { %7552 = vmatpush3.msra.mxu0 %v8274_v19  ;;  %7581 = vmatprep.subr.mxu1 %v8265_v16  ;;  %v852_v19 = vld [vmem:[%s9942_s2 + $0x58] sm:$0xff] }
  0x8e   :  { %7553 = vmatprep.subr.mxu0 %v8259_v13  ;;  %7582 = vmatpush3.msra.mxu1 %v8265_v16 }
  0x8f   :  { %7554 = vmatpush3.msra.mxu0 %v8259_v13  ;;  %7583 = vmatprep.subr.mxu1 %v8313_v33 }
  0x90   :  { %7528 = vmatprep.mubr.f32.mxu0 %v198_v34  ;;  %7555 = vmatprep.subr.mxu0 %v8277_v20 }
  0x91   :  { %7584 = vmatpush3.msra.mxu1 %v8313_v33  ;;  %7529 = vmatmul.mubr.f32.gmra.mxu0 %v208_v36 }
  0x92   :  { %7556 = vmatpush3.msra.mxu0 %v8277_v20  ;;  %7586 = vmatmul.mubr.f32.vlgmr.msra.gmra.mxu1 %v186_v12  ;;  %v851_v20 = vld [vmem:[%s9942_s2 + $0x50] sm:$0xff] }
  0x93   :  { %7611 = vmatprep.subr.mxu1 %v8251_v10  ;;  %7557 = vmatprep.subr.mxu0 %v8284_v22 }
  0x94   :  { %7565 = vmatprep.mubr.f32.mxu0 %v175_v61  ;;  %7588 = vmatprep.mubr.f32.mxu1 %v196_v7  ;;  %v8571_v61 = vand.u32 4294901760, %v848_v52 }
  0x95   :  { %7612 = vmatpush3.msra.mxu1 %v8251_v10  ;;  %7558 = vmatpush3.msra.mxu0 %v8284_v22  ;;  %v855_v10 = vld [vmem:[%s9942_s2 + $0x70] sm:$0xff]  ;;  %v8490_v22 = vand.u32 4294901760, %v852_v19 }
  0x96   :  { %7613 = vmatprep.subr.mxu1 %v8234_v4  ;;  %7559 = vmatprep.subr.mxu0 %v8287_v23  ;;  %v8580_v1 = vsub.f32 %v848_v52, %v8571_v61 }
  0x97   :  { %7614 = vmatpush3.msra.mxu1 %v8234_v4  ;;  %7560 = vmatpush3.msra.mxu0 %v8287_v23  ;;  %v856_v4 = vld [vmem:[%s9942_s2 + $0x78] sm:$0xff]  ;;  %v8492_v23 = vand.u32 4294901760, %v851_v20  ;;  %v8516_v38 = vsub.f32 %v852_v19, %v8490_v22 }
  0x98   :  { %7589 = vmatmul.mubr.f32.gmra.mxu1 %v206_v24  ;;  %7615 = vmatprep.subr.mxu1 %v8253_v11  ;;  %v8473_v13 = vand.u32 4294901760, %v856_v4 }
  0x99   :  { %7561 = vmatprep.subr.mxu0 %v8308_v31  ;;  %7616 = vmatpush3.msra.mxu1 %v8253_v11  ;;  %v854_v11 = vld [vmem:[%s9942_s2 + $0x68] sm:$0xff]  ;;  %v8520_v39 = vsub.f32 %v851_v20, %v8492_v23  ;;  %v8548_v49 = vand.u32 4294901760, %v8516_v38 }
  0x9a   :  { %7625 = vmatprep.mubr.msk.f32.mxu1 %vm85_vm1, %v8355_v54  ;;  %7562 = vmatpush3.msra.mxu0 %v8308_v31 }
  0x9b   :  { %7617 = vmatprep.subr.mxu1 %v8261_v14  ;;  %7563 = vmatprep.subr.mxu0 %v8322_v37  ;;  %v8552_v51 = vand.u32 4294901760, %v8520_v39  ;;  %v1017_v59 = vsub.f32 %v8516_v38, %v8548_v49 }
  0x9c   :  { %7618 = vmatpush3.msra.mxu1 %v8261_v14  ;;  %7564 = vmatpush3.msra.mxu0 %v8322_v37  ;;  %v8475_v14 = vand.u32 4294901760, %v855_v10 }
  0x9d   :  { %7619 = vmatprep.subr.mxu1 %v8263_v15  ;;  %7566 = vmatmul.mubr.f32.vlgmr.msra.gmra.mxu0 %v185_v3  ;;  %v1018_v2 = vand.u32 4294901760, %v1017_v59 }
  0x9e   :  { %7591 = vmatprep.subr.mxu0 %v8296_v27  ;;  %7620 = vmatpush3.msra.mxu1 %v8263_v15  ;;  %v8477_v15 = vand.u32 4294901760, %v854_v11  ;;  %v8504_v31 = vsub.f32 %v855_v10, %v8475_v14 }
  0x9f   :  { %7568 = vmatprep.mubr.f32.mxu0 %v8366_v58  ;;  %7592 = vmatpush3.msra.mxu0 %v8296_v27  ;;  %v850_v27 = vld [vmem:[%s9942_s2 + $0x48] sm:$0xff] }
  0xa0   :  { %7621 = vmatprep.subr.mxu1 %v8265_v16  ;;  %7593 = vmatprep.subr.mxu0 %v8281_v21  ;;  %v8526_v41 = vand.u32 4294901760, %v8504_v31 }
  0xa1   :  { %7622 = vmatpush3.msra.mxu1 %v8265_v16  ;;  %7594 = vmatpush3.msra.mxu0 %v8281_v21  ;;  %v853_v16 = vld [vmem:[%s9942_s2 + $0x60] sm:$0xff] }
  0xa2   :  { %7623 = vmatprep.subr.mxu1 %v8313_v33  ;;  %7569 = vmatmul.mubr.f32.gmra.mxu0 %v8383_v5  ;;  %v8488_v21 = vand.u32 4294901760, %v853_v16  ;;  %v996_v47 = vsub.f32 %v8504_v31, %v8526_v41  ;;  %v8587_v5 = vand.u32 4294901760, %v8580_v1 }
  0xa3   :  { %7595 = vmatprep.subr.mxu0 %v8299_v28  ;;  %7624 = vmatpush3.msra.mxu1 %v8313_v33  ;;  %v8507_v33 = vsub.f32 %v854_v11, %v8477_v15 }
  0xa4   :  { %7596 = vmatpush3.msra.mxu0 %v8299_v28  ;;  %7605 = vmatprep.mubr.msk.f32.mxu0 %vm85_vm1, %v8355_v54  ;;  %v849_v28 = vld [vmem:[%s9942_s2 + $0x40] sm:$0xff]  ;;  %v8513_v37 = vsub.f32 %v853_v16, %v8488_v21  ;;  %9990 = vst [vmem:[#allocation11_spill] sm:$0xff] %v8587_v5  ;;  %v1045_v12 = vsub.f32 %v8580_v1, %v8587_v5 }
  0xa5   :  { %7626 = vmatmul.mubr.msk.f32.vlgmr.msra.gmra.mxu1 %vm85_vm1, %v8371_v62  ;;  %7597 = vmatprep.subr.mxu0 %v8305_v30  ;;  %v8529_v42 = vand.u32 4294901760, %v8507_v33 }
  0xa6   :  { %7628 = vmatprep.mubr.msk.f32.mxu1 %vm85_vm1, %v8358_v55  ;;  %7598 = vmatpush3.msra.mxu0 %v8305_v30  ;;  %v8501_v30 = vsub.f32 %v856_v4, %v8473_v13  ;;  %v8535_v44 = vand.u32 4294901760, %v8513_v37  ;;  %v1046_v25 = vand.u32 4294901760, %v1045_v12 }
  0xa7   :  { %7599 = vmatprep.subr.mxu0 %v8318_v35  ;;  %v1003_v48 = vsub.f32 %v8507_v33, %v8529_v42 }
  0xa8   :  { %7600 = vmatpush3.msra.mxu0 %v8318_v35  ;;  %v8510_v35 = vand.u32 4294901760, %v850_v27  ;;  %v1010_v56 = vsub.f32 %v8513_v37, %v8535_v44 }
  0xa9   :  { %7629 = vmatmul.mubr.msk.f32.gmra.mxu1 %vm85_vm1, %v8374_v63  ;;  %7601 = vmatprep.subr.mxu0 %v8328_v40  ;;  %v1004_v58 = vand.u32 4294901760, %v1003_v48 }
  0xaa   :  { %7602 = vmatpush3.msra.mxu0 %v8328_v40  ;;  %v8523_v40 = vand.u32 4294901760, %v8501_v30  ;;  %v8539_v45 = vsub.f32 %v850_v27, %v8510_v35  ;;  %v847_v27 = vld [vmem:[%s9942_s2 + $0x30] sm:$0xff] }
  0xab   :  { %7603 = vmatprep.subr.mxu0 %v8334_v43 }
  0xac   :  { %7604 = vmatpush3.msra.mxu0 %v8334_v43  ;;  %v8532_v43 = vand.u32 4294901760, %v849_v28  ;;  %v989_v46 = vsub.f32 %v8501_v30, %v8523_v40  ;;  %v8568_v60 = vand.u32 4294901760, %v8539_v45 }
  0xad   :  { %7606 = vmatmul.mubr.msk.f32.vlgmr.msra.gmra.mxu0 %vm85_vm1, %v8371_v62  ;;  %7631 = vmatprep.subr.mxu0 %v8473_v13  ;;  %v1011_v62 = vand.u32 4294901760, %v1010_v56 }
  0xae   :  { %7608 = vmatprep.mubr.msk.f32.mxu0 %vm85_vm1, %v8358_v55  ;;  %7632 = vmatpush3.msra.mxu0 %v8473_v13  ;;  %v990_v54 = vand.u32 4294901760, %v989_v46  ;;  %v997_v55 = vand.u32 4294901760, %v996_v47  ;;  %v8562_v57 = vsub.f32 %v849_v28, %v8532_v43  ;;  %9988 = vst [vmem:[#allocation9_spill] sm:$0xff] %v8568_v60  ;;  %v1031_v3 = vsub.f32 %v8539_v45, %v8568_v60  ;;  %v846_v46 = vld [vmem:[%s9942_s2 + $0x28] sm:$0xff] }
  0xaf   :  { %7633 = vmatprep.subr.mxu0 %v8475_v14  ;;  %v8606_v28 = vand.u32 4294901760, %v847_v27 }
  0xb0   :  { %7634 = vmatpush3.msra.mxu0 %v8475_v14  ;;  %7669 = vmatprep.subr.mxu1 %v990_v54  ;;  %v8577_v0 = vand.u32 4294901760, %v8562_v57  ;;  %v1032_v8 = vand.u32 4294901760, %v1031_v3 }
  0xb1   :  { %7609 = vmatmul.mubr.msk.f32.gmra.mxu0 %vm85_vm1, %v8374_v63  ;;  %7635 = vmatprep.subr.mxu0 %v8477_v15  ;;  %v1024_v63 = vsub.f32 %v8520_v39, %v8552_v51  ;;  %v8614_v52 = vsub.f32 %v847_v27, %v8606_v28 }
  0xb2   :  { %7636 = vmatpush3.msra.mxu0 %v8477_v15  ;;  %7670 = vmatpush3.msra.mxu1 %v990_v54  ;;  %9989 = vst [vmem:[#allocation10_spill] sm:$0xff] %v8577_v0  ;;  %v1038_v7 = vsub.f32 %v8562_v57, %v8577_v0  ;;  %v8616_v54 = vand.u32 4294901760, %v846_v46 }
  0xb3   :  { %7637 = vmatprep.subr.mxu0 %v8488_v21  ;;  %7671 = vmatprep.subr.mxu1 %v997_v55  ;;  %v1025_v6 = vand.u32 4294901760, %v1024_v63  ;;  %v8624_v56 = vand.u32 4294901760, %v8614_v52  ;;  %v844_v63 = vld [vmem:[%s9942_s2 + $0x18] sm:$0xff] }
  0xb4   :  { %7638 = vmatpush3.msra.mxu0 %v8488_v21  ;;  %7672 = vmatpush3.msra.mxu1 %v997_v55  ;;  %v1039_v24 = vand.u32 4294901760, %v1038_v7  ;;  %v845_v55 = vld [vmem:[%s9942_s2 + $0x20] sm:$0xff] }
  0xb5   :  { %7639 = vmatprep.subr.mxu0 %v8490_v22  ;;  %7673 = vmatprep.subr.mxu1 %v1004_v58  ;;  %9991 = vst [vmem:[#allocation12_spill] sm:$0xff] %v8624_v56 }
  0xb6   :  { %7640 = vmatpush3.msra.mxu0 %v8490_v22  ;;  %7674 = vmatpush3.msra.mxu1 %v1004_v58  ;;  %v8627_v58 = vsub.f32 %v846_v46, %v8616_v54 }
  0xb7   :  { %7641 = vmatprep.subr.mxu0 %v8492_v23  ;;  %7675 = vmatprep.subr.mxu1 %v1011_v62 }
  0xb8   :  { %7642 = vmatpush3.msra.mxu0 %v8492_v23  ;;  %7676 = vmatpush3.msra.mxu1 %v1011_v62  ;;  %v8630_v62 = vand.u32 4294901760, %v845_v55  ;;  %v8643_v7 = vand.u32 4294901760, %v8627_v58 }
  0xb9   :  { %7643 = vmatprep.subr.mxu0 %v8510_v35  ;;  %7677 = vmatprep.subr.mxu1 %v1018_v2 }
  0xba   :  { %7644 = vmatpush3.msra.mxu0 %v8510_v35  ;;  %7678 = vmatpush3.msra.mxu1 %v1018_v2  ;;  %9992 = vst [vmem:[#allocation13_spill] sm:$0xff] %v8643_v7  ;;  %v1059_v46 = vsub.f32 %v8627_v58, %v8643_v7 }
  0xbb   :  { %7645 = vmatprep.subr.mxu0 %v8532_v43  ;;  %7679 = vmatprep.subr.mxu1 %v1025_v6 }
  0xbc   :  { %7646 = vmatpush3.msra.mxu0 %v8532_v43  ;;  %7680 = vmatpush3.msra.mxu1 %v1025_v6  ;;  %v1052_v6 = vsub.f32 %v8614_v52, %v8624_v56 }
  0xbd   :  { %7647 = vmatprep.subr.mxu0 %v8571_v61  ;;  %7681 = vmatprep.subr.mxu1 %v1032_v8 }
  0xbe   :  { %7648 = vmatpush3.msra.mxu0 %v8571_v61  ;;  %7682 = vmatpush3.msra.mxu1 %v1032_v8  ;;  %v8645_v8 = vand.u32 4294901760, %v844_v63  ;;  %v1053_v27 = vand.u32 4294901760, %v1052_v6 }
  0xbf   :  { %7683 = vmatprep.subr.mxu1 %v1039_v24  ;;  %7649 = vmatprep.subr.mxu0 %v8606_v28 }
  0xc0   :  { %7684 = vmatpush3.msra.mxu1 %v1039_v24  ;;  %7650 = vmatpush3.msra.mxu0 %v8606_v28  ;;  %v8657_v53 = vsub.f32 %v844_v63, %v8645_v8 }
  0xc1   :  { %7685 = vmatprep.subr.mxu1 %v1046_v25  ;;  %7651 = vmatprep.subr.mxu0 %v8616_v54 }
  0xc2   :  { %7686 = vmatpush3.msra.mxu1 %v1046_v25  ;;  %7652 = vmatpush3.msra.mxu0 %v8616_v54  ;;  %v8648_v25 = vsub.f32 %v845_v55, %v8630_v62  ;;  %v8670_v63 = vand.u32 4294901760, %v8657_v53 }
  0xc3   :  { %7653 = vmatprep.subr.mxu0 %v8630_v62  ;;  %7687 = vmatprep.subr.mxu1 %v1053_v27 }
  0xc4   :  { %7654 = vmatpush3.msra.mxu0 %v8630_v62  ;;  %9994 = vst [vmem:[#allocation15_spill] sm:$0xff] %v8670_v63  ;;  %7688 = vmatpush3.msra.mxu1 %v1053_v27 }
  0xc5   :  { %7655 = vmatprep.subr.mxu0 %v8645_v8 }
  0xc6   :  { %7656 = vmatpush3.msra.mxu0 %v8645_v8 }
 0x143   :  { %v7547_v26 = vpop.f32.mrf.mxu1 }
 0x145   :  { %v316_v29 = vpop.f32.mrf.mxu1 }
 0x147   :  { %v8599_v34 = vpop.f32.mrf.mxu1 }
 0x149   :  { %v328_v4 = vpop.f32.mrf.mxu1 }
 0x14c   :  { %v7527_v32 = vpop.f32.mrf.mxu0 }
 0x14d   :  { %v323_v59 = vadd.f32 %v7547_v26, %v7527_v32  ;;  %v843_v26 = vld [vmem:[%s9942_s2 + $0x10] sm:$0xff] }
 0x14e   :  { %v180_v36 = vpop.f32.mrf.mxu0  ;;  %v8659_v18 = vand.u32 4294901760, %v843_v26 }
 0x14f   :  { %v317_v12 = vadd.f32 %v316_v29, %v180_v36  ;;  %v8663_v36 = vand.u32 4294901760, %v8648_v25 }
 0x150   :  { %v8673_v6 = vsub.f32 %v843_v26, %v8659_v18  ;;  %7657 = vmatprep.subr.mxu0 %v8659_v18  ;;  %v1073_v26 = vsub.f32 %v8657_v53, %v8670_v63 }
 0x151   :  { %v8601_v10 = vpop.f32.mrf.mxu0  ;;  %9993 = vst [vmem:[#allocation14_spill] sm:$0xff] %v8663_v36  ;;  %v1066_v9 = vsub.f32 %v8648_v25, %v8663_v36  ;;  %7658 = vmatpush3.msra.mxu0 %v8659_v18 }
 0x152   :  { %v7587_v11 = vpop.f32.mrf.mxu1  ;;  %v8687_v56 = vand.u32 4294901760, %v8673_v6  ;;  %v1074_v0 = vand.u32 4294901760, %v1073_v26 }
 0x153   :  { %v200_v16 = vpop.f32.mrf.mxu0  ;;  %v1067_v36 = vand.u32 4294901760, %v1066_v9 }
 0x154   :  { %v521_v19 = vpop.f32.mrf.mxu1  ;;  %v1080_v63 = vsub.f32 %v8673_v6, %v8687_v56 }
 0x158   :  { %v8611_v47 = vpop.f32.mrf.mxu1 }
 0x15a   :  { %v8636_v2 = vpop.f32.mrf.mxu1 }
 0x15d   :  { %v7567_v20 = vpop.f32.mrf.mxu0 }
 0x15e   :  { %v428_v24 = vadd.f32 %v7567_v20, %v323_v59  ;;  %v842_v20 = vld [vmem:[%s9942_s2 + $0x8] sm:$0xff]  ;;  %v1060_v59 = vand.u32 4294901760, %v1059_v46  ;;  %v841_v46 = vld [vmem:[%s9942_s2] sm:$0xff]  ;;  %s8155_s2 = smov 32  }
 0x15f   :  { %v420_v48 = vpop.f32.mrf.mxu0  ;;  %v8675_v17 = vand.u32 4294901760, %v842_v20 }
 0x160   :  { %v421_v29 = vadd.f32 %v420_v48, %v317_v12  ;;  %v329_v48 = vadd.f32 %v328_v4, %v200_v16  ;;  %v530_v12 = vadd.f32 %v7587_v11, %v428_v24  ;;  %7689 = vmatprep.subr.mxu1 %v1060_v59  ;;  %v8692_v11 = vand.u32 4294901760, %v841_v46 }
 0x161   :  { %v8690_v4 = vsub.f32 %v842_v20, %v8675_v17  ;;  %7690 = vmatpush3.msra.mxu1 %v1060_v59  ;;  %7659 = vmatprep.subr.mxu0 %v8675_v17  ;;  %v1081_v59 = vand.u32 4294901760, %v1080_v63 }
 0x162   :  { %v8638_v3 = vpop.f32.mrf.mxu0  ;;  %v522_v27 = vadd.f32 %v521_v19, %v421_v29  ;;  %v8702_v20 = vsub.f32 %v841_v46, %v8692_v11  ;;  %7660 = vmatpush3.msra.mxu0 %v8675_v17  ;;  %v335_v19 = vadd.f32 %v8599_v34, %v8601_v10  ;;  %7691 = vmatprep.subr.mxu1 %v1067_v36 }
 0x163   :  { %v8699_v60 = vand.u32 4294901760, %v8690_v4  ;;  %7661 = vmatprep.subr.mxu0 %v8692_v11  ;;  %7692 = vmatpush3.msra.mxu1 %v1067_v36 }
 0x164   :  { %v434_v55 = vpop.f32.mrf.mxu0  ;;  %7662 = vmatpush3.msra.mxu0 %v8692_v11  ;;  %v442_v34 = vadd.f32 %v8638_v3, %v335_v19  ;;  %7693 = vmatprep.subr.mxu1 %v1074_v0 }
 0x165   :  { %v7627_v32 = vpop.f32.mrf.mxu1  ;;  %v435_v16 = vadd.f32 %v434_v55, %v329_v48  ;;  %v1087_v48 = vsub.f32 %v8690_v4, %v8699_v60  ;;  %7707 = vmatprep.subr.mxu0 %v8501_v30  ;;  %7694 = vmatpush3.msra.mxu1 %v1074_v0 }
 0x166   :  { %7695 = vmatprep.subr.mxu1 %v1081_v59 }
 0x167   :  { %v733_v50 = vpop.f32.mrf.mxu1  ;;  %v1088_v36 = vand.u32 4294901760, %v1087_v48  ;;  %7696 = vmatpush3.msra.mxu1 %v1081_v59 }
 0x169   :  { %v7630_v29 = vpop.f32.mrf.mxu1  ;;  %7697 = vmatprep.subr.mxu1 %v1088_v36 }
 0x16a   :  { %7698 = vmatpush3.msra.mxu1 %v1088_v36 }
 0x16d   :  { %v7607_v7 = vpop.f32.mrf.mxu0 }
 0x16e   :  { %v644_v24 = vadd.f32 %v7607_v7, %v530_v12  ;;  %v8713_v12 = vand.u32 4294901760, %v8702_v20 }
 0x16f   :  { %v637_v5 = vpop.f32.mrf.mxu0 }
 0x170   :  { %v8707_v7 = vadd.f32 %v7627_v32, %v644_v24  ;;  %v638_v9 = vadd.f32 %v637_v5, %v522_v27  ;;  %v538_v5 = vadd.f32 %v8636_v2, %v435_v16  ;;  %v1094_v63 = vsub.f32 %v8702_v20, %v8713_v12 }
 0x171   :  { %v7610_v55 = vpop.f32.mrf.mxu0  ;;  %v546_v2 = vadd.f32 %v8611_v47, %v442_v34 }
 0x172   :  { %v8717_v10 = vadd.f32 %v733_v50, %v638_v9  ;;  %v762_v24 = vrot.slane %v8707_v7, 1  ;;  %v745_v50 = vpop.f32.mrf.mxu1  ;;  %v1095_v3 = vand.u32 4294901760, %v1094_v63  ;;  %v784_v9 = vrot.slane %v8707_v7, 2 }
 0x173   :  { %v649_v32 = vpop.f32.mrf.mxu0  ;;  %v656_v19 = vadd.f32 %v7610_v55, %v546_v2 }
 0x174   :  { %v650_v46 = vadd.f32 %v649_v32, %v538_v5  ;;  %v761_v26 = vrot.slane %v8717_v10, 1  ;;  %v783_v0 = vrot.slane %v8717_v10, 2  ;;  %7699 = vmatprep.subr.mxu1 %v1095_v3  ;;  %v805_v34 = vrot.slane %v8717_v10, 3 }
 0x175   :  { %7700 = vmatpush3.msra.mxu1 %v1095_v3  ;;  %v8740_v55 = vadd.f32 %v7630_v29, %v656_v19  ;;  %v806_v32 = vrot.slane %v8707_v7, 3  ;;  %v9995_v29 = vmov 0.0  }
 0x176   :  { %v8726_v16 = vadd.f32 %v745_v50, %v650_v46  ;;  %v763_v27 = vsel %vm760_vm6, %v761_v26, %v762_v24  ;;  %v785_v47 = vsel %vm782_vm7, %v783_v0, %v784_v9  ;;  %7745 = vmatprep.subr.mxu1 %v8473_v13  ;;  %v768_v3 = vrot.slane %v9995_v29, 1 }
 0x177   :  { %770 = vrot.lane.b32.xlu0 %v763_v27, %s8155_s2  ;;  %v807_v36 = vsel %vm804_vm8, %v805_v34, %v806_v32  ;;  %v766_v26 = vrot.slane %v8740_v55, 1  ;;  %v788_v2 = vrot.slane %v8740_v55, 2  ;;  %v790_v19 = vrot.slane %v9995_v29, 2 }
 0x178   :  { %v764_v59 = vrot.slane %v8726_v16, 1  ;;  %v786_v5 = vrot.slane %v8726_v16, 2  ;;  %v808_v46 = vrot.slane %v8726_v16, 3 }
 0x179   :  { %v769_v0 = vsel %vm760_vm6, %v766_v26, %v768_v3 }
 0x17a   :  { %v765_v48 = vsel %vm760_vm6, %v762_v24, %v764_v59  ;;  %v787_v63 = vsel %vm782_vm7, %v784_v9, %v786_v5  ;;  %v767_v24 = vsel %vm760_vm6, %v764_v59, %v766_v26  ;;  %v809_v50 = vsel %vm804_vm8, %v806_v32, %v808_v46 }
 0x17b   :  { %792 = vrot.lane.b32.xlu0 %v785_v47, %s8156_s29  ;;  %772 = vrot.lane.b32.xlu1 %v765_v48, %s8155_s2  ;;  %v789_v27 = vsel %vm782_vm7, %v786_v5, %v788_v2  ;;  %v810_v9 = vrot.slane %v8740_v55, 3  ;;  %v791_v47 = vsel %vm782_vm7, %v788_v2, %v790_v19  ;;  %v812_v48 = vrot.slane %v9995_v29, 3 }
 0x17d   :  { %v811_v59 = vsel %vm804_vm8, %v808_v46, %v810_v9  ;;  %v813_v34 = vsel %vm804_vm8, %v810_v9, %v812_v48 }
 0x17f   :  { %814 = vrot.lane.b32.xlu0 %v807_v36, %s8157_s30  ;;  %794 = vrot.lane.b32.xlu1 %v787_v63, %s8156_s29 }
 0x183   :  { %774 = vrot.lane.b32.xlu0 %v767_v24, %s8155_s2  ;;  %816 = vrot.lane.b32.xlu1 %v809_v50, %s8157_s30 }
 0x187   :  { %796 = vrot.lane.b32.xlu0 %v789_v27, %s8156_s29  ;;  %776 = vrot.lane.b32.xlu1 %v769_v0, %s8155_s2 }
 0x18b   :  { %818 = vrot.lane.b32.xlu0 %v811_v59, %s8157_s30  ;;  %798 = vrot.lane.b32.xlu1 %v791_v47, %s8156_s29 }
 0x18f   :  { %820 = vrot.lane.b32.xlu1 %v813_v34, %s8157_s30 }
 0x1e9   :  { %v771_v5 = vpop.permute.xlu0 %770 }
 0x1ea   :  { %v827_v63 = vsel %vm826_vm10, %v8717_v10, %v771_v5 }
 0x1ed   :  { %v793_v32 = vpop.permute.xlu0 %792  ;;  %v773_v36 = vpop.permute.xlu1 %772 }
 0x1ee   :  { %v832_v46 = vsel %vm831_vm9, %v827_v63, %v793_v32  ;;  %v828_v2 = vsel %vm826_vm10, %v8707_v7, %v773_v36 }
 0x1f1   :  { %v815_v26 = vpop.permute.xlu0 %814  ;;  %v795_v24 = vpop.permute.xlu1 %794 }
 0x1f2   :  { %v837_v50 = vsel %vm836_vm11, %v832_v46, %v815_v26  ;;  %v833_v0 = vsel %vm831_vm9, %v828_v2, %v795_v24 }
 0x1f3   :  { %v8768_v3 = vand.u32 4294901760, %v837_v50 }
 0x1f5   :  { %v8773_v27 = vsub.f32 %v837_v50, %v8768_v3  ;;  %7701 = vmatprep.mubr.f32.mxu1 %v8768_v3  ;;  %v775_v19 = vpop.permute.xlu0 %774  ;;  %v817_v9 = vpop.permute.xlu1 %816 }
 0x1f6   :  { %v838_v59 = vsel %vm836_vm11, %v833_v0, %v817_v9  ;;  %v829_v26 = vsel %vm826_vm10, %v8726_v16, %v775_v19 }
 0x1f7   :  { %v8778_v47 = vand.u32 4294901760, %v838_v59  ;;  %v947_v48 = vand.u32 4294901760, %v8773_v27 }
 0x1f9   :  { %v8782_v34 = vsub.f32 %v838_v59, %v8778_v47  ;;  %v797_v5 = vpop.permute.xlu0 %796  ;;  %7702 = vmatmul.mubr.f32.vlgmr.msra.gmra.mxu1 %v8778_v47  ;;  %v777_v32 = vpop.permute.xlu1 %776  ;;  %v948_v36 = vsub.f32 %v8773_v27, %v947_v48 }
 0x1fa   :  { %7746 = vmatpush3.msra.mxu1 %v8473_v13  ;;  %v834_v50 = vsel %vm831_vm9, %v829_v26, %v797_v5  ;;  %v830_v19 = vsel %vm826_vm10, %v8740_v55, %v777_v32 }
 0x1fb   :  { %v957_v63 = vand.u32 4294901760, %v8782_v34  ;;  %7747 = vmatprep.subr.mxu1 %v8475_v14  ;;  %v949_v46 = vand.u32 4294901760, %v948_v36 }
 0x1fc   :  { %7748 = vmatpush3.msra.mxu1 %v8475_v14 }
 0x1fd   :  { %v958_v24 = vsub.f32 %v8782_v34, %v957_v63  ;;  %7749 = vmatprep.subr.mxu1 %v8477_v15  ;;  %7663 = vmatprep.mubr.f32.mxu0 %v949_v46  ;;  %v819_v2 = vpop.permute.xlu0 %818  ;;  %v799_v0 = vpop.permute.xlu1 %798 }
 0x1fe   :  { %v839_v9 = vsel %vm836_vm11, %v834_v50, %v819_v2  ;;  %7750 = vmatpush3.msra.mxu1 %v8477_v15  ;;  %v835_v46 = vsel %vm831_vm9, %v830_v19, %v799_v0 }
 0x1ff   :  { %v959_v59 = vand.u32 4294901760, %v958_v24  ;;  %v8799_v36 = vand.u32 4294901760, %v839_v9  ;;  %7751 = vmatprep.subr.mxu1 %v8488_v21 }
 0x200   :  { %7752 = vmatpush3.msra.mxu1 %v8488_v21 }
 0x201   :  { %v8806_v5 = vsub.f32 %v839_v9, %v8799_v36  ;;  %7753 = vmatprep.subr.mxu1 %v8490_v22  ;;  %7664 = vmatmul.mubr.f32.vlgmr.msra.gmra.mxu0 %v959_v59  ;;  %v821_v26 = vpop.permute.xlu1 %820 }
 0x202   :  { %7704 = vmatprep.mubr.f32.mxu1 %v8799_v36  ;;  %7708 = vmatpush3.msra.mxu0 %v8501_v30  ;;  %v840_v24 = vsel %vm836_vm11, %v835_v46, %v821_v26  ;;  %v8159_v46 = vmov 12  }
 0x203   :  { %7754 = vmatpush3.msra.mxu1 %v8490_v22  ;;  %v8814_v32 = vand.u32 4294901760, %v840_v24  ;;  %7709 = vmatprep.subr.mxu0 %v8504_v31  ;;  %v967_v50 = vand.u32 4294901760, %v8806_v5 }
 0x204   :  { %7755 = vmatprep.subr.mxu1 %v8492_v23  ;;  %7710 = vmatpush3.msra.mxu0 %v8504_v31 }
 0x205   :  { %v8821_v2 = vsub.f32 %v840_v24, %v8814_v32  ;;  %7756 = vmatpush3.msra.mxu1 %v8492_v23  ;;  %7711 = vmatprep.subr.mxu0 %v8507_v33  ;;  %v968_v30 = vsub.f32 %v8806_v5, %v967_v50 }
 0x206   :  { %7757 = vmatprep.subr.mxu1 %v8510_v35  ;;  %7705 = vmatmul.mubr.f32.gmra.mxu1 %v8814_v32 }
 0x207   :  { %7712 = vmatpush3.msra.mxu0 %v8507_v33  ;;  %7758 = vmatpush3.msra.mxu1 %v8510_v35  ;;  %v969_v0 = vand.u32 4294901760, %v968_v30  ;;  %v977_v31 = vand.u32 4294901760, %v8821_v2 }
 0x208   :  { %7713 = vmatprep.subr.mxu0 %v8513_v37  ;;  %7759 = vmatprep.subr.mxu1 %v8532_v43 }
 0x209   :  { %7777 = vmatprep.mubr.f32.mxu1 %v947_v48  ;;  %7714 = vmatpush3.msra.mxu0 %v8513_v37  ;;  %v978_v9 = vsub.f32 %v8821_v2, %v977_v31  ;;  %v1670_v37 = vld [vmem:[%s9944_s4] sm:$0xff] }
 0x20a   :  { %7760 = vmatpush3.msra.mxu1 %v8532_v43  ;;  %7715 = vmatprep.subr.mxu0 %v8516_v38 }
 0x20b   :  { %7761 = vmatprep.subr.mxu1 %v8571_v61  ;;  %7666 = vmatprep.mubr.f32.mxu0 %v969_v0  ;;  %v979_v33 = vand.u32 4294901760, %v978_v9  ;;  %v10004_v0 = vld [vmem:[#allocation5_spill] sm:$0xff] }
 0x20c   :  { %7716 = vmatpush3.msra.mxu0 %v8516_v38  ;;  %7762 = vmatpush3.msra.mxu1 %v8571_v61 }
 0x20d   :  { %7717 = vmatprep.subr.mxu0 %v8520_v39  ;;  %7763 = vmatprep.subr.mxu1 %v8606_v28 }
 0x20e   :  { %7718 = vmatpush3.msra.mxu0 %v8520_v39  ;;  %7764 = vmatpush3.msra.mxu1 %v8606_v28  ;;  %v8968_v39 = vand.u32 4294901760, %v1670_v37 }
 0x20f   :  { %7719 = vmatprep.subr.mxu0 %v8539_v45  ;;  %7765 = vmatprep.subr.mxu1 %v8616_v54 }
 0x210   :  { %7667 = vmatmul.mubr.f32.gmra.mxu0 %v979_v33  ;;  %7766 = vmatpush3.msra.mxu1 %v8616_v54 }
 0x211   :  { %7720 = vmatpush3.msra.mxu0 %v8539_v45  ;;  %7739 = vmatprep.mubr.f32.mxu0 %v8773_v27 }
 0x212   :  { %7721 = vmatprep.subr.mxu0 %v8562_v57  ;;  %7767 = vmatprep.subr.mxu1 %v8630_v62 }
 0x213   :  { %7722 = vmatpush3.msra.mxu0 %v8562_v57  ;;  %7768 = vmatpush3.msra.mxu1 %v8630_v62 }
 0x214   :  { %7723 = vmatprep.subr.mxu0 %v8580_v1  ;;  %7769 = vmatprep.subr.mxu1 %v8645_v8 }
 0x215   :  { %7724 = vmatpush3.msra.mxu0 %v8580_v1  ;;  %7770 = vmatpush3.msra.mxu1 %v8645_v8 }
 0x216   :  { %7725 = vmatprep.subr.mxu0 %v8614_v52  ;;  %7771 = vmatprep.subr.mxu1 %v8659_v18 }
 0x217   :  { %7726 = vmatpush3.msra.mxu0 %v8614_v52  ;;  %7772 = vmatpush3.msra.mxu1 %v8659_v18 }
 0x218   :  { %7727 = vmatprep.subr.mxu0 %v8627_v58  ;;  %7773 = vmatprep.subr.mxu1 %v8675_v17 }
 0x219   :  { %7728 = vmatpush3.msra.mxu0 %v8627_v58  ;;  %7774 = vmatpush3.msra.mxu1 %v8675_v17  ;;  %v7213_v58 = vld [vmem:[%s9943_s3] ss:$0 sm:$0xff] }
 0x21a   :  { %7729 = vmatprep.subr.mxu0 %v8648_v25  ;;  %7775 = vmatprep.subr.mxu1 %v8692_v11 }
 0x21b   :  { %7730 = vmatpush3.msra.mxu0 %v8648_v25  ;;  %7776 = vmatpush3.msra.mxu1 %v8692_v11 }
 0x21c   :  { %7731 = vmatprep.subr.mxu0 %v8657_v53  ;;  %7778 = vmatmul.mubr.f32.vlgmr.msra.gmra.mxu1 %v957_v63 }
 0x21d   :  { %7821 = vmatprep.subr.mxu1 %v8473_v13  ;;  %7732 = vmatpush3.msra.mxu0 %v8657_v53  ;;  %v9996_v53 = vld [vmem:[#allocation9_spill] sm:$0xff] }
 0x21e   :  { %7780 = vmatprep.mubr.f32.mxu1 %v967_v50  ;;  %7822 = vmatpush3.msra.mxu1 %v8473_v13  ;;  %v9997_v13 = vld [vmem:[#allocation10_spill] sm:$0xff] }
 0x21f   :  { %7733 = vmatprep.subr.mxu0 %v8673_v6  ;;  %7823 = vmatprep.subr.mxu1 %v8475_v14 }
 0x220   :  { %7734 = vmatpush3.msra.mxu0 %v8673_v6  ;;  %7824 = vmatpush3.msra.mxu1 %v8475_v14  ;;  %v9998_v14 = vld [vmem:[#allocation11_spill] sm:$0xff] }
 0x221   :  { %7735 = vmatprep.subr.mxu0 %v8690_v4  ;;  %7781 = vmatmul.mubr.f32.gmra.mxu1 %v977_v31  ;;  %v1640_v31 = vadd.s32 8, %v10004_v0 }
 0x222   :  { %7825 = vmatprep.subr.mxu1 %v8477_v15  ;;  %7736 = vmatpush3.msra.mxu0 %v8690_v4 }
 0x223   :  { %7826 = vmatpush3.msra.mxu1 %v8477_v15  ;;  %7853 = vmatprep.mubr.f32.mxu1 %v8768_v3  ;;  %v9999_v15 = vld [vmem:[#allocation12_spill] sm:$0xff] }
 0x224   :  { %7737 = vmatprep.subr.mxu0 %v8702_v20  ;;  %7827 = vmatprep.subr.mxu1 %v8488_v21 }
 0x225   :  { %7738 = vmatpush3.msra.mxu0 %v8702_v20  ;;  %7828 = vmatpush3.msra.mxu1 %v8488_v21  ;;  %v10000_v21 = vld [vmem:[#allocation13_spill] sm:$0xff] }
 0x226   :  { %7740 = vmatmul.mubr.f32.vlgmr.msra.gmra.mxu0 %v8782_v34  ;;  %7783 = vmatprep.subr.mxu0 %v8523_v40 }
 0x227   :  { %7829 = vmatprep.subr.mxu1 %v8490_v22  ;;  %7742 = vmatprep.mubr.f32.mxu0 %v8806_v5 }
 0x228   :  { %7784 = vmatpush3.msra.mxu0 %v8523_v40  ;;  %7830 = vmatpush3.msra.mxu1 %v8490_v22  ;;  %v10001_v22 = vld [vmem:[#allocation14_spill] sm:$0xff] }
 0x229   :  { %7785 = vmatprep.subr.mxu0 %v8526_v41  ;;  %7831 = vmatprep.subr.mxu1 %v8492_v23 }
 0x22a   :  { %7786 = vmatpush3.msra.mxu0 %v8526_v41  ;;  %7832 = vmatpush3.msra.mxu1 %v8492_v23  ;;  %v10002_v23 = vld [vmem:[#allocation15_spill] sm:$0xff]  ;;  %v8974_v41 = vsub.f32 %v1670_v37, %v8968_v39 }
 0x22b   :  { %7743 = vmatmul.mubr.f32.gmra.mxu0 %v8821_v2  ;;  %7787 = vmatprep.subr.mxu0 %v8529_v42 }
 0x22c   :  { %7833 = vmatprep.subr.mxu1 %v8510_v35  ;;  %7788 = vmatpush3.msra.mxu0 %v8529_v42 }
 0x22d   :  { %7815 = vmatprep.mubr.f32.mxu0 %v8768_v3  ;;  %7834 = vmatpush3.msra.mxu1 %v8510_v35 }
 0x22e   :  { %7789 = vmatprep.subr.mxu0 %v8535_v44  ;;  %7835 = vmatprep.subr.mxu1 %v8532_v43 }
 0x22f   :  { %7790 = vmatpush3.msra.mxu0 %v8535_v44  ;;  %7836 = vmatpush3.msra.mxu1 %v8532_v43  ;;  %v1804_v43 = vand.u32 4294901760, %v8974_v41 }
 0x230   :  { %7791 = vmatprep.subr.mxu0 %v8548_v49  ;;  %7837 = vmatprep.subr.mxu1 %v8571_v61 }
 0x231   :  { %7792 = vmatpush3.msra.mxu0 %v8548_v49  ;;  %7838 = vmatpush3.msra.mxu1 %v8571_v61  ;;  %v1805_v45 = vsub.f32 %v8974_v41, %v1804_v43 }
 0x232   :  { %7793 = vmatprep.subr.mxu0 %v8552_v51  ;;  %7839 = vmatprep.subr.mxu1 %v8606_v28 }
 0x233   :  { %7794 = vmatpush3.msra.mxu0 %v8552_v51  ;;  %7840 = vmatpush3.msra.mxu1 %v8606_v28  ;;  %v1806_v49 = vand.u32 4294901760, %v1805_v45 }
 0x234   :  { %7795 = vmatprep.subr.mxu0 %v9996_v53  ;;  %7841 = vmatprep.subr.mxu1 %v8616_v54 }
 0x235   :  { %7796 = vmatpush3.msra.mxu0 %v9996_v53  ;;  %7842 = vmatpush3.msra.mxu1 %v8616_v54 }
 0x236   :  { %7797 = vmatprep.subr.mxu0 %v9997_v13  ;;  %7843 = vmatprep.subr.mxu1 %v8630_v62 }
 0x237   :  { %7798 = vmatpush3.msra.mxu0 %v9997_v13  ;;  %7844 = vmatpush3.msra.mxu1 %v8630_v62 }
 0x238   :  { %7799 = vmatprep.subr.mxu0 %v9998_v14  ;;  %7845 = vmatprep.subr.mxu1 %v8645_v8 }
 0x239   :  { %7800 = vmatpush3.msra.mxu0 %v9998_v14  ;;  %7846 = vmatpush3.msra.mxu1 %v8645_v8 }
 0x23a   :  { %7801 = vmatprep.subr.mxu0 %v9999_v15  ;;  %7847 = vmatprep.subr.mxu1 %v8659_v18 }
 0x23b   :  { %7802 = vmatpush3.msra.mxu0 %v9999_v15  ;;  %7848 = vmatpush3.msra.mxu1 %v8659_v18 }
 0x23c   :  { %7803 = vmatprep.subr.mxu0 %v10000_v21  ;;  %7849 = vmatprep.subr.mxu1 %v8675_v17 }
 0x23d   :  { %7804 = vmatpush3.msra.mxu0 %v10000_v21  ;;  %7850 = vmatpush3.msra.mxu1 %v8675_v17  ;;  %v1671_v17 = vld [vmem:[%s9944_s4 + $0x8] sm:$0x1] }
 0x23e   :  { %7805 = vmatprep.subr.mxu0 %v10001_v22  ;;  %7851 = vmatprep.subr.mxu1 %v8692_v11  ;;  %v1687_v18 = vsel %vm1685_vm12, %v1671_v17, 0 }
 0x23f   :  { %7806 = vmatpush3.msra.mxu0 %v10001_v22  ;;  %7852 = vmatpush3.msra.mxu1 %v8692_v11  ;;  %v8960_v35 = vand.u32 4294901760, %v1687_v18 }
 0x240   :  { %7807 = vmatprep.subr.mxu0 %v10002_v23  ;;  %7854 = vmatmul.mubr.f32.vlgmr.msra.gmra.mxu1 %v8778_v47 }
 0x241   :  { %7808 = vmatpush3.msra.mxu0 %v10002_v23  ;;  %7856 = vmatprep.mubr.f32.mxu1 %v8799_v36  ;;  %v8966_v38 = vsub.f32 %v1687_v18, %v8960_v35 }
 0x242   :  { %7809 = vmatprep.subr.mxu0 %v8687_v56  ;;  %7866 = vmatprep.subr.mxu1 %v9995_v29 }
 0x243   :  { %7810 = vmatpush3.msra.mxu0 %v8687_v56  ;;  %v1797_v40 = vand.u32 4294901760, %v8966_v38 }
 0x244   :  { %7811 = vmatprep.subr.mxu0 %v8699_v60  ;;  %7857 = vmatmul.mubr.f32.gmra.mxu1 %v8814_v32 }
 0x245   :  { %7812 = vmatpush3.msra.mxu0 %v8699_v60  ;;  %v1798_v42 = vsub.f32 %v8966_v38, %v1797_v40  ;;  %7870 = vmatprep.mubr.msk.f32.mxu1 %vm8158_vm13, %v9995_v29 }
 0x246   :  { %7813 = vmatprep.subr.mxu0 %v8713_v12 }
 0x247   :  { %7814 = vmatpush3.msra.mxu0 %v8713_v12  ;;  %v1799_v44 = vand.u32 4294901760, %v1798_v42 }
 0x248   :  { %7816 = vmatmul.mubr.f32.vlgmr.msra.gmra.mxu0 %v8778_v47  ;;  %7859 = vmatprep.subr.mxu0 %v9995_v29  ;;  %v10003_v47 = vld [vmem:[#allocation8_spill] sm:$0xff] }
 0x249   :  { %7818 = vmatprep.mubr.f32.mxu0 %v8799_v36  ;;  %7860 = vmatpush3.msra.mxu0 %v8960_v35  ;;  %vm1642_vm14 = vcmp.lt.s32.totalorder %v10003_v47, 6  ;;  %vm1641_vm15 = vcmp.lt.s32.totalorder %v10003_v47, 3 }
 0x24a   :  { %7861 = vmatprep.subr.mxu0 %v9995_v29  ;;  %7867 = vmatpush3.msra.mxu1 %v1799_v44  ;;  %v1643_v26 = vsel %vm1642_vm14, 13, %v8159_v46  ;;  %v2149_v46 = vld [vmem:[%s9946_s6 + $0x8] sm:$0xff]  ;;  %vm7169_vm14 = vcmask 7168  }
 0x24b   :  { %7862 = vmatpush3.msra.mxu0 %v8968_v39  ;;  %7868 = vmatprep.subr.mxu1 %v9995_v29  ;;  %v1644_v53 = vsel %vm1641_vm15, 14, %v1643_v26  ;;  %vm7171_vm15 = vcmask 15360  }
 0x24c   :  { %7819 = vmatmul.mubr.f32.gmra.mxu0 %v8814_v32  ;;  %7873 = vmatprep.subr.mxu0 %v9995_v29  ;;  %vm1646_vm1 = vcmp.le.s32.totalorder %v1640_v31, %v1644_v53 }
 0x24d   :  { %7863 = vmatprep.mubr.msk.f32.mxu0 %vm8158_vm13, %v9995_v29  ;;  %7869 = vmatpush3.msra.mxu1 %v1806_v49 }
 0x24e   :  { %7880 = vmatprep.subr.mxu1 %v9995_v29 }
 0x2b9   :  { %v7703_v51 = vpop.f32.mrf.mxu1 }
 0x2bb   :  { %v1132_v57 = vpop.f32.mrf.mxu1 }
 0x2c1   :  { %v7665_v60 = vpop.f32.mrf.mxu0 }
 0x2c2   :  { %v962_v25 = vadd.f32 %v7665_v60, %v7213_v58 }
 0x2c3   :  { %v951_v1 = vpop.f32.mrf.mxu0 }
 0x2c4   :  { %v952_v11 = vadd.f32 %v7213_v58, %v951_v1  ;;  %v1139_v12 = vadd.f32 %v7703_v51, %v962_v25 }
 0x2c6   :  { %v7706_v61 = vpop.f32.mrf.mxu1  ;;  %v1133_v63 = vadd.f32 %v1132_v57, %v952_v11 }
 0x2c8   :  { %v1144_v28 = vpop.f32.mrf.mxu1 }
 0x2d0   :  { %v7668_v52 = vpop.f32.mrf.mxu0 }
 0x2d1   :  { %v982_v20 = vadd.f32 %v7668_v52, %v7213_v58 }
 0x2d2   :  { %v971_v56 = vpop.f32.mrf.mxu0 }
 0x2d3   :  { %v972_v48 = vadd.f32 %v7213_v58, %v971_v56  ;;  %v1151_v19 = vadd.f32 %v7706_v61, %v982_v20 }
 0x2d5   :  { %v1145_v32 = vadd.f32 %v1144_v28, %v972_v48 }
 0x2dc   :  { %v7779_v54 = vpop.f32.mrf.mxu1 }
 0x2de   :  { %v1364_v62 = vpop.f32.mrf.mxu1 }
 0x2e1   :  { %v7782_v6 = vpop.f32.mrf.mxu1 }
 0x2e3   :  { %v1380_v3 = vpop.f32.mrf.mxu1 }
 0x2e6   :  { %v7741_v8 = vpop.f32.mrf.mxu0 }
 0x2e7   :  { %v1262_v34 = vadd.f32 %v7741_v8, %v1139_v12 }
 0x2e8   :  { %v1254_v4 = vpop.f32.mrf.mxu0 }
 0x2e9   :  { %v1255_v36 = vadd.f32 %v1254_v4, %v1133_v63  ;;  %v1373_v50 = vadd.f32 %v7779_v54, %v1262_v34 }
 0x2eb   :  { %v7744_v27 = vpop.f32.mrf.mxu0  ;;  %v1365_v13 = vadd.f32 %v1364_v62, %v1255_v36 }
 0x2ec   :  { %v1276_v24 = vadd.f32 %v7744_v27, %v1151_v19 }
 0x2ed   :  { %v1268_v5 = vpop.f32.mrf.mxu0 }
 0x2ee   :  { %v1269_v9 = vadd.f32 %v1268_v5, %v1145_v32  ;;  %v1389_v22 = vadd.f32 %v7782_v6, %v1276_v24  ;;  %v2148_v32 = vld [vmem:[%s9946_s6] sm:$0xff] }
 0x2ef   :  { %v9031_v53 = vand.u32 4294901760, %v2148_v32 }
 0x2f0   :  { %v1381_v44 = vadd.f32 %v1380_v3, %v1269_v9  ;;  %v2151_v3 = vld [vmem:[%s9946_s6 + $0x18] sm:$0xff] }
 0x2f1   :  { %v9006_v63 = vand.u32 4294901760, %v2151_v3 }
 0x2f3   :  { %v9017_v24 = vsub.f32 %v2151_v3, %v9006_v63 }
 0x300   :  { %v7855_v59 = vpop.f32.mrf.mxu1 }
 0x302   :  { %v1612_v2 = vpop.f32.mrf.mxu1 }
 0x304   :  { %v7858_v23 = vpop.f32.mrf.mxu1 }
 0x306   :  { %v1624_v61 = vpop.f32.mrf.mxu1 }
 0x308   :  { %v7817_v30 = vpop.f32.mrf.mxu0 }
 0x309   :  { %v1514_v33 = vadd.f32 %v7817_v30, %v1373_v50  ;;  %v9022_v30 = vand.u32 4294901760, %v2149_v46 }
 0x30a   :  { %v1507_v14 = vpop.f32.mrf.mxu0 }
 0x30b   :  { %v1619_v15 = vadd.f32 %v7855_v59, %v1514_v33  ;;  %v1508_v21 = vadd.f32 %v1507_v14, %v1365_v13  ;;  %v2150_v59 = vld [vmem:[%s9946_s6 + $0x10] sm:$0xff]  ;;  %v9029_v33 = vand.u32 4294901760, %v9017_v24  ;;  %s8161_s6 = smov [#allocation2]  }
 0x30c   :  { %v7820_v17 = vpop.f32.mrf.mxu0  ;;  %v9011_v5 = vand.u32 4294901760, %v2150_v59  ;;  %s7187_s23 = sshll.u32 %s8161_s6, 4  ;;  %s7188_s23 = int_to_ptr.vmem [resolvable:$true] %s7187_s23 }
 0x30d   :  { %v1635_v18 = vmax.f32 %v1619_v15, 0.0  ;;  %v1613_v37 = vadd.f32 %v1612_v2, %v1508_v21  ;;  %v1526_v42 = vadd.f32 %v7820_v17, %v1389_v22  ;;  %v9037_v15 = vsub.f32 %v2149_v46, %v9022_v30  ;;  %p8137_p1 = scmp.lt.s32.totalorder %s7188_s23, %s7188_s23 }
 0x30e   :  { %v1519_v45 = vpop.f32.mrf.mxu0  ;;  %v9025_v31 = vsub.f32 %v2150_v59, %v9011_v5  ;;  %v9047_v17 = vsub.f32 %v2148_v32, %v9031_v53  ;;  %v3281_v32 = vld [vmem:[%s9947_s7 + $0x38] sm:$0xff] }
 0x30f   :  { %v1648_v49 = vsel %vm1646_vm1, %v1635_v18, 0.0  ;;  %v1634_v51 = vmax.f32 %v1613_v37, 0.0  ;;  %v1631_v57 = vadd.f32 %v7858_v23, %v1526_v42  ;;  %v1520_v60 = vadd.f32 %v1519_v45, %v1381_v44 }
 0x310   :  { %v1653_v1 = vsel %vm1651_vm2, %v1648_v49, -inf  ;;  %v9040_v21 = vand.u32 4294901760, %v9025_v31  ;;  %v2304_v23 = vsub.f32 %v9017_v24, %v9029_v33  ;;  %v2159_v18 = vsel %vm826_vm10, %v8717_v10, 0 }
 0x311   :  { %v1652_v28 = vsel %vm1651_vm2, %v1634_v51, -inf  ;;  %v1637_v52 = vmax.f32 %v1631_v57, 0.0  ;;  %v1625_v54 = vadd.f32 %v1624_v61, %v1520_v60  ;;  %v9056_v42 = vand.u32 4294901760, %v9037_v15 }
 0x312   :  { %v1654_v56 = vmax.f32 %v1652_v28, %v1653_v1  ;;  %v2311_v44 = vsub.f32 %v9025_v31, %v9040_v21  ;;  %v9062_v49 = vand.u32 4294901760, %v2304_v23  ;;  %v9064_v51 = vand.u32 4294901760, %v2159_v18 }
 0x313   :  { %v1650_v58 = vsel %vm1646_vm1, %v1637_v52, 0.0  ;;  %v1636_v62 = vmax.f32 %v1625_v54, 0.0  ;;  %v9067_v10 = vand.u32 4294901760, %v9047_v17  ;;  %v2318_v60 = vsub.f32 %v9037_v15, %v9056_v42 }
 0x314   :  { %v1655_v8 = vrot.slane %v1654_v56, 4  ;;  %v1662_v25 = vsel %vm1651_vm2, %v1650_v58, -inf  ;;  %v9076_v61 = vand.u32 4294901760, %v2311_v44  ;;  %v9084_v28 = vsub.f32 %v2159_v18, %v9064_v51  ;;  %v3275_v44 = vld [vmem:[%s9947_s7 + $0x8] sm:$0xff] }
 0x315   :  { %v1661_v6 = vsel %vm1651_vm2, %v1636_v62, -inf  ;;  %v2325_v1 = vsub.f32 %v9047_v17, %v9067_v10  ;;  %v2163_v52 = vsel %vm826_vm10, %v8726_v16, 0  ;;  %v2165_v58 = vsel %vm826_vm10, %v8740_v55, 0 }
 0x316   :  { %v1656_v4 = vmax.f32 %v1654_v56, %v1655_v8  ;;  %v1663_v11 = vmax.f32 %v1661_v6, %v1662_v25  ;;  %v2238_v56 = vand.u32 4294901760, %v9084_v28  ;;  %v9106_v16 = vand.u32 4294901760, %v2163_v52 }
 0x317   :  { %v9100_v54 = vand.u32 4294901760, %v2325_v1  ;;  %v9123_v55 = vand.u32 4294901760, %v2165_v58 }
 0x318   :  { %v1657_v20 = vrot.slane %v1656_v4, 2  ;;  %v1664_v12 = vrot.slane %v1663_v11, 4  ;;  %v2239_v8 = vsub.f32 %v9084_v28, %v2238_v56 }
 0x319   :  { %v2267_v25 = vsub.f32 %v2165_v58, %v9123_v55 }
 0x31a   :  { %v1658_v27 = vmax.f32 %v1656_v4, %v1657_v20  ;;  %v1665_v48 = vmax.f32 %v1663_v11, %v1664_v12 }
 0x31b   :  { %v2268_v11 = vand.u32 4294901760, %v2267_v25 }
 0x31c   :  { %v1666_v34 = vrot.slane %v1665_v48, 2  ;;  %v1659_v36 = vrot.slane %v1658_v27, 1 }
 0x31d   :  { %v2269_v3 = vsub.f32 %v2267_v25, %v2268_v11 }
 0x31e   :  { %v1667_v19 = vmax.f32 %v1665_v48, %v1666_v34  ;;  %v1660_v50 = vmax.f32 %v1658_v27, %v1659_v36  ;;  %v2781_v48 = vld [vmem:[%s9950_s10] sm:$0x1] }
 0x31f   :  { %v2270_v27 = vand.u32 4294901760, %v2269_v3  ;;  %v2783_v34 = vsel %vm826_vm10, %v2781_v48, 0  ;;  %v7214_v3 = vld [vmem:[%s9945_s5] ss:$0 sm:$0xff] }
 0x320   :  { %v1668_v26 = vrot.slane %v1667_v19, 1  ;;  %v9211_v59 = vand.u32 4294901760, %v2783_v34 }
 0x322   :  { %v1669_v2 = vmax.f32 %v1667_v19, %v1668_v26  ;;  %v2855_v36 = vsub.f32 %v2783_v34, %v9211_v59 }
 0x324   :  { %v1682_v9 = vsel %vm1681_vm3, %v1669_v2, %v1660_v50  ;;  %v2856_v19 = vand.u32 4294901760, %v2855_v36  ;;  %v3280_v50 = vld [vmem:[%s9947_s7 + $0x30] sm:$0xff]  ;;  %v3279_v2 = vld [vmem:[%s9947_s7 + $0x28] sm:$0xff] }
 0x325   :  { %v1683_v13 = vsel %vm1651_vm2, %v1682_v9, 0  ;;  %v3278_v9 = vld [vmem:[%s9947_s7 + $0x20] sm:$0xff]  ;;  %vm7152_vm2 = vcmask 1042432  }
 0x326   :  { %v9034_v14 = vand.u32 4294901760, %v1683_v13  ;;  %v2857_v46 = vsub.f32 %v2855_v36, %v2856_v19 }
 0x328   :  { %7871 = vmatmul.mubr.f32.vlgmr.msra.gmra.mxu1 %v9034_v14  ;;  %v1757_v22 = vsub.f32 %v1683_v13, %v9034_v14  ;;  %v2858_v26 = vand.u32 4294901760, %v2857_v46 }
 0x329   :  { %7881 = vmatpush3.msra.mxu1 %v8960_v35  ;;  %7884 = vmatprep.mubr.msk.f32.mxu1 %vm8158_vm13, %v9995_v29 }
 0x32a   :  { %7882 = vmatprep.subr.mxu1 %v9995_v29  ;;  %v1758_v37 = vand.u32 4294901760, %v1757_v22 }
 0x32b   :  { %7883 = vmatpush3.msra.mxu1 %v8968_v39 }
 0x32c   :  { %7894 = vmatprep.subr.mxu1 %v9995_v29  ;;  %v1759_v45 = vsub.f32 %v1757_v22, %v1758_v37  ;;  %7885 = vmatmul.mubr.f32.vlgmr.msra.gmra.mxu1 %v1758_v37 }
 0x32d   :  { %7895 = vmatpush3.msra.mxu1 %v8960_v35  ;;  %7898 = vmatprep.mubr.msk.f32.mxu1 %vm8158_vm13, %v9995_v29  ;;  %v2161_v35 = vsel %vm826_vm10, %v8707_v7, 0 }
 0x32e   :  { %v1760_v57 = vand.u32 4294901760, %v1759_v45  ;;  %7896 = vmatprep.subr.mxu1 %v9995_v29  ;;  %v9096_v7 = vand.u32 4294901760, %v2161_v35 }
 0x32f   :  { %7897 = vmatpush3.msra.mxu1 %v8968_v39  ;;  %v9090_v39 = vand.u32 4294901760, %v2318_v60 }
 0x330   :  { %7915 = vmatprep.subr.mxu1 %v9062_v49  ;;  %7864 = vmatmul.mubr.f32.vlgmr.msra.gmra.mxu0 %v1760_v57  ;;  %v9115_v62 = vsub.f32 %v2161_v35, %v9096_v7  ;;  %v3274_v57 = vld [vmem:[%s9947_s7] sm:$0xff] }
 0x331   :  { %7874 = vmatpush3.msra.mxu0 %v8966_v38  ;;  %7899 = vmatmul.mubr.f32.vlgmr.msra.gmra.mxu1 %v9034_v14  ;;  %v2257_v38 = vsub.f32 %v2163_v52, %v9106_v16  ;;  %v9322_v1 = vand.u32 4294901760, %v3274_v57 }
 0x332   :  { %7916 = vmatpush3.msra.mxu1 %v9062_v49  ;;  %7875 = vmatprep.subr.mxu0 %v9995_v29 }
 0x333   :  { %7917 = vmatprep.subr.mxu1 %v9076_v61  ;;  %7923 = vmatprep.mubr.f32.mxu1 %v9064_v51 }
 0x334   :  { %7876 = vmatpush3.msra.mxu0 %v8974_v41  ;;  %7918 = vmatpush3.msra.mxu1 %v9076_v61  ;;  %v2240_v41 = vand.u32 4294901760, %v2239_v8 }
 0x335   :  { %7877 = vmatprep.mubr.msk.f32.mxu0 %vm8158_vm13, %v9995_v29  ;;  %7887 = vmatprep.subr.mxu0 %v9995_v29 }
 0x336   :  { %7919 = vmatprep.subr.mxu1 %v9090_v39  ;;  %7878 = vmatmul.mubr.f32.vlgmr.msra.gmra.mxu0 %v1757_v22 }
 0x337   :  { %7888 = vmatpush3.msra.mxu0 %v1797_v40  ;;  %7920 = vmatpush3.msra.mxu1 %v9090_v39  ;;  %v2248_v40 = vand.u32 4294901760, %v9115_v62 }
 0x338   :  { %7889 = vmatprep.subr.mxu0 %v9995_v29  ;;  %7921 = vmatprep.subr.mxu1 %v9100_v54 }
 0x339   :  { %7890 = vmatpush3.msra.mxu0 %v1804_v43  ;;  %7922 = vmatpush3.msra.mxu1 %v9100_v54  ;;  %v2258_v43 = vand.u32 4294901760, %v2257_v38  ;;  %v2249_v6 = vsub.f32 %v9115_v62, %v2248_v40 }
 0x33a   :  { %7891 = vmatprep.mubr.msk.f32.mxu0 %vm8158_vm13, %v9995_v29  ;;  %7901 = vmatprep.subr.mxu0 %v9006_v63 }
 0x33b   :  { %7924 = vmatmul.mubr.f32.vlgmr.msra.gmra.mxu1 %v9096_v7  ;;  %7943 = vmatprep.subr.mxu1 %v9006_v63  ;;  %v2259_v4 = vsub.f32 %v2257_v38, %v2258_v43  ;;  %v2250_v20 = vand.u32 4294901760, %v2249_v6 }
 0x33c   :  { %7892 = vmatmul.mubr.f32.vlgmr.msra.gmra.mxu0 %v9034_v14  ;;  %7926 = vmatprep.mubr.f32.mxu1 %v9106_v16  ;;  %v9264_v14 = vand.u32 4294901760, %v3278_v9 }
 0x33d   :  { %7902 = vmatpush3.msra.mxu0 %v9006_v63  ;;  %7944 = vmatpush3.msra.mxu1 %v9006_v63  ;;  %v2260_v12 = vand.u32 4294901760, %v2259_v4 }
 0x33e   :  { %7903 = vmatprep.subr.mxu0 %v9011_v5  ;;  %7909 = vmatprep.mubr.f32.mxu0 %v2240_v41  ;;  %v9288_v18 = vsub.f32 %v3278_v9, %v9264_v14 }
 0x33f   :  { %7945 = vmatprep.subr.mxu1 %v9011_v5  ;;  %7904 = vmatpush3.msra.mxu0 %v9011_v5 }
 0x340   :  { %7946 = vmatpush3.msra.mxu1 %v9011_v5  ;;  %7905 = vmatprep.subr.mxu0 %v9022_v30  ;;  %v9317_v60 = vand.u32 4294901760, %v9288_v18 }
 0x341   :  { %7927 = vmatmul.mubr.f32.gmra.mxu1 %v9123_v55  ;;  %7947 = vmatprep.subr.mxu1 %v9022_v30 }
 0x342   :  { %7906 = vmatpush3.msra.mxu0 %v9022_v30  ;;  %7948 = vmatpush3.msra.mxu1 %v9022_v30 }
 0x343   :  { %7951 = vmatprep.mubr.f32.mxu1 %v2238_v56  ;;  %7907 = vmatprep.subr.mxu0 %v9031_v53  ;;  %v9345_v56 = vsub.f32 %v3274_v57, %v9322_v1  ;;  %v9401_v57 = vld [vmem:[%s9948_s8] sm:$0x1] }
 0x344   :  { %7949 = vmatprep.subr.mxu1 %v9031_v53  ;;  %7908 = vmatpush3.msra.mxu0 %v9031_v53 }
 0x345   :  { %7950 = vmatpush3.msra.mxu1 %v9031_v53  ;;  %7910 = vmatmul.mubr.f32.vlgmr.msra.gmra.mxu0 %v2250_v20 }
 0x346   :  { %7929 = vmatprep.subr.mxu0 %v9017_v24  ;;  %7952 = vmatmul.mubr.f32.vlgmr.msra.gmra.mxu1 %v2248_v40 }
 0x347   :  { %7971 = vmatprep.subr.mxu1 %v9006_v63  ;;  %7912 = vmatprep.mubr.f32.mxu0 %v2260_v12 }
 0x348   :  { %7930 = vmatpush3.msra.mxu0 %v9017_v24  ;;  %7954 = vmatprep.mubr.f32.mxu1 %v2258_v43 }
 0x349   :  { %7972 = vmatpush3.msra.mxu1 %v9006_v63  ;;  %7931 = vmatprep.subr.mxu0 %v9025_v31 }
 0x34a   :  { %7973 = vmatprep.subr.mxu1 %v9011_v5  ;;  %7932 = vmatpush3.msra.mxu0 %v9025_v31 }
 0x34b   :  { %7974 = vmatpush3.msra.mxu1 %v9011_v5  ;;  %7913 = vmatmul.mubr.f32.gmra.mxu0 %v2270_v27 }
 0x34c   :  { %7933 = vmatprep.subr.mxu0 %v9037_v15  ;;  %7955 = vmatmul.mubr.f32.gmra.mxu1 %v2268_v11 }
 0x34d   :  { %7975 = vmatprep.subr.mxu1 %v9022_v30  ;;  %7934 = vmatpush3.msra.mxu0 %v9037_v15 }
 0x34e   :  { %7937 = vmatprep.mubr.f32.mxu0 %v9084_v28  ;;  %7976 = vmatpush3.msra.mxu1 %v9022_v30 }
 0x34f   :  { %7979 = vmatprep.mubr.f32.mxu1 %v9064_v51  ;;  %7935 = vmatprep.subr.mxu0 %v9047_v17 }
 0x350   :  { %7977 = vmatprep.subr.mxu1 %v9031_v53  ;;  %7936 = vmatpush3.msra.mxu0 %v9047_v17 }
 0x351   :  { %7978 = vmatpush3.msra.mxu1 %v9031_v53  ;;  %7938 = vmatmul.mubr.f32.vlgmr.msra.gmra.mxu0 %v9115_v62 }
 0x352   :  { %7957 = vmatprep.subr.mxu0 %v9029_v33  ;;  %7980 = vmatmul.mubr.f32.vlgmr.msra.gmra.mxu1 %v9096_v7 }
 0x353   :  { %7940 = vmatprep.mubr.f32.mxu0 %v2257_v38  ;;  %7958 = vmatpush3.msra.mxu0 %v9029_v33 }
 0x354   :  { %7982 = vmatprep.mubr.f32.mxu1 %v9106_v16  ;;  %7959 = vmatprep.subr.mxu0 %v9040_v21 }
 0x355   :  { %7960 = vmatpush3.msra.mxu0 %v9040_v21  ;;  %7996 = vmatprep.subr.mxu1 %v9995_v29 }
 0x356   :  { %7941 = vmatmul.mubr.f32.gmra.mxu0 %v2267_v25  ;;  %7961 = vmatprep.subr.mxu0 %v9056_v42 }
 0x357   :  { %7983 = vmatmul.mubr.f32.gmra.mxu1 %v9123_v55  ;;  %7962 = vmatpush3.msra.mxu0 %v9056_v42 }
 0x358   :  { %7965 = vmatprep.mubr.f32.mxu0 %v9064_v51  ;;  %7963 = vmatprep.subr.mxu0 %v9067_v10  ;;  %v9306_v51 = vand.u32 4294901760, %v3275_v44 }
 0x359   :  { %7964 = vmatpush3.msra.mxu0 %v9067_v10  ;;  %7997 = vmatpush3.msra.mxu1 %v9062_v49 }
 0x35a   :  { %7966 = vmatmul.mubr.f32.vlgmr.msra.gmra.mxu0 %v9096_v7  ;;  %7985 = vmatprep.subr.mxu0 %v9995_v29  ;;  %v9334_v52 = vsub.f32 %v3275_v44, %v9306_v51 }
 0x35b   :  { %7968 = vmatprep.mubr.f32.mxu0 %v9106_v16  ;;  %7986 = vmatpush3.msra.mxu0 %v9006_v63 }
 0x35c   :  { %7998 = vmatprep.subr.mxu1 %v9995_v29  ;;  %7987 = vmatprep.subr.mxu0 %v9995_v29  ;;  %v9355_v62 = vand.u32 4294901760, %v9334_v52 }
 0x35d   :  { %7999 = vmatpush3.msra.mxu1 %v9076_v61  ;;  %7988 = vmatpush3.msra.mxu0 %v9011_v5 }
 0x35e   :  { %7969 = vmatmul.mubr.f32.gmra.mxu0 %v9123_v55  ;;  %8000 = vmatprep.subr.mxu1 %v9995_v29  ;;  %v3438_v40 = vsub.f32 %v9334_v52, %v9355_v62 }
 0x35f   :  { %7989 = vmatprep.subr.mxu0 %v9995_v29  ;;  %8001 = vmatpush3.msra.mxu1 %v9090_v39 }
 0x360   :  { %7990 = vmatpush3.msra.mxu0 %v9022_v30  ;;  %8002 = vmatprep.subr.mxu1 %v9995_v29  ;;  %v9379_v25 = vand.u32 4294901760, %v3438_v40 }
 0x361   :  { %7991 = vmatprep.subr.mxu0 %v9995_v29  ;;  %8003 = vmatpush3.msra.mxu1 %v9100_v54 }
 0x362   :  { %7992 = vmatpush3.msra.mxu0 %v9031_v53  ;;  %8004 = vmatprep.mubr.msk.f32.mxu1 %vm8158_vm13, %v9995_v29 }
 0x363   :  { %8018 = vmatprep.subr.mxu1 %v9995_v29  ;;  %7993 = vmatprep.mubr.msk.f32.mxu0 %vm8158_vm13, %v9995_v29 }
 0x364   :  { %8007 = vmatprep.subr.mxu0 %v9995_v29  ;;  %8005 = vmatmul.mubr.f32.vlgmr.msra.gmra.mxu1 %v9211_v59 }
 0x365   :  { %8019 = vmatpush3.msra.mxu1 %v9006_v63  ;;  %8026 = vmatprep.mubr.msk.f32.mxu1 %vm8158_vm13, %v9995_v29 }
 0x366   :  { %8020 = vmatprep.subr.mxu1 %v9995_v29  ;;  %7994 = vmatmul.mubr.f32.vlgmr.msra.gmra.mxu0 %v2858_v26 }
 0x367   :  { %8021 = vmatpush3.msra.mxu1 %v9011_v5  ;;  %8008 = vmatpush3.msra.mxu0 %v9017_v24  ;;  %v9238_v24 = vand.u32 4294901760, %v3281_v32 }
 0x368   :  { %8022 = vmatprep.subr.mxu1 %v9995_v29  ;;  %8015 = vmatprep.mubr.msk.f32.mxu0 %vm8158_vm13, %v9995_v29 }
 0x369   :  { %8023 = vmatpush3.msra.mxu1 %v9022_v30  ;;  %8009 = vmatprep.subr.mxu0 %v9995_v29 }
 0x36a   :  { %8024 = vmatprep.subr.mxu1 %v9995_v29  ;;  %8010 = vmatpush3.msra.mxu0 %v9025_v31  ;;  %v9255_v31 = vand.u32 4294901760, %v3279_v2 }
 0x36b   :  { %8025 = vmatpush3.msra.mxu1 %v9031_v53  ;;  %8011 = vmatprep.subr.mxu0 %v9995_v29 }
 0x36c   :  { %8040 = vmatprep.subr.mxu1 %v9995_v29  ;;  %8027 = vmatmul.mubr.f32.vlgmr.msra.gmra.mxu1 %v2856_v19  ;;  %v9275_v22 = vsub.f32 %v3279_v2, %v9255_v31 }
 0x36d   :  { %8041 = vmatpush3.msra.mxu1 %v9006_v63  ;;  %8012 = vmatpush3.msra.mxu0 %v9037_v15  ;;  %v9245_v63 = vand.u32 4294901760, %v3280_v50 }
 0x36e   :  { %8042 = vmatprep.subr.mxu1 %v9995_v29  ;;  %8013 = vmatprep.subr.mxu0 %v9995_v29  ;;  %v9301_v45 = vand.u32 4294901760, %v9275_v22 }
 0x36f   :  { %8043 = vmatpush3.msra.mxu1 %v9011_v5  ;;  %8014 = vmatpush3.msra.mxu0 %v9047_v17  ;;  %v9253_v5 = vsub.f32 %v3281_v32, %v9238_v24  ;;  %v9262_v13 = vsub.f32 %v3280_v50, %v9245_v63  ;;  %v3276_v17 = vld [vmem:[%s9947_s7 + $0x10] sm:$0xff] }
 0x370   :  { %8044 = vmatprep.subr.mxu1 %v9995_v29  ;;  %8029 = vmatprep.subr.mxu0 %v9995_v29  ;;  %v9290_v37 = vand.u32 4294901760, %v3276_v17  ;;  %v3414_v28 = vsub.f32 %v9275_v22, %v9301_v45 }
 0x371   :  { %8045 = vmatpush3.msra.mxu1 %v9022_v30  ;;  %10005 = vst [vmem:[#allocation9_spill] sm:$0xff] %v9253_v5  ;;  %8016 = vmatmul.mubr.f32.vlgmr.msra.gmra.mxu0 %v2855_v36  ;;  %v3277_v30 = vld [vmem:[%s9947_s7 + $0x18] sm:$0xff]  ;;  %v9272_v15 = vand.u32 4294901760, %v9253_v5 }
 0x372   :  { %8030 = vmatpush3.msra.mxu0 %v9029_v33  ;;  %8046 = vmatprep.subr.mxu1 %v9995_v29  ;;  %v9277_v23 = vand.u32 4294901760, %v3277_v30  ;;  %v9285_v33 = vand.u32 4294901760, %v9262_v13  ;;  %v9320_v61 = vsub.f32 %v3276_v17, %v9290_v37  ;;  %v9350_v16 = vand.u32 4294901760, %v3414_v28 }
 0x373   :  { %8031 = vmatprep.subr.mxu0 %v9995_v29  ;;  %8047 = vmatpush3.msra.mxu1 %v9031_v53  ;;  %v3402_v53 = vsub.f32 %v9253_v5, %v9272_v15 }
 0x374   :  { %8032 = vmatpush3.msra.mxu0 %v9040_v21  ;;  %8037 = vmatprep.mubr.msk.f32.mxu0 %vm8158_vm13, %v9995_v29  ;;  %v9304_v49 = vsub.f32 %v3277_v30, %v9277_v23  ;;  %v3408_v21 = vsub.f32 %v9262_v13, %v9285_v33  ;;  %v9342_v54 = vand.u32 4294901760, %v9320_v61 }
 0x375   :  { %8033 = vmatprep.subr.mxu0 %v9995_v29  ;;  %8048 = vmatprep.mubr.msk.f32.mxu1 %vm8158_vm13, %v9995_v29  ;;  %v9325_v35 = vand.u32 4294901760, %v3402_v53 }
 0x376   :  { %8034 = vmatpush3.msra.mxu0 %v9056_v42  ;;  %8049 = vmatmul.mubr.f32.vlgmr.msra.gmra.mxu1 %v9211_v59  ;;  %v9331_v39 = vand.u32 4294901760, %v9304_v49  ;;  %v9337_v7 = vand.u32 4294901760, %v3408_v21  ;;  %v3420_v42 = vsub.f32 %v9288_v18, %v9317_v60  ;;  %v3432_v55 = vsub.f32 %v9320_v61, %v9342_v54 }
 0x377   :  { %8035 = vmatprep.subr.mxu0 %v9995_v29  ;;  %3479 = vmatprep.mubr.f32.mxu1 %v9995_v29 }
 0x378   :  { %8036 = vmatpush3.msra.mxu0 %v9067_v10  ;;  %3404 = vmatprep.subr.mxu1 %v9325_v35  ;;  %v3426_v58 = vsub.f32 %v9304_v49, %v9331_v39  ;;  %v9359_v8 = vand.u32 4294901760, %v3420_v42  ;;  %v9364_v10 = vand.u32 4294901760, %v9345_v56  ;;  %v9373_v41 = vand.u32 4294901760, %v3432_v55 }
 0x379   :  { %8038 = vmatmul.mubr.f32.vlgmr.msra.gmra.mxu0 %v9211_v59  ;;  %3410 = vmatpush1.msra.mxu1 %v9337_v7 }
 0x37a   :  { %3416 = vmatprep.subr.mxu1 %v9350_v16  ;;  %v9367_v38 = vand.u32 4294901760, %v3426_v58  ;;  %3317 = vmatprep.subr.mxu0 %v9238_v24  ;;  %v3444_v43 = vsub.f32 %v9345_v56, %v9364_v10  ;;  %v10006_v58 = vld [vmem:[#allocation6_spill] sm:$0xff] }
 0x37b   :  { %3422 = vmatpush1.msra.mxu1 %v9359_v8  ;;  %3319 = vmatpush1.msra.mxu0 %v9245_v63  ;;  %v2157_v55 = vrot.slane %v9401_v57, %v10006_v58 }
 0x37c   :  { %3428 = vmatprep.subr.mxu1 %v9367_v38  ;;  %3321 = vmatprep.subr.mxu0 %v9255_v31  ;;  %v9383_v6 = vand.u32 4294901760, %v3444_v43 }
 0x37d   :  { %3434 = vmatpush1.msra.mxu1 %v9373_v41  ;;  %3323 = vmatpush1.msra.mxu0 %v9264_v14 }
 0x37e   :  { %3440 = vmatprep.subr.mxu1 %v9379_v25  ;;  %3325 = vmatprep.subr.mxu0 %v9277_v23 }
 0x37f   :  { %3446 = vmatpush1.msra.mxu1 %v9383_v6  ;;  %3327 = vmatpush1.msra.mxu0 %v9290_v37 }
 0x380   :  { %3599 = vmatprep.subr.mxu1 %v9238_v24  ;;  %3329 = vmatprep.subr.mxu0 %v9306_v51 }
 0x381   :  { %3331 = vmatpush1.msra.mxu0 %v9322_v1  ;;  %3364 = vmatprep.mubr.f32.mxu0 %v9995_v29 }
 0x382   :  { %3512 = vmatprep.subr.mxu0 %v9253_v5 }
 0x3e8   :  { %v1843_v4 = vpop.f32.mrf.mxu1 }
 0x3ea   :  { %v7872_v11 = vpop.f32.mrf.mxu1 }
 0x3ec   :  { %v1994_v20 = vpop.f32.mrf.mxu1 }
 0x3ee   :  { %v7886_v12 = vpop.f32.mrf.mxu1 }
 0x3f0   :  { %v1762_v27 = vpop.f32.mrf.mxu0 }
 0x3f1   :  { %v1763_v48 = vadd.f32 %v7214_v3, %v1762_v27  ;;  %v2144_v34 = vpop.f32.mrf.mxu1 }
 0x3f2   :  { %v7865_v59 = vpop.f32.mrf.mxu0 }
 0x3f3   :  { %v7900_v36 = vpop.f32.mrf.mxu1  ;;  %v1844_v19 = vadd.f32 %v1843_v4, %v1763_v48 }
 0x3f6   :  { %v1919_v46 = vpop.f32.mrf.mxu0 }
 0x3f7   :  { %v1920_v26 = vadd.f32 %v1919_v46, %v1844_v19 }
 0x3f8   :  { %v7879_v32 = vpop.f32.mrf.mxu0 }
 0x3f9   :  { %v1995_v50 = vadd.f32 %v1994_v20, %v1920_v26 }
 0x3fb   :  { %v7925_v2 = vpop.f32.mrf.mxu1 }
 0x3fc   :  { %v2071_v9 = vpop.f32.mrf.mxu0 }
 0x3fd   :  { %v2072_v30 = vadd.f32 %v2071_v9, %v1995_v50  ;;  %v2363_v17 = vpop.f32.mrf.mxu1 }
 0x3fe   :  { %v7893_v44 = vpop.f32.mrf.mxu0 }
 0x3ff   :  { %v2145_v53 = vadd.f32 %v2144_v34, %v2072_v30 }
 0x401   :  { %v3290_v21 = vsel %vm826_vm10, %v2145_v53, 0  ;;  %v7928_v28 = vpop.f32.mrf.mxu1  ;;  %3837 = vrot.lane.b32.xlu1 %v2145_v53, %s8155_s2 }
 0x402   :  { %v9405_v42 = vand.u32 4294901760, %v3290_v21 }
 0x403   :  { %v2375_v40 = vpop.f32.mrf.mxu1 }
 0x404   :  { %v3366_v43 = vsub.f32 %v3290_v21, %v9405_v42  ;;  %3481 = vmatmul.mubr.f32.vlgmr.msra.gmra.mxu1 %v9405_v42 }
 0x405   :  { %v7911_v4 = vpop.f32.mrf.mxu0  ;;  %3601 = vmatpush1.msra.mxu1 %v9245_v63  ;;  %3646 = vmatprep.mubr.f32.mxu1 %v9995_v29 }
 0x406   :  { %v2253_v11 = vadd.f32 %v7911_v4, %v2157_v55  ;;  %v7953_v20 = vpop.f32.mrf.mxu1  ;;  %3603 = vmatprep.subr.mxu1 %v9255_v31  ;;  %v3367_v12 = vand.u32 4294901760, %v3366_v43 }
 0x407   :  { %v2242_v3 = vpop.f32.mrf.mxu0  ;;  %3605 = vmatpush1.msra.mxu1 %v9264_v14 }
 0x408   :  { %v2243_v27 = vadd.f32 %v2242_v3, %v2157_v55  ;;  %3607 = vmatprep.subr.mxu1 %v9277_v23  ;;  %v2370_v48 = vadd.f32 %v7925_v2, %v2253_v11  ;;  %v3368_v34 = vsub.f32 %v3366_v43, %v3367_v12  ;;  %v2559_v59 = vpop.f32.mrf.mxu1 }
 0x409   :  { %3609 = vmatpush1.msra.mxu1 %v9290_v37 }
 0x40a   :  { %3611 = vmatprep.subr.mxu1 %v9306_v51  ;;  %v3369_v36 = vand.u32 4294901760, %v3368_v34  ;;  %v2364_v19 = vadd.f32 %v2363_v17, %v2243_v27 }
 0x40b   :  { %v7914_v46 = vpop.f32.mrf.mxu0  ;;  %3613 = vmatpush1.msra.mxu1 %v9322_v1 }
 0x40c   :  { %v2273_v26 = vadd.f32 %v7914_v46, %v2157_v55  ;;  %3650 = vmatmul.mubr.f32.vlgmr.msra.gmra.mxu1 %v3367_v12  ;;  %3775 = vmatprep.subr.mxu1 %v9238_v24  ;;  %v7956_v50 = vpop.f32.mrf.mxu1 }
 0x40d   :  { %v2262_v32 = vpop.f32.mrf.mxu0  ;;  %3370 = vmatmul.mubr.f32.vlgmr.msra.gmra.mxu0 %v3369_v36  ;;  %3777 = vmatpush1.msra.mxu1 %v9245_v63 }
 0x40e   :  { %v2263_v2 = vadd.f32 %v2262_v32, %v2157_v55  ;;  %3515 = vmatpush1.msra.mxu0 %v9262_v13  ;;  %3779 = vmatprep.subr.mxu1 %v9255_v31  ;;  %v2382_v9 = vadd.f32 %v7928_v28, %v2273_v26  ;;  %v2575_v44 = vpop.f32.mrf.mxu1 }
 0x40f   :  { %3518 = vmatprep.subr.mxu0 %v9275_v22  ;;  %3781 = vmatpush1.msra.mxu1 %v9264_v14 }
 0x410   :  { %3521 = vmatpush1.msra.mxu0 %v9288_v18  ;;  %3783 = vmatprep.subr.mxu1 %v9277_v23  ;;  %v2376_v30 = vadd.f32 %v2375_v40, %v2263_v2 }
 0x411   :  { %v7939_v17 = vpop.f32.mrf.mxu0  ;;  %3524 = vmatprep.subr.mxu0 %v9304_v49  ;;  %3785 = vmatpush1.msra.mxu1 %v9290_v37 }
 0x412   :  { %v2469_v53 = vadd.f32 %v7939_v17, %v2370_v48  ;;  %3527 = vmatpush1.msra.mxu0 %v9320_v61  ;;  %3787 = vmatprep.subr.mxu1 %v9306_v51  ;;  %v7981_v40 = vpop.f32.mrf.mxu1 }
 0x413   :  { %v2461_v21 = vpop.f32.mrf.mxu0  ;;  %3530 = vmatprep.subr.mxu0 %v9334_v52  ;;  %3566 = vmatprep.mubr.f32.mxu0 %v9995_v29 }
 0x414   :  { %v2462_v28 = vadd.f32 %v2461_v21, %v2364_v19  ;;  %3533 = vmatpush1.msra.mxu0 %v9345_v56  ;;  %3789 = vmatpush1.msra.mxu1 %v9322_v1  ;;  %v2568_v55 = vadd.f32 %v7953_v20, %v2469_v53  ;;  %v2759_v27 = vpop.f32.mrf.mxu1 }
 0x415   :  { %3822 = vmatprep.mubr.f32.mxu1 %v9995_v29  ;;  %3569 = vmatmul.mubr.f32.vlgmr.msra.gmra.mxu0 %v3366_v43 }
 0x416   :  { %v7942_v4 = vpop.f32.mrf.mxu0  ;;  %3682 = vmatprep.subr.mxu0 %v9272_v15  ;;  %3824 = vmatmul.mubr.f32.vlgmr.msra.gmra.mxu1 %v9405_v42  ;;  %v2560_v11 = vadd.f32 %v2559_v59, %v2462_v28 }
 0x417   :  { %v2483_v12 = vadd.f32 %v7942_v4, %v2382_v9  ;;  %3686 = vmatpush1.msra.mxu0 %v9285_v33  ;;  %3743 = vmatprep.mubr.f32.mxu0 %v9995_v29  ;;  %v7984_v26 = vpop.f32.mrf.mxu1 }
 0x418   :  { %v2475_v3 = vpop.f32.mrf.mxu0  ;;  %3690 = vmatprep.subr.mxu0 %v9301_v45  ;;  %3975 = vmatprep.subr.mxu1 %v9325_v35 }
 0x419   :  { %v2476_v20 = vadd.f32 %v2475_v3, %v2376_v30  ;;  %3694 = vmatpush1.msra.mxu0 %v9317_v60  ;;  %v2584_v43 = vadd.f32 %v7956_v50, %v2483_v12  ;;  %3981 = vmatpush1.msra.mxu1 %v9337_v7 }
 0x41a   :  { %v7967_v48 = vpop.f32.mrf.mxu0  ;;  %3698 = vmatprep.subr.mxu0 %v9331_v39  ;;  %3987 = vmatprep.subr.mxu1 %v9350_v16 }
 0x41b   :  { %v2673_v34 = vadd.f32 %v7967_v48, %v2568_v55  ;;  %3702 = vmatpush1.msra.mxu0 %v9342_v54  ;;  %v2576_v59 = vadd.f32 %v2575_v44, %v2476_v20  ;;  %3993 = vmatpush1.msra.mxu1 %v9359_v8 }
 0x41c   :  { %v2666_v36 = vpop.f32.mrf.mxu0  ;;  %3706 = vmatprep.subr.mxu0 %v9355_v62  ;;  %3999 = vmatprep.subr.mxu1 %v9367_v38 }
 0x41d   :  { %v9450_v19 = vadd.f32 %v7981_v40, %v2673_v34  ;;  %v2667_v46 = vadd.f32 %v2666_v36, %v2560_v11  ;;  %3710 = vmatpush1.msra.mxu0 %v9364_v10  ;;  %4005 = vmatpush1.msra.mxu1 %v9373_v41 }
 0x41e   :  { %v7970_v32 = vpop.f32.mrf.mxu0  ;;  %3745 = vmatmul.mubr.f32.vlgmr.msra.gmra.mxu0 %v9405_v42  ;;  %4011 = vmatprep.subr.mxu1 %v9379_v25  ;;  %v2771_v42 = vpop.f32.mrf.mxu1 }
 0x41f   :  { %v9456_v50 = vadd.f32 %v2759_v27, %v2667_v46  ;;  %v2685_v2 = vadd.f32 %v7970_v32, %v2584_v43  ;;  %4017 = vmatpush1.msra.mxu1 %v9383_v6  ;;  %3887 = vmatprep.subr.mxu0 %v9238_v24 }
 0x420   :  { %v2678_v9 = vpop.f32.mrf.mxu0  ;;  %4050 = vmatprep.mubr.f32.mxu1 %v9995_v29  ;;  %4172 = vmatprep.subr.mxu1 %v9238_v24 }
 0x421   :  { %v9462_v30 = vadd.f32 %v7984_v26, %v2685_v2  ;;  %v2679_v17 = vadd.f32 %v2678_v9, %v2576_v59  ;;  %3889 = vmatpush1.msra.mxu0 %v9245_v63  ;;  %3934 = vmatprep.mubr.f32.mxu0 %v9995_v29 }
 0x422   :  { %3891 = vmatprep.subr.mxu0 %v9255_v31 }
 0x423   :  { %10007 = vst [vmem:[#allocation10_spill] sm:$0xff] %v9462_v30  ;;  %v9467_v44 = vadd.f32 %v2771_v42, %v2679_v17  ;;  %3893 = vmatpush1.msra.mxu0 %v9264_v14 }
 0x424   :  { %3895 = vmatprep.subr.mxu0 %v9277_v23  ;;  %v2951_v53 = vpop.f32.mrf.mxu1 }
 0x425   :  { %10008 = vst [vmem:[#allocation11_spill] sm:$0xff] %v9467_v44  ;;  %3897 = vmatpush1.msra.mxu0 %v9290_v37 }
 0x426   :  { %3899 = vmatprep.subr.mxu0 %v9306_v51  ;;  %v8006_v21 = vpop.f32.mrf.mxu1  ;;  %v2860_v28 = vpop.f32.mrf.mxu0 }
 0x427   :  { %3901 = vmatpush1.msra.mxu0 %v9322_v1  ;;  %v2861_v55 = vadd.f32 %v2860_v28, %v9401_v57 }
 0x428   :  { %4084 = vmatprep.subr.mxu0 %v9253_v5  ;;  %v7995_v40 = vpop.f32.mrf.mxu0 }
 0x429   :  { %v2952_v11 = vadd.f32 %v2951_v53, %v2861_v55 }
 0x42c   :  { %v3108_v4 = vpop.f32.mrf.mxu1 }
 0x42e   :  { %v8028_v12 = vpop.f32.mrf.mxu1 }
 0x431   :  { %v3031_v3 = vpop.f32.mrf.mxu0 }
 0x432   :  { %v3032_v20 = vadd.f32 %v3031_v3, %v2952_v11 }
 0x433   :  { %v8017_v43 = vpop.f32.mrf.mxu0 }
 0x434   :  { %v3109_v27 = vadd.f32 %v3108_v4, %v3032_v20 }
 0x436   :  { %v3266_v48 = vpop.f32.mrf.mxu1 }
 0x438   :  { %v8050_v34 = vpop.f32.mrf.mxu1 }
 0x439   :  { %v3191_v59 = vpop.f32.mrf.mxu0 }
 0x43a   :  { %v3192_v36 = vadd.f32 %v3191_v59, %v3109_v27 }
 0x43b   :  { %v8039_v46 = vpop.f32.mrf.mxu0 }
 0x43c   :  { %v3267_v26 = vadd.f32 %v3266_v48, %v3192_v36 }
 0x43e   :  { %v3273_v43 = vrot.slane %v3267_v26, %v10006_v58 }
 0x4c4   :  { %v3482_v32 = vpop.f32.mrf.mxu1 }
 0x4c6   :  { %v3484_v2 = vpop.f32.mrf.mxu1 }
 0x4cc   :  { %v3651_v9 = vpop.f32.mrf.mxu1 }
 0x4cd   :  { %v3371_v17 = vpop.f32.mrf.mxu0 }
 0x4ce   :  { %v3653_v42 = vpop.f32.mrf.mxu1  ;;  %v3483_v53 = vadd.f32 %v3482_v32, %v3371_v17 }
 0x4cf   :  { %v3373_v57 = vpop.f32.mrf.mxu0 }
 0x4d5   :  { %v3570_v21 = vpop.f32.mrf.mxu0 }
 0x4d6   :  { %v3825_v28 = vpop.f32.mrf.mxu1  ;;  %v3571_v11 = vadd.f32 %v3570_v21, %v3483_v53 }
 0x4d7   :  { %v3572_v55 = vpop.f32.mrf.mxu0 }
 0x4d8   :  { %v3827_v40 = vpop.f32.mrf.mxu1  ;;  %v3652_v12 = vadd.f32 %v3651_v9, %v3571_v11  ;;  %v3838_v9 = vpop.permute.xlu1 %3837 }
 0x4de   :  { %v3746_v4 = vpop.f32.mrf.mxu0 }
 0x4df   :  { %v3747_v3 = vadd.f32 %v3746_v4, %v3652_v12 }
 0x4e0   :  { %v3748_v20 = vpop.f32.mrf.mxu0 }
 0x4e1   :  { %v3826_v27 = vadd.f32 %v3825_v28, %v3747_v3  ;;  %v8160_v28 = vmov 1966171168  }
 0x4e2   :  { %v4431_v53 = vunpack.c.l.s4 %v8160_v28 }
 0x4e3   :  { %v3829_v48 = vadd.f32 %v3826_v27, %v3273_v43 }
 0x4e4   :  { %v4432_v55 = vunpack.c.0.s8 %v4431_v53 }
 0x4e5   :  { %8059 = vtanh.f32 %v3829_v48  ;;  %v7216_v59 = vmul.f32 -1.442695, %v3829_v48 }
 0x4e6   :  { %v9484_v40 = vsub.s32 %v4432_v55, %v10004_v0 }
 0x4e7   :  { %8061 = vpow2.f32 %v7216_v59 }
 0x4f2   :  { %v8060_v34 = vpop.eup %8059 }
 0x4f3   :  { %3842 = vrot.lane.b32.xlu0 %v8060_v34, %s8156_s29 }
 0x4f4   :  { %v8062_v36 = vpop.eup %8061 }
 0x4f5   :  { %v3833_v46 = vadd.f32 1.0, %v8062_v36 }
 0x4f7   :  { %8063 = vrcp.f32 %v3833_v46 }
 0x504   :  { %v8064_v32 = vpop.eup %8063 }
 0x505   :  { %v3840_v42 = vmul.f32 %v8064_v32, %v3838_v9 }
 0x565   :  { %v3843_v2 = vpop.permute.xlu0 %3842 }
 0x566   :  { %v3845_v17 = vmul.f32 %v8064_v32, %v3843_v2 }
 0x568   :  { %3847 = vrot.lane.b32.xlu0 %v3845_v17, %s8155_s2 }
 0x5da   :  { %v3848_v57 = vpop.permute.xlu0 %3847 }
 0x5db   :  { %v9479_v26 = vadd.f32 %v3848_v57, %v3840_v42 }
 0x5dd   :  { %8065 = vtanh.f32 %v9479_v26 }
 0x5ea   :  { %v8066_v21 = vpop.eup %8065 }
 0x5eb   :  { %3853 = vrot.lane.b32.xlu1 %v8066_v21, %s8156_s29 }
 0x65d   :  { %v3854_v11 = vpop.permute.xlu1 %3853 }
 0x65e   :  { %v3856_v12 = vmul.f32 %v8064_v32, %v3854_v11 }
 0x660   :  { %v9487_v4 = vrot.slane %v3856_v12, %v9484_v40  ;;  %3858 = vrot.lane.b32.xlu0 %v3856_v12, %s8155_s2 }
 0x662   :  { %v4437_v3 = vcombine.high %v9487_v4, %v9487_v4 }
 0x664   :  { %v9493_v20 = vrot.slane %v4437_v3, %v9484_v40 }
 0x6d2   :  { %v3859_v43 = vpop.permute.xlu0 %3858 }
 0x6d3   :  { %v3860_v27 = vsel %vm826_vm10, %v3859_v43, 0 }
 0x6d4   :  { %v3935_v48 = vand.u32 4294901760, %v3860_v27 }
 0x6d6   :  { %v3936_v34 = vsub.f32 %v3860_v27, %v3935_v48  ;;  %4052 = vmatmul.mubr.f32.vlgmr.msra.gmra.mxu1 %v3935_v48 }
 0x6d7   :  { %4174 = vmatpush1.msra.mxu1 %v9245_v63  ;;  %4219 = vmatprep.mubr.f32.mxu1 %v9995_v29 }
 0x6d8   :  { %v3937_v0 = vand.u32 4294901760, %v3936_v34  ;;  %4176 = vmatprep.subr.mxu1 %v9255_v31 }
 0x6d9   :  { %4178 = vmatpush1.msra.mxu1 %v9264_v14 }
 0x6da   :  { %v3938_v59 = vsub.f32 %v3936_v34, %v3937_v0  ;;  %4180 = vmatprep.subr.mxu1 %v9277_v23 }
 0x6db   :  { %4182 = vmatpush1.msra.mxu1 %v9290_v37 }
 0x6dc   :  { %v3939_v36 = vand.u32 4294901760, %v3938_v59  ;;  %4184 = vmatprep.subr.mxu1 %v9306_v51 }
 0x6dd   :  { %4186 = vmatpush1.msra.mxu1 %v9322_v1 }
 0x6de   :  { %4223 = vmatmul.mubr.f32.vlgmr.msra.gmra.mxu1 %v3937_v0  ;;  %4350 = vmatprep.subr.mxu1 %v9238_v24 }
 0x6df   :  { %3940 = vmatmul.mubr.f32.vlgmr.msra.gmra.mxu0 %v3939_v36  ;;  %4352 = vmatpush1.msra.mxu1 %v9245_v63 }
 0x6e0   :  { %4087 = vmatpush1.msra.mxu0 %v9262_v13  ;;  %4354 = vmatprep.subr.mxu1 %v9255_v31 }
 0x6e1   :  { %4090 = vmatprep.subr.mxu0 %v9275_v22  ;;  %4356 = vmatpush1.msra.mxu1 %v9264_v14 }
 0x6e2   :  { %4093 = vmatpush1.msra.mxu0 %v9288_v18  ;;  %4358 = vmatprep.subr.mxu1 %v9277_v23 }
 0x6e3   :  { %4096 = vmatprep.subr.mxu0 %v9304_v49  ;;  %4360 = vmatpush1.msra.mxu1 %v9290_v37 }
 0x6e4   :  { %4099 = vmatpush1.msra.mxu0 %v9320_v61  ;;  %4362 = vmatprep.subr.mxu1 %v9306_v51 }
 0x6e5   :  { %4102 = vmatprep.subr.mxu0 %v9334_v52  ;;  %4138 = vmatprep.mubr.f32.mxu0 %v9995_v29 }
 0x6e6   :  { %4105 = vmatpush1.msra.mxu0 %v9345_v56  ;;  %4364 = vmatpush1.msra.mxu1 %v9322_v1 }
 0x6e7   :  { %4397 = vmatprep.mubr.f32.mxu1 %v9995_v29  ;;  %4141 = vmatmul.mubr.f32.vlgmr.msra.gmra.mxu0 %v3936_v34 }
 0x6e8   :  { %4256 = vmatprep.subr.mxu0 %v9272_v15  ;;  %4399 = vmatmul.mubr.f32.vlgmr.msra.gmra.mxu1 %v3935_v48 }
 0x6e9   :  { %4260 = vmatpush1.msra.mxu0 %v9285_v33  ;;  %4317 = vmatprep.mubr.f32.mxu0 %v9995_v29 }
 0x6ea   :  { %4264 = vmatprep.subr.mxu0 %v9301_v45  ;;  %4675 = vmatprep.subr.mxu1 %v9325_v35 }
 0x6eb   :  { %4268 = vmatpush1.msra.mxu0 %v9317_v60  ;;  %4681 = vmatpush1.msra.mxu1 %v9337_v7 }
 0x6ec   :  { %4272 = vmatprep.subr.mxu0 %v9331_v39  ;;  %4687 = vmatprep.subr.mxu1 %v9350_v16 }
 0x6ed   :  { %4276 = vmatpush1.msra.mxu0 %v9342_v54  ;;  %4693 = vmatpush1.msra.mxu1 %v9359_v8 }
 0x6ee   :  { %4280 = vmatprep.subr.mxu0 %v9355_v62  ;;  %4699 = vmatprep.subr.mxu1 %v9367_v38 }
 0x6ef   :  { %4284 = vmatpush1.msra.mxu0 %v9364_v10  ;;  %4705 = vmatpush1.msra.mxu1 %v9373_v41 }
 0x6f0   :  { %4319 = vmatmul.mubr.f32.vlgmr.msra.gmra.mxu0 %v3935_v48  ;;  %4711 = vmatprep.subr.mxu1 %v9379_v25 }
 0x6f1   :  { %4717 = vmatpush1.msra.mxu1 %v9383_v6  ;;  %4587 = vmatprep.subr.mxu0 %v9238_v24 }
 0x6f2   :  { %4750 = vmatprep.mubr.f32.mxu1 %v9995_v29  ;;  %4872 = vmatprep.subr.mxu1 %v9238_v24 }
 0x6f3   :  { %4589 = vmatpush1.msra.mxu0 %v9245_v63  ;;  %4634 = vmatprep.mubr.f32.mxu0 %v9995_v29 }
 0x6f4   :  { %4591 = vmatprep.subr.mxu0 %v9255_v31 }
 0x6f5   :  { %4593 = vmatpush1.msra.mxu0 %v9264_v14 }
 0x6f6   :  { %4595 = vmatprep.subr.mxu0 %v9277_v23 }
 0x6f7   :  { %4597 = vmatpush1.msra.mxu0 %v9290_v37 }
 0x6f8   :  { %4599 = vmatprep.subr.mxu0 %v9306_v51 }
 0x6f9   :  { %4601 = vmatpush1.msra.mxu0 %v9322_v1 }
 0x6fa   :  { %4784 = vmatprep.subr.mxu0 %v9253_v5 }
 0x796   :  { %v4053_v46 = vpop.f32.mrf.mxu1 }
 0x798   :  { %v4055_v9 = vpop.f32.mrf.mxu1 }
 0x79e   :  { %v4224_v21 = vpop.f32.mrf.mxu1 }
 0x79f   :  { %v3941_v32 = vpop.f32.mrf.mxu0 }
 0x7a0   :  { %v4054_v2 = vadd.f32 %v4053_v46, %v3941_v32  ;;  %v4226_v12 = vpop.f32.mrf.mxu1  ;;  %v9553_v46 = vld [vmem:[%s9949_s9] ss:$0 sm:$0xff] }
 0x7a1   :  { %v3943_v17 = vpop.f32.mrf.mxu0 }
 0x7a2   :  { %v4056_v55 = vadd.f32 %v4055_v9, %v3943_v17 }
 0x7a7   :  { %v4142_v42 = vpop.f32.mrf.mxu0 }
 0x7a8   :  { %v4143_v57 = vadd.f32 %v4142_v42, %v4054_v2  ;;  %v4400_v3 = vpop.f32.mrf.mxu1 }
 0x7a9   :  { %v4144_v28 = vpop.f32.mrf.mxu0 }
 0x7aa   :  { %v4225_v53 = vadd.f32 %v4224_v21, %v4143_v57  ;;  %v4145_v11 = vadd.f32 %v4144_v28, %v4056_v55  ;;  %v4402_v36 = vpop.f32.mrf.mxu1 }
 0x7ac   :  { %v4227_v48 = vadd.f32 %v4226_v12, %v4145_v11 }
 0x7b0   :  { %v4320_v43 = vpop.f32.mrf.mxu0 }
 0x7b1   :  { %v4321_v27 = vadd.f32 %v4320_v43, %v4225_v53 }
 0x7b2   :  { %v4322_v34 = vpop.f32.mrf.mxu0 }
 0x7b3   :  { %v4401_v0 = vadd.f32 %v4400_v3, %v4321_v27  ;;  %v4323_v59 = vadd.f32 %v4322_v34, %v4227_v48 }
 0x7b5   :  { %v4403_v32 = vadd.f32 %v4402_v36, %v4323_v59  ;;  %v10010_v36 = vld [vmem:[#allocation7_spill] sm:$0xff] }
 0x7b7   :  { %v4405_v2 = vadd.f32 %v9553_v46, %v4403_v32 }
 0x7b9   :  { %v4407_v17 = vsel %vm4406_vm4, %v4405_v2, -inf }
 0x7ba   :  { %4408 = vmax.xlane.f32.xlu1 %v4407_v17 }
 0x843   :  { %v4409_v9 = vpop.xlane.xlu1 %4408 }
 0x844   :  { %vm4410_vm5 = vcmp.ge.f32.partialorder %v4405_v2, %v4409_v9 }
 0x845   :  { %v4411_v42 = vsel %vm4410_vm5, %v10003_v47, 9 }
 0x846   :  { %v4412_v57 = vsel %vm4406_vm4, %v4411_v42, 2147483647 }
 0x847   :  { %v4414_v21 = vshra.s32 %v4412_v57, 16  ;;  %v4413_v53 = vand.u32 65535, %v4412_v57 }
 0x849   :  { %v4416_v28 = vcvt.s32.f32 %v4414_v21  ;;  %v4415_v11 = vcvt.s32.f32 %v4413_v53 }
 0x84b   :  { %4417 = vmin.xlane.f32.xlu0 %v4416_v28 }
 0x8d4   :  { %v4418_v55 = vpop.xlane.xlu0 %4417 }
 0x8d5   :  { %vm4419_vm6 = vcmp.eq.f32.partialorder %v4416_v28, %v4418_v55  ;;  %v4424_v3 = vcvt.f32.s32 %v4418_v55 }
 0x8d6   :  { %v4420_v12 = vsel %vm4419_vm6, %v4415_v11, inf }
 0x8d7   :  { %4421 = vmin.xlane.f32.xlu0 %v4420_v12  ;;  %v4425_v27 = vshll.u32 %v4424_v3, 16 }
 0x960   :  { %v4422_v43 = vpop.xlane.xlu0 %4421 }
 0x961   :  { %v4423_v48 = vcvt.f32.s32 %v4422_v43 }
 0x963   :  { %v9559_v34 = vadd.s32 %v4425_v27, %v4423_v48 }
 0x965   :  { %10009 = vst [vmem:[#allocation12_spill] sm:$0xff] %v9559_v34  ;;  %vm4427_vm7 = vcmp.eq.s32.totalorder %v4411_v42, %v9559_v34 }
 0x966   :  { %v7217_v59 = vsel %vm4427_vm7, 1.0, %v9995_v29  ;;  %vm7173_vm7 = vcmask 23552  }
 0x967   :  { %v4468_v32 = vrot.slane %v7217_v59, %v10010_v36  ;;  %v4457_v2 = vrot.slane %v7217_v59, %v10006_v58 }
 0x969   :  { %4470 = vbcast.lane.b32.xlu0 %v4468_v32, 256  ;;  %4474 = vbcast.lane.b32.xlu1 %v4468_v32, 264 }
 0x96d   :  { %4463 = vbcast.lane.b32.xlu1 %v4457_v2, 264 }
 0x971   :  { %4459 = vbcast.lane.b32.xlu1 %v4457_v2, 256 }
 0x9db   :  { %v4471_v17 = vpop.permute.xlu0 %4470  ;;  %v4475_v9 = vpop.permute.xlu1 %4474 }
 0x9dc   :  { %v4478_v57 = vmul.f32 %v4471_v17, %v9467_v44  ;;  %v4479_v21 = vmul.f32 %v4475_v9, %v9462_v30  ;;  %v4497_v9 = vrot.slane %v4401_v0, 1 }
 0x9de   :  { %v4488_v28 = vsel %vm1685_vm12, %v4479_v21, 0.0 }
 0x9df   :  { %v4489_v53 = vadd.f32 %v4488_v28, %v4478_v57  ;;  %v4464_v42 = vpop.permute.xlu1 %4463 }
 0x9e0   :  { %v4477_v11 = vmul.f32 %v4464_v42, %v9450_v19 }
 0x9e1   :  { %v4490_v55 = vrot.slane %v4489_v53, 4 }
 0x9e2   :  { %v4480_v48 = vsel %vm1685_vm12, %v4477_v11, 0.0 }
 0x9e3   :  { %v4491_v12 = vadd.f32 %v4490_v55, %v4489_v53  ;;  %v4460_v3 = vpop.permute.xlu1 %4459 }
 0x9e4   :  { %v4476_v43 = vmul.f32 %v4460_v3, %v9456_v50 }
 0x9e5   :  { %v4492_v27 = vrot.slane %v4491_v12, 2 }
 0x9e6   :  { %v4481_v59 = vadd.f32 %v4480_v48, %v4476_v43 }
 0x9e7   :  { %v4493_v32 = vadd.f32 %v4492_v27, %v4491_v12 }
 0x9e8   :  { %v4482_v2 = vrot.slane %v4481_v59, 4 }
 0x9e9   :  { %v4494_v17 = vrot.slane %v4493_v32, 1 }
 0x9ea   :  { %v4483_v34 = vadd.f32 %v4482_v2, %v4481_v59 }
 0x9eb   :  { %v4495_v30 = vadd.f32 %v4494_v17, %v4493_v32  ;;  %v4517_v17 = vrot.slane %v9479_v26, 1 }
 0x9ec   :  { %v4484_v21 = vrot.slane %v4483_v34, 2 }
 0x9ed   :  { %v4501_v57 = vadd.f32 %v4497_v9, %v4495_v30 }
 0x9ee   :  { %v4485_v28 = vadd.f32 %v4484_v21, %v4483_v34 }
 0x9ef   :  { %8067 = vtanh.f32 %v4501_v57  ;;  %v7219_v11 = vmul.f32 -1.442695, %v4501_v57 }
 0x9f0   :  { %v4486_v44 = vrot.slane %v4485_v28, 1 }
 0x9f2   :  { %v4487_v42 = vadd.f32 %v4486_v44, %v4485_v28 }
 0x9f4   :  { %v4500_v53 = vadd.f32 %v4487_v42, %v4401_v0 }
 0x9f6   :  { %8069 = vtanh.f32 %v4500_v53  ;;  %v7218_v12 = vmul.f32 -1.442695, %v4500_v53 }
 0x9f7   :  { %8071 = vpow2.f32 %v7219_v11 }
 0x9f8   :  { %8073 = vpow2.f32 %v7218_v12 }
 0x9fc   :  { %v8068_v55 = vpop.eup %8067 }
 0x9fd   :  { %4526 = vrot.lane.b32.xlu0 %v8068_v55, %s8156_s29 }
 0xa03   :  { %v8070_v3 = vpop.eup %8069 }
 0xa04   :  { %4524 = vrot.lane.b32.xlu1 %v8070_v3, %s8156_s29  ;;  %v8072_v43 = vpop.eup %8071 }
 0xa05   :  { %v4509_v27 = vadd.f32 1.0, %v8072_v43  ;;  %v8074_v48 = vpop.eup %8073 }
 0xa06   :  { %v4508_v30 = vadd.f32 1.0, %v8074_v48 }
 0xa07   :  { %8075 = vrcp.f32 %v4509_v27 }
 0xa08   :  { %8077 = vrcp.f32 %v4508_v30  ;;  %v4444_v30 = vrot.slane %v9487_v4, %v9484_v40 }
 0xa14   :  { %v8076_v34 = vpop.eup %8075 }
 0xa15   :  { %v8078_v59 = vpop.eup %8077  ;;  %v4521_v9 = vmul.f32 %v8076_v34, %v4517_v17 }
 0xa16   :  { %v4520_v28 = vmul.f32 %v8078_v59, %v9479_v26 }
 0xa6f   :  { %v4527_v44 = vpop.permute.xlu0 %4526 }
 0xa70   :  { %v4531_v0 = vmul.f32 %v8076_v34, %v4527_v44 }
 0xa72   :  { %4536 = vrot.lane.b32.xlu0 %v4531_v0, %s8155_s2 }
 0xa76   :  { %v4525_v32 = vpop.permute.xlu1 %4524 }
 0xa77   :  { %v4530_v2 = vmul.f32 %v8078_v59, %v4525_v32 }
 0xa79   :  { %4534 = vrot.lane.b32.xlu1 %v4530_v2, %s8155_s2 }
 0xae4   :  { %v4537_v21 = vpop.permute.xlu0 %4536 }
 0xae5   :  { %v9576_v57 = vadd.f32 %v4537_v21, %v4521_v9 }
 0xae7   :  { %8079 = vtanh.f32 %v9576_v57 }
 0xaeb   :  { %v4535_v42 = vpop.permute.xlu1 %4534 }
 0xaec   :  { %v9580_v53 = vadd.f32 %v4535_v42, %v4520_v28 }
 0xaee   :  { %8081 = vtanh.f32 %v9580_v53 }
 0xaf4   :  { %v8080_v55 = vpop.eup %8079 }
 0xaf5   :  { %4548 = vrot.lane.b32.xlu0 %v8080_v55, %s8156_s29 }
 0xafb   :  { %v8082_v3 = vpop.eup %8081 }
 0xafc   :  { %4546 = vrot.lane.b32.xlu1 %v8082_v3, %s8156_s29 }
 0xb67   :  { %v4549_v11 = vpop.permute.xlu0 %4548 }
 0xb68   :  { %v4553_v12 = vmul.f32 %v8076_v34, %v4549_v11 }
 0xb6a   :  { %v4556_v43 = vrot.slane %v4553_v12, 7 }
 0xb6c   :  { %v9587_v27 = vsel %vm1685_vm12, %v9493_v20, %v4556_v43 }
 0xb6e   :  { %v4547_v48 = vpop.permute.xlu1 %4546 }
 0xb6f   :  { %v4552_v26 = vmul.f32 %v8078_v59, %v4547_v48 }
 0xb71   :  { %v7133_v44 = vrot.slane %v4552_v26, 7  ;;  %v4557_v0 = vsel %vm1681_vm3, %v4556_v43, %v4552_v26 }
 0xb72   :  { %4558 = vrot.lane.b32.xlu0 %v4557_v0, %s8155_s2 }
 0xb73   :  { %v9594_v32 = vsel %vm1685_vm12, %v4444_v30, %v7133_v44 }
 0xbe4   :  { %v4559_v2 = vpop.permute.xlu0 %4558 }
 0xbe5   :  { %v4560_v34 = vsel %vm826_vm10, %v4559_v2, 0 }
 0xbe6   :  { %v4635_v17 = vand.u32 4294901760, %v4560_v34 }
 0xbe8   :  { %v4636_v9 = vsub.f32 %v4560_v34, %v4635_v17  ;;  %4752 = vmatmul.mubr.f32.vlgmr.msra.gmra.mxu1 %v4635_v17 }
 0xbe9   :  { %4874 = vmatpush1.msra.mxu1 %v9245_v63  ;;  %4919 = vmatprep.mubr.f32.mxu1 %v9995_v29 }
 0xbea   :  { %v4637_v20 = vand.u32 4294901760, %v4636_v9  ;;  %4876 = vmatprep.subr.mxu1 %v9255_v31 }
 0xbeb   :  { %4878 = vmatpush1.msra.mxu1 %v9264_v14 }
 0xbec   :  { %v4638_v40 = vsub.f32 %v4636_v9, %v4637_v20  ;;  %4880 = vmatprep.subr.mxu1 %v9277_v23 }
 0xbed   :  { %4882 = vmatpush1.msra.mxu1 %v9290_v37 }
 0xbee   :  { %v4639_v4 = vand.u32 4294901760, %v4638_v40  ;;  %4884 = vmatprep.subr.mxu1 %v9306_v51 }
 0xbef   :  { %4886 = vmatpush1.msra.mxu1 %v9322_v1 }
 0xbf0   :  { %4923 = vmatmul.mubr.f32.vlgmr.msra.gmra.mxu1 %v4637_v20  ;;  %5050 = vmatprep.subr.mxu1 %v9238_v24 }
 0xbf1   :  { %4640 = vmatmul.mubr.f32.vlgmr.msra.gmra.mxu0 %v4639_v4  ;;  %5052 = vmatpush1.msra.mxu1 %v9245_v63 }
 0xbf2   :  { %4787 = vmatpush1.msra.mxu0 %v9262_v13  ;;  %5054 = vmatprep.subr.mxu1 %v9255_v31 }
 0xbf3   :  { %4790 = vmatprep.subr.mxu0 %v9275_v22  ;;  %5056 = vmatpush1.msra.mxu1 %v9264_v14 }
 0xbf4   :  { %4793 = vmatpush1.msra.mxu0 %v9288_v18  ;;  %5058 = vmatprep.subr.mxu1 %v9277_v23 }
 0xbf5   :  { %4796 = vmatprep.subr.mxu0 %v9304_v49  ;;  %5060 = vmatpush1.msra.mxu1 %v9290_v37 }
 0xbf6   :  { %4799 = vmatpush1.msra.mxu0 %v9320_v61  ;;  %5062 = vmatprep.subr.mxu1 %v9306_v51 }
 0xbf7   :  { %4802 = vmatprep.subr.mxu0 %v9334_v52  ;;  %4838 = vmatprep.mubr.f32.mxu0 %v9995_v29 }
 0xbf8   :  { %4805 = vmatpush1.msra.mxu0 %v9345_v56  ;;  %5064 = vmatpush1.msra.mxu1 %v9322_v1 }
 0xbf9   :  { %5097 = vmatprep.mubr.f32.mxu1 %v9995_v29  ;;  %4841 = vmatmul.mubr.f32.vlgmr.msra.gmra.mxu0 %v4636_v9 }
 0xbfa   :  { %4956 = vmatprep.subr.mxu0 %v9272_v15  ;;  %5099 = vmatmul.mubr.f32.vlgmr.msra.gmra.mxu1 %v4635_v17 }
 0xbfb   :  { %4960 = vmatpush1.msra.mxu0 %v9285_v33  ;;  %5017 = vmatprep.mubr.f32.mxu0 %v9995_v29 }
 0xbfc   :  { %4964 = vmatprep.subr.mxu0 %v9301_v45  ;;  %5346 = vmatprep.subr.mxu1 %v9325_v35 }
 0xbfd   :  { %4968 = vmatpush1.msra.mxu0 %v9317_v60  ;;  %5352 = vmatpush1.msra.mxu1 %v9337_v7 }
 0xbfe   :  { %4972 = vmatprep.subr.mxu0 %v9331_v39  ;;  %5358 = vmatprep.subr.mxu1 %v9350_v16 }
 0xbff   :  { %4976 = vmatpush1.msra.mxu0 %v9342_v54  ;;  %5364 = vmatpush1.msra.mxu1 %v9359_v8 }
 0xc00   :  { %4980 = vmatprep.subr.mxu0 %v9355_v62  ;;  %5370 = vmatprep.subr.mxu1 %v9367_v38 }
 0xc01   :  { %4984 = vmatpush1.msra.mxu0 %v9364_v10  ;;  %5376 = vmatpush1.msra.mxu1 %v9373_v41 }
 0xc02   :  { %5019 = vmatmul.mubr.f32.vlgmr.msra.gmra.mxu0 %v4635_v17  ;;  %5382 = vmatprep.subr.mxu1 %v9379_v25 }
 0xc03   :  { %5388 = vmatpush1.msra.mxu1 %v9383_v6  ;;  %5258 = vmatprep.subr.mxu0 %v9238_v24 }
 0xc04   :  { %5421 = vmatprep.mubr.f32.mxu1 %v9995_v29  ;;  %5543 = vmatprep.subr.mxu1 %v9238_v24 }
 0xc05   :  { %5260 = vmatpush1.msra.mxu0 %v9245_v63  ;;  %5305 = vmatprep.mubr.f32.mxu0 %v9995_v29 }
 0xc06   :  { %5262 = vmatprep.subr.mxu0 %v9255_v31 }
 0xc07   :  { %5264 = vmatpush1.msra.mxu0 %v9264_v14 }
 0xc08   :  { %5266 = vmatprep.subr.mxu0 %v9277_v23 }
 0xc09   :  { %5268 = vmatpush1.msra.mxu0 %v9290_v37 }
 0xc0a   :  { %5270 = vmatprep.subr.mxu0 %v9306_v51 }
 0xc0b   :  { %5272 = vmatpush1.msra.mxu0 %v9322_v1 }
 0xc0c   :  { %5455 = vmatprep.subr.mxu0 %v9253_v5 }
 0xca8   :  { %v4753_v59 = vpop.f32.mrf.mxu1 }
 0xcaa   :  { %v4755_v55 = vpop.f32.mrf.mxu1 }
 0xcb0   :  { %v4924_v12 = vpop.f32.mrf.mxu1 }
 0xcb1   :  { %v4641_v21 = vpop.f32.mrf.mxu0 }
 0xcb2   :  { %v4754_v28 = vadd.f32 %v4753_v59, %v4641_v21  ;;  %v4926_v44 = vpop.f32.mrf.mxu1 }
 0xcb3   :  { %v4643_v42 = vpop.f32.mrf.mxu0 }
 0xcb4   :  { %v4756_v26 = vadd.f32 %v4755_v55, %v4643_v42 }
 0xcb9   :  { %v4842_v3 = vpop.f32.mrf.mxu0 }
 0xcba   :  { %v4843_v11 = vadd.f32 %v4842_v3, %v4754_v28  ;;  %v5100_v0 = vpop.f32.mrf.mxu1 }
 0xcbb   :  { %v4844_v43 = vpop.f32.mrf.mxu0 }
 0xcbc   :  { %v4925_v48 = vadd.f32 %v4924_v12, %v4843_v11  ;;  %v4845_v30 = vadd.f32 %v4844_v43, %v4756_v26  ;;  %v5102_v4 = vpop.f32.mrf.mxu1 }
 0xcbe   :  { %v4927_v17 = vadd.f32 %v4926_v44, %v4845_v30 }
 0xcc2   :  { %v5020_v2 = vpop.f32.mrf.mxu0 }
 0xcc3   :  { %v5021_v34 = vadd.f32 %v5020_v2, %v4925_v48 }
 0xcc4   :  { %v5022_v9 = vpop.f32.mrf.mxu0 }
 0xcc5   :  { %v5101_v20 = vadd.f32 %v5100_v0, %v5021_v34  ;;  %v5023_v40 = vadd.f32 %v5022_v9, %v4927_v17 }
 0xcc7   :  { %v5103_v5 = vadd.f32 %v5102_v4, %v5023_v40 }
 0xcc9   :  { %v5105_v59 = vadd.f32 %v9553_v46, %v5103_v5 }
 0xccb   :  { %v5106_v21 = vsel %vm4406_vm4, %v5105_v59, -inf }
 0xccc   :  { %5107 = vmax.xlane.f32.xlu1 %v5106_v21 }
 0xd55   :  { %v5108_v28 = vpop.xlane.xlu1 %5107 }
 0xd56   :  { %vm5109_vm8 = vcmp.ge.f32.partialorder %v5105_v59, %v5108_v28  ;;  %v10011_v59 = vld [vmem:[#allocation11_spill] sm:$0xff]  ;;  %v10012_v28 = vld [vmem:[#allocation10_spill] sm:$0xff] }
 0xd57   :  { %v5110_v42 = vsel %vm5109_vm8, %v10003_v47, 9 }
 0xd58   :  { %v5111_v55 = vsel %vm4406_vm4, %v5110_v42, 2147483647 }
 0xd59   :  { %v5113_v3 = vshra.s32 %v5111_v55, 16  ;;  %v5112_v12 = vand.u32 65535, %v5111_v55 }
 0xd5b   :  { %v5115_v11 = vcvt.s32.f32 %v5113_v3  ;;  %v5114_v48 = vcvt.s32.f32 %v5112_v12 }
 0xd5d   :  { %5116 = vmin.xlane.f32.xlu0 %v5115_v11 }
 0xde6   :  { %v5117_v43 = vpop.xlane.xlu0 %5116 }
 0xde7   :  { %vm5118_vm9 = vcmp.eq.f32.partialorder %v5115_v11, %v5117_v43  ;;  %v5123_v30 = vcvt.f32.s32 %v5117_v43 }
 0xde8   :  { %v5119_v26 = vsel %vm5118_vm9, %v5114_v48, inf }
 0xde9   :  { %5120 = vmin.xlane.f32.xlu0 %v5119_v26  ;;  %v5124_v44 = vshll.u32 %v5123_v30, 16 }
 0xe72   :  { %v5121_v5 = vpop.xlane.xlu0 %5120 }
 0xe73   :  { %v5122_v0 = vcvt.f32.s32 %v5121_v5 }
 0xe75   :  { %v9655_v2 = vadd.s32 %v5124_v44, %v5122_v0 }
 0xe77   :  { %vm5126_vm11 = vcmp.eq.s32.totalorder %v5110_v42, %v9655_v2 }
 0xe78   :  { %v7220_v34 = vsel %vm5126_vm11, 1.0, %v9995_v29  ;;  %vm7177_vm11 = vcmask 33792  }
 0xe79   :  { %v5143_v17 = vrot.slane %v7220_v34, %v10010_v36  ;;  %v5132_v9 = vrot.slane %v7220_v34, %v10006_v58 }
 0xe7b   :  { %5145 = vbcast.lane.b32.xlu0 %v5143_v17, 256  ;;  %5149 = vbcast.lane.b32.xlu1 %v5143_v17, 264 }
 0xe7f   :  { %5138 = vbcast.lane.b32.xlu1 %v5132_v9, 264 }
 0xe83   :  { %5134 = vbcast.lane.b32.xlu1 %v5132_v9, 256 }
 0xeed   :  { %v5146_v40 = vpop.permute.xlu0 %5145  ;;  %v5150_v4 = vpop.permute.xlu1 %5149 }
 0xeee   :  { %v5153_v21 = vmul.f32 %v5146_v40, %v10011_v59  ;;  %v5154_v55 = vmul.f32 %v5150_v4, %v10012_v28  ;;  %v5172_v4 = vrot.slane %v5101_v20, 1 }
 0xef0   :  { %v5163_v3 = vsel %vm1685_vm12, %v5154_v55, 0.0 }
 0xef1   :  { %v5164_v11 = vadd.f32 %v5163_v3, %v5153_v21  ;;  %v5139_v42 = vpop.permute.xlu1 %5138 }
 0xef2   :  { %v5152_v43 = vmul.f32 %v5139_v42, %v9450_v19 }
 0xef3   :  { %v5165_v12 = vrot.slane %v5164_v11, 4 }
 0xef4   :  { %v5155_v44 = vsel %vm1685_vm12, %v5152_v43, 0.0 }
 0xef5   :  { %v5166_v48 = vadd.f32 %v5165_v12, %v5164_v11  ;;  %v5135_v26 = vpop.permute.xlu1 %5134 }
 0xef6   :  { %v5151_v30 = vmul.f32 %v5135_v26, %v9456_v50 }
 0xef7   :  { %v5167_v5 = vrot.slane %v5166_v48, 2 }
 0xef8   :  { %v5156_v0 = vadd.f32 %v5155_v44, %v5151_v30 }
 0xef9   :  { %v5168_v34 = vadd.f32 %v5167_v5, %v5166_v48 }
 0xefa   :  { %v5157_v17 = vrot.slane %v5156_v0, 4 }
 0xefb   :  { %v5169_v9 = vrot.slane %v5168_v34, 1 }
 0xefc   :  { %v5158_v40 = vadd.f32 %v5157_v17, %v5156_v0 }
 0xefd   :  { %v5170_v28 = vadd.f32 %v5169_v9, %v5168_v34 }
 0xefe   :  { %v5159_v55 = vrot.slane %v5158_v40, 2 }
 0xeff   :  { %v5176_v21 = vadd.f32 %v5172_v4, %v5170_v28 }
 0xf00   :  { %v5160_v3 = vadd.f32 %v5159_v55, %v5158_v40 }
 0xf01   :  { %8083 = vtanh.f32 %v5176_v21  ;;  %v7222_v43 = vmul.f32 -1.442695, %v5176_v21 }
 0xf02   :  { %v5161_v59 = vrot.slane %v5160_v3, 1 }
 0xf04   :  { %v5162_v42 = vadd.f32 %v5161_v59, %v5160_v3 }
 0xf06   :  { %v5175_v11 = vadd.f32 %v5162_v42, %v5101_v20 }
 0xf08   :  { %8085 = vtanh.f32 %v5175_v11  ;;  %v7221_v48 = vmul.f32 -1.442695, %v5175_v11 }
 0xf09   :  { %8087 = vpow2.f32 %v7222_v43 }
 0xf0a   :  { %8089 = vpow2.f32 %v7221_v48 }
 0xf0e   :  { %v8084_v12 = vpop.eup %8083 }
 0xf0f   :  { %5197 = vrot.lane.b32.xlu0 %v8084_v12, %s8156_s29 }
 0xf15   :  { %v8086_v26 = vpop.eup %8085 }
 0xf16   :  { %5195 = vrot.lane.b32.xlu1 %v8086_v26, %s8156_s29  ;;  %v8088_v30 = vpop.eup %8087 }
 0xf17   :  { %v5184_v5 = vadd.f32 1.0, %v8088_v30  ;;  %v8090_v44 = vpop.eup %8089 }
 0xf18   :  { %v5183_v28 = vadd.f32 1.0, %v8090_v44 }
 0xf19   :  { %8091 = vrcp.f32 %v5184_v5 }
 0xf1a   :  { %8093 = vrcp.f32 %v5183_v28 }
 0xf26   :  { %v8092_v0 = vpop.eup %8091 }
 0xf27   :  { %v8094_v34 = vpop.eup %8093  ;;  %v5192_v40 = vmul.f32 %v8092_v0, %v9576_v57 }
 0xf28   :  { %v5191_v21 = vmul.f32 %v8094_v34, %v9580_v53 }
 0xf81   :  { %v5198_v59 = vpop.permute.xlu0 %5197 }
 0xf82   :  { %v5202_v20 = vmul.f32 %v8092_v0, %v5198_v59 }
 0xf84   :  { %5207 = vrot.lane.b32.xlu0 %v5202_v20, %s8155_s2 }
 0xf88   :  { %v5196_v17 = vpop.permute.xlu1 %5195 }
 0xf89   :  { %v5201_v9 = vmul.f32 %v8094_v34, %v5196_v17 }
 0xf8b   :  { %5205 = vrot.lane.b32.xlu1 %v5201_v9, %s8155_s2 }
 0xff6   :  { %v5208_v4 = vpop.permute.xlu0 %5207 }
 0xff7   :  { %v9672_v55 = vadd.f32 %v5208_v4, %v5192_v40  ;;  %v10013_v40 = vld [vmem:[#allocation9_spill] sm:$0xff] }
 0xff9   :  { %8095 = vtanh.f32 %v9672_v55 }
 0xffd   :  { %v5206_v3 = vpop.permute.xlu1 %5205 }
 0xffe   :  { %v9676_v42 = vadd.f32 %v5206_v3, %v5191_v21 }
0x1000   :  { %8097 = vtanh.f32 %v9676_v42 }
0x1006   :  { %v8096_v11 = vpop.eup %8095 }
0x1007   :  { %5219 = vrot.lane.b32.xlu0 %v8096_v11, %s8156_s29 }
0x100d   :  { %v8098_v12 = vpop.eup %8097 }
0x100e   :  { %5217 = vrot.lane.b32.xlu1 %v8098_v12, %s8156_s29 }
0x1079   :  { %v5220_v26 = vpop.permute.xlu0 %5219 }
0x107a   :  { %v5224_v57 = vmul.f32 %v8092_v0, %v5220_v26 }
0x107c   :  { %v7137_v43 = vrot.slane %v5224_v57, 6  ;;  %v5227_v53 = vrot.slane %v5224_v57, 7 }
0x107e   :  { %v9683_v48 = vsel %vm98_vm0, %v9587_v27, %v7137_v43 }
0x1080   :  { %v5218_v30 = vpop.permute.xlu1 %5217 }
0x1081   :  { %v5223_v5 = vmul.f32 %v8094_v34, %v5218_v30 }
0x1083   :  { %v7136_v44 = vrot.slane %v5223_v5, 6  ;;  %v5228_v28 = vsel %vm1681_vm3, %v5227_v53, %v5223_v5 }
0x1084   :  { %5229 = vrot.lane.b32.xlu0 %v5228_v28, %s8155_s2 }
0x1085   :  { %v9689_v59 = vsel %vm98_vm0, %v9594_v32, %v7136_v44 }
0x10f6   :  { %v5230_v20 = vpop.permute.xlu0 %5229 }
0x10f7   :  { %v5231_v0 = vsel %vm826_vm10, %v5230_v20, 0 }
0x10f8   :  { %v5306_v17 = vand.u32 4294901760, %v5231_v0 }
0x10fa   :  { %v5307_v9 = vsub.f32 %v5231_v0, %v5306_v17  ;;  %5423 = vmatmul.mubr.f32.vlgmr.msra.gmra.mxu1 %v5306_v17 }
0x10fb   :  { %5545 = vmatpush1.msra.mxu1 %v9245_v63  ;;  %5590 = vmatprep.mubr.f32.mxu1 %v9995_v29 }
0x10fc   :  { %v5308_v27 = vand.u32 4294901760, %v5307_v9  ;;  %5547 = vmatprep.subr.mxu1 %v9255_v31 }
0x10fd   :  { %5549 = vmatpush1.msra.mxu1 %v9264_v14 }
0x10fe   :  { %v5309_v34 = vsub.f32 %v5307_v9, %v5308_v27  ;;  %5551 = vmatprep.subr.mxu1 %v9277_v23 }
0x10ff   :  { %5553 = vmatpush1.msra.mxu1 %v9290_v37 }
0x1100   :  { %v5310_v32 = vand.u32 4294901760, %v5309_v34  ;;  %5555 = vmatprep.subr.mxu1 %v9306_v51 }
0x1101   :  { %5557 = vmatpush1.msra.mxu1 %v9322_v1 }
0x1102   :  { %5594 = vmatmul.mubr.f32.vlgmr.msra.gmra.mxu1 %v5308_v27  ;;  %5721 = vmatprep.subr.mxu1 %v9238_v24 }
0x1103   :  { %5311 = vmatmul.mubr.f32.vlgmr.msra.gmra.mxu0 %v5310_v32  ;;  %5723 = vmatpush1.msra.mxu1 %v9245_v63 }
0x1104   :  { %5458 = vmatpush1.msra.mxu0 %v9262_v13  ;;  %5725 = vmatprep.subr.mxu1 %v9255_v31 }
0x1105   :  { %5461 = vmatprep.subr.mxu0 %v9275_v22  ;;  %5727 = vmatpush1.msra.mxu1 %v9264_v14 }
0x1106   :  { %5464 = vmatpush1.msra.mxu0 %v9288_v18  ;;  %5729 = vmatprep.subr.mxu1 %v9277_v23 }
0x1107   :  { %5467 = vmatprep.subr.mxu0 %v9304_v49  ;;  %5731 = vmatpush1.msra.mxu1 %v9290_v37 }
0x1108   :  { %5470 = vmatpush1.msra.mxu0 %v9320_v61  ;;  %5733 = vmatprep.subr.mxu1 %v9306_v51 }
0x1109   :  { %5473 = vmatprep.subr.mxu0 %v9334_v52  ;;  %5509 = vmatprep.mubr.f32.mxu0 %v9995_v29 }
0x110a   :  { %5476 = vmatpush1.msra.mxu0 %v9345_v56  ;;  %5735 = vmatpush1.msra.mxu1 %v9322_v1 }
0x110b   :  { %5768 = vmatprep.mubr.f32.mxu1 %v9995_v29  ;;  %5512 = vmatmul.mubr.f32.vlgmr.msra.gmra.mxu0 %v5307_v9 }
0x110c   :  { %5627 = vmatprep.subr.mxu0 %v9272_v15  ;;  %5770 = vmatmul.mubr.f32.vlgmr.msra.gmra.mxu1 %v5306_v17 }
0x110d   :  { %5631 = vmatpush1.msra.mxu0 %v9285_v33  ;;  %5688 = vmatprep.mubr.f32.mxu0 %v9995_v29 }
0x110e   :  { %5635 = vmatprep.subr.mxu0 %v9301_v45  ;;  %6017 = vmatprep.subr.mxu1 %v9325_v35 }
0x110f   :  { %5639 = vmatpush1.msra.mxu0 %v9317_v60  ;;  %6023 = vmatpush1.msra.mxu1 %v9337_v7 }
0x1110   :  { %5643 = vmatprep.subr.mxu0 %v9331_v39  ;;  %6029 = vmatprep.subr.mxu1 %v9350_v16 }
0x1111   :  { %5647 = vmatpush1.msra.mxu0 %v9342_v54  ;;  %6035 = vmatpush1.msra.mxu1 %v9359_v8 }
0x1112   :  { %5651 = vmatprep.subr.mxu0 %v9355_v62  ;;  %6041 = vmatprep.subr.mxu1 %v9367_v38 }
0x1113   :  { %5655 = vmatpush1.msra.mxu0 %v9364_v10  ;;  %6047 = vmatpush1.msra.mxu1 %v9373_v41 }
0x1114   :  { %5690 = vmatmul.mubr.f32.vlgmr.msra.gmra.mxu0 %v5306_v17  ;;  %6053 = vmatprep.subr.mxu1 %v9379_v25 }
0x1115   :  { %6059 = vmatpush1.msra.mxu1 %v9383_v6  ;;  %5929 = vmatprep.subr.mxu0 %v9238_v24 }
0x1116   :  { %6092 = vmatprep.mubr.f32.mxu1 %v9995_v29  ;;  %6214 = vmatprep.subr.mxu1 %v9238_v24 }
0x1117   :  { %5931 = vmatpush1.msra.mxu0 %v9245_v63  ;;  %5976 = vmatprep.mubr.f32.mxu0 %v9995_v29 }
0x1118   :  { %5933 = vmatprep.subr.mxu0 %v9255_v31 }
0x1119   :  { %5935 = vmatpush1.msra.mxu0 %v9264_v14 }
0x111a   :  { %5937 = vmatprep.subr.mxu0 %v9277_v23 }
0x111b   :  { %5939 = vmatpush1.msra.mxu0 %v9290_v37 }
0x111c   :  { %5941 = vmatprep.subr.mxu0 %v9306_v51 }
0x111d   :  { %5943 = vmatpush1.msra.mxu0 %v9322_v1 }
0x111e   :  { %6126 = vmatprep.subr.mxu0 %v10013_v40 }
0x11ba   :  { %v5424_v4 = vpop.f32.mrf.mxu1 }
0x11bc   :  { %v5426_v12 = vpop.f32.mrf.mxu1 }
0x11c2   :  { %v5595_v43 = vpop.f32.mrf.mxu1 }
0x11c3   :  { %v5312_v21 = vpop.f32.mrf.mxu0 }
0x11c4   :  { %v5425_v3 = vadd.f32 %v5424_v4, %v5312_v21  ;;  %v5597_v28 = vpop.f32.mrf.mxu1 }
0x11c5   :  { %v5314_v11 = vpop.f32.mrf.mxu0 }
0x11c6   :  { %v5427_v5 = vadd.f32 %v5426_v12, %v5314_v11 }
0x11cb   :  { %v5513_v26 = vpop.f32.mrf.mxu0 }
0x11cc   :  { %v5514_v57 = vadd.f32 %v5513_v26, %v5425_v3  ;;  %v5771_v20 = vpop.f32.mrf.mxu1 }
0x11cd   :  { %v5515_v30 = vpop.f32.mrf.mxu0 }
0x11ce   :  { %v5596_v53 = vadd.f32 %v5595_v43, %v5514_v57  ;;  %v5516_v44 = vadd.f32 %v5515_v30, %v5427_v5  ;;  %v5773_v40 = vpop.f32.mrf.mxu1 }
0x11d0   :  { %v5598_v9 = vadd.f32 %v5597_v28, %v5516_v44 }
0x11d4   :  { %v5691_v0 = vpop.f32.mrf.mxu0 }
0x11d5   :  { %v5692_v17 = vadd.f32 %v5691_v0, %v5596_v53 }
0x11d6   :  { %v5693_v27 = vpop.f32.mrf.mxu0 }
0x11d7   :  { %v9746_v34 = vadd.f32 %v5771_v20, %v5692_v17  ;;  %v5694_v32 = vadd.f32 %v5693_v27, %v5598_v9  ;;  %v10014_v17 = vld [vmem:[#allocation12_spill] sm:$0xff] }
0x11d8   :  { %v7170_v9 = vsel %vm7169_vm14, %v10014_v17, %v9655_v2 }
0x11d9   :  { %v5774_v4 = vadd.f32 %v5773_v40, %v5694_v32 }
0x11db   :  { %v5776_v21 = vadd.f32 %v9553_v46, %v5774_v4 }
0x11dd   :  { %v5777_v3 = vsel %vm4406_vm4, %v5776_v21, -inf }
0x11de   :  { %5778 = vmax.xlane.f32.xlu1 %v5777_v3 }
0x1267   :  { %v5779_v26 = vpop.xlane.xlu1 %5778 }
0x1268   :  { %vm5780_vm0 = vcmp.ge.f32.partialorder %v5776_v21, %v5779_v26 }
0x1269   :  { %v5781_v11 = vsel %vm5780_vm0, %v10003_v47, 9 }
0x126a   :  { %v5782_v12 = vsel %vm4406_vm4, %v5781_v11, 2147483647 }
0x126b   :  { %v5784_v57 = vshra.s32 %v5782_v12, 16  ;;  %v5783_v30 = vand.u32 65535, %v5782_v12  ;;  %v10015_v12 = vld [vmem:[#allocation11_spill] sm:$0xff] }
0x126d   :  { %v5786_v43 = vcvt.s32.f32 %v5784_v57  ;;  %v5785_v5 = vcvt.s32.f32 %v5783_v30 }
0x126f   :  { %5787 = vmin.xlane.f32.xlu0 %v5786_v43 }
0x12f8   :  { %v5788_v53 = vpop.xlane.xlu0 %5787 }
0x12f9   :  { %vm5789_vm13 = vcmp.eq.f32.partialorder %v5786_v43, %v5788_v53  ;;  %v5794_v40 = vcvt.f32.s32 %v5788_v53  ;;  %v10016_v43 = vld [vmem:[#allocation10_spill] sm:$0xff] }
0x12fa   :  { %v5790_v44 = vsel %vm5789_vm13, %v5785_v5, inf }
0x12fb   :  { %5791 = vmin.xlane.f32.xlu0 %v5790_v44  ;;  %v5795_v28 = vshll.u32 %v5794_v40, 16 }
0x1384   :  { %v5792_v46 = vpop.xlane.xlu0 %5791 }
0x1385   :  { %v5793_v20 = vcvt.f32.s32 %v5792_v46 }
0x1387   :  { %v5796_v0 = vadd.s32 %v5795_v28, %v5793_v20 }
0x1389   :  { %v9754_v27 = vsel %vm7171_vm15, %v7170_v9, %v5796_v0  ;;  %vm5797_vm1 = vcmp.eq.s32.totalorder %v5781_v11, %v5796_v0 }
0x138a   :  { %v7223_v32 = vsel %vm5797_vm1, 1.0, %v9995_v29 }
0x138b   :  { %v5814_v4 = vrot.slane %v7223_v32, %v10010_v36  ;;  %v5803_v21 = vrot.slane %v7223_v32, %v10006_v58 }
0x138d   :  { %5816 = vbcast.lane.b32.xlu0 %v5814_v4, 256  ;;  %5820 = vbcast.lane.b32.xlu1 %v5814_v4, 264 }
0x1391   :  { %5809 = vbcast.lane.b32.xlu1 %v5803_v21, 264 }
0x1395   :  { %5805 = vbcast.lane.b32.xlu1 %v5803_v21, 256 }
0x13ff   :  { %v5817_v3 = vpop.permute.xlu0 %5816  ;;  %v5821_v26 = vpop.permute.xlu1 %5820 }
0x1400   :  { %v5824_v57 = vmul.f32 %v5817_v3, %v10015_v12  ;;  %v5825_v30 = vmul.f32 %v5821_v26, %v10016_v43  ;;  %v5843_v3 = vrot.slane %v9746_v34, 1 }
0x1402   :  { %v5834_v2 = vsel %vm1685_vm12, %v5825_v30, 0.0 }
0x1403   :  { %v5835_v53 = vadd.f32 %v5834_v2, %v5824_v57  ;;  %v5810_v11 = vpop.permute.xlu1 %5809 }
0x1404   :  { %v5823_v44 = vmul.f32 %v5810_v11, %v9450_v19 }
0x1405   :  { %v5836_v5 = vrot.slane %v5835_v53, 4 }
0x1406   :  { %v5826_v0 = vsel %vm1685_vm12, %v5823_v44, 0.0 }
0x1407   :  { %v5837_v40 = vadd.f32 %v5836_v5, %v5835_v53  ;;  %v5806_v46 = vpop.permute.xlu1 %5805 }
0x1408   :  { %v5822_v28 = vmul.f32 %v5806_v46, %v9456_v50 }
0x1409   :  { %v5838_v20 = vrot.slane %v5837_v40, 2 }
0x140a   :  { %v5827_v17 = vadd.f32 %v5826_v0, %v5822_v28 }
0x140b   :  { %v5839_v9 = vadd.f32 %v5838_v20, %v5837_v40 }
0x140c   :  { %v5828_v32 = vrot.slane %v5827_v17, 4 }
0x140d   :  { %v5840_v4 = vrot.slane %v5839_v9, 1 }
0x140e   :  { %v5829_v21 = vadd.f32 %v5828_v32, %v5827_v17 }
0x140f   :  { %v5841_v26 = vadd.f32 %v5840_v4, %v5839_v9 }
0x1410   :  { %v5830_v57 = vrot.slane %v5829_v21, 2 }
0x1411   :  { %v5847_v30 = vadd.f32 %v5843_v3, %v5841_v26 }
0x1412   :  { %v5831_v2 = vadd.f32 %v5830_v57, %v5829_v21 }
0x1413   :  { %8099 = vtanh.f32 %v5847_v30  ;;  %v7225_v40 = vmul.f32 -1.442695, %v5847_v30 }
0x1414   :  { %v5832_v11 = vrot.slane %v5831_v2, 1 }
0x1416   :  { %v5833_v53 = vadd.f32 %v5832_v11, %v5831_v2 }
0x1418   :  { %v5846_v5 = vadd.f32 %v5833_v53, %v9746_v34 }
0x141a   :  { %8101 = vtanh.f32 %v5846_v5  ;;  %v7224_v28 = vmul.f32 -1.442695, %v5846_v5 }
0x141b   :  { %8103 = vpow2.f32 %v7225_v40 }
0x141c   :  { %8105 = vpow2.f32 %v7224_v28 }
0x1420   :  { %v8100_v46 = vpop.eup %8099 }
0x1421   :  { %5868 = vrot.lane.b32.xlu0 %v8100_v46, %s8156_s29 }
0x1427   :  { %v8102_v44 = vpop.eup %8101 }
0x1428   :  { %5866 = vrot.lane.b32.xlu1 %v8102_v44, %s8156_s29  ;;  %v8104_v20 = vpop.eup %8103 }
0x1429   :  { %v5855_v0 = vadd.f32 1.0, %v8104_v20  ;;  %v8106_v17 = vpop.eup %8105 }
0x142a   :  { %v5854_v9 = vadd.f32 1.0, %v8106_v17 }
0x142b   :  { %8107 = vrcp.f32 %v5855_v0 }
0x142c   :  { %8109 = vrcp.f32 %v5854_v9 }
0x1438   :  { %v8108_v32 = vpop.eup %8107 }
0x1439   :  { %v8110_v21 = vpop.eup %8109  ;;  %v5863_v57 = vmul.f32 %v8108_v32, %v9672_v55 }
0x143a   :  { %v5862_v11 = vmul.f32 %v8110_v21, %v9676_v42 }
0x1493   :  { %v5869_v4 = vpop.permute.xlu0 %5868 }
0x1494   :  { %v5873_v34 = vmul.f32 %v8108_v32, %v5869_v4 }
0x1496   :  { %5878 = vrot.lane.b32.xlu0 %v5873_v34, %s8155_s2 }
0x149a   :  { %v5867_v3 = vpop.permute.xlu1 %5866 }
0x149b   :  { %v5872_v26 = vmul.f32 %v8110_v21, %v5867_v3 }
0x149d   :  { %5876 = vrot.lane.b32.xlu1 %v5872_v26, %s8155_s2 }
0x1508   :  { %v5879_v30 = vpop.permute.xlu0 %5878 }
0x1509   :  { %v9772_v2 = vadd.f32 %v5879_v30, %v5863_v57 }
0x150b   :  { %8111 = vtanh.f32 %v9772_v2 }
0x150f   :  { %v5877_v53 = vpop.permute.xlu1 %5876 }
0x1510   :  { %v9776_v5 = vadd.f32 %v5877_v53, %v5862_v11 }
0x1512   :  { %8113 = vtanh.f32 %v9776_v5 }
0x1518   :  { %v8112_v46 = vpop.eup %8111 }
0x1519   :  { %5890 = vrot.lane.b32.xlu0 %v8112_v46, %s8156_s29 }
0x151f   :  { %v8114_v44 = vpop.eup %8113 }
0x1520   :  { %5888 = vrot.lane.b32.xlu1 %v8114_v44, %s8156_s29 }
0x158b   :  { %v5891_v40 = vpop.permute.xlu0 %5890 }
0x158c   :  { %v5895_v55 = vmul.f32 %v8108_v32, %v5891_v40 }
0x158e   :  { %v7141_v28 = vrot.slane %v5895_v55, 5  ;;  %v5898_v42 = vrot.slane %v5895_v55, 7 }
0x1590   :  { %v9782_v20 = vsel %vm7152_vm2, %v9683_v48, %v7141_v28 }
0x1592   :  { %v5889_v0 = vpop.permute.xlu1 %5888 }
0x1593   :  { %v5894_v17 = vmul.f32 %v8110_v21, %v5889_v0 }
0x1595   :  { %v7140_v9 = vrot.slane %v5894_v17, 5  ;;  %v5899_v4 = vsel %vm1681_vm3, %v5898_v42, %v5894_v17 }
0x1596   :  { %5900 = vrot.lane.b32.xlu0 %v5899_v4, %s8155_s2 }
0x1597   :  { %v9787_v34 = vsel %vm7152_vm2, %v9689_v59, %v7140_v9 }
0x1608   :  { %v5901_v3 = vpop.permute.xlu0 %5900 }
0x1609   :  { %v5902_v26 = vsel %vm826_vm10, %v5901_v3, 0 }
0x160a   :  { %v5977_v32 = vand.u32 4294901760, %v5902_v26 }
0x160c   :  { %v5978_v57 = vsub.f32 %v5902_v26, %v5977_v32  ;;  %6094 = vmatmul.mubr.f32.vlgmr.msra.gmra.mxu1 %v5977_v32 }
0x160d   :  { %6216 = vmatpush1.msra.mxu1 %v9245_v63  ;;  %6261 = vmatprep.mubr.f32.mxu1 %v9995_v29 }
0x160e   :  { %v5979_v48 = vand.u32 4294901760, %v5978_v57  ;;  %6218 = vmatprep.subr.mxu1 %v9255_v31 }
0x160f   :  { %6220 = vmatpush1.msra.mxu1 %v9264_v14 }
0x1610   :  { %v5980_v21 = vsub.f32 %v5978_v57, %v5979_v48  ;;  %6222 = vmatprep.subr.mxu1 %v9277_v23 }
0x1611   :  { %6224 = vmatpush1.msra.mxu1 %v9290_v37 }
0x1612   :  { %v5981_v59 = vand.u32 4294901760, %v5980_v21  ;;  %6226 = vmatprep.subr.mxu1 %v9306_v51 }
0x1613   :  { %6228 = vmatpush1.msra.mxu1 %v9322_v1 }
0x1614   :  { %6265 = vmatmul.mubr.f32.vlgmr.msra.gmra.mxu1 %v5979_v48  ;;  %6392 = vmatprep.subr.mxu1 %v9238_v24 }
0x1615   :  { %5982 = vmatmul.mubr.f32.vlgmr.msra.gmra.mxu0 %v5981_v59  ;;  %6394 = vmatpush1.msra.mxu1 %v9245_v63 }
0x1616   :  { %6129 = vmatpush1.msra.mxu0 %v9262_v13  ;;  %6396 = vmatprep.subr.mxu1 %v9255_v31 }
0x1617   :  { %6132 = vmatprep.subr.mxu0 %v9275_v22  ;;  %6398 = vmatpush1.msra.mxu1 %v9264_v14 }
0x1618   :  { %6135 = vmatpush1.msra.mxu0 %v9288_v18  ;;  %6400 = vmatprep.subr.mxu1 %v9277_v23 }
0x1619   :  { %6138 = vmatprep.subr.mxu0 %v9304_v49  ;;  %6402 = vmatpush1.msra.mxu1 %v9290_v37 }
0x161a   :  { %6141 = vmatpush1.msra.mxu0 %v9320_v61  ;;  %6404 = vmatprep.subr.mxu1 %v9306_v51 }
0x161b   :  { %6144 = vmatprep.subr.mxu0 %v9334_v52  ;;  %6180 = vmatprep.mubr.f32.mxu0 %v9995_v29 }
0x161c   :  { %6147 = vmatpush1.msra.mxu0 %v9345_v56  ;;  %6406 = vmatpush1.msra.mxu1 %v9322_v1 }
0x161d   :  { %6439 = vmatprep.mubr.f32.mxu1 %v9995_v29  ;;  %6183 = vmatmul.mubr.f32.vlgmr.msra.gmra.mxu0 %v5978_v57 }
0x161e   :  { %6298 = vmatprep.subr.mxu0 %v9272_v15  ;;  %6441 = vmatmul.mubr.f32.vlgmr.msra.gmra.mxu1 %v5977_v32 }
0x161f   :  { %6302 = vmatpush1.msra.mxu0 %v9285_v33  ;;  %6359 = vmatprep.mubr.f32.mxu0 %v9995_v29 }
0x1620   :  { %6306 = vmatprep.subr.mxu0 %v9301_v45  ;;  %6687 = vmatprep.subr.mxu1 %v9325_v35  ;;  %v10017_v35 = vld [vmem:[#allocation9_spill] sm:$0xff] }
0x1621   :  { %6310 = vmatpush1.msra.mxu0 %v9317_v60  ;;  %6693 = vmatpush1.msra.mxu1 %v9337_v7 }
0x1622   :  { %6314 = vmatprep.subr.mxu0 %v9331_v39  ;;  %6699 = vmatprep.subr.mxu1 %v9350_v16 }
0x1623   :  { %6318 = vmatpush1.msra.mxu0 %v9342_v54  ;;  %6705 = vmatpush1.msra.mxu1 %v9359_v8 }
0x1624   :  { %6322 = vmatprep.subr.mxu0 %v9355_v62  ;;  %6711 = vmatprep.subr.mxu1 %v9367_v38 }
0x1625   :  { %6326 = vmatpush1.msra.mxu0 %v9364_v10  ;;  %6717 = vmatpush1.msra.mxu1 %v9373_v41 }
0x1626   :  { %6361 = vmatmul.mubr.f32.vlgmr.msra.gmra.mxu0 %v5977_v32  ;;  %6723 = vmatprep.subr.mxu1 %v9379_v25  ;;  %v9849_v32 = vld [vmem:[%s9949_s9] ss:$0 sm:$0xff] }
0x1627   :  { %6729 = vmatpush1.msra.mxu1 %v9383_v6  ;;  %6600 = vmatprep.subr.mxu0 %v9238_v24 }
0x1628   :  { %6762 = vmatprep.mubr.f32.mxu1 %v9995_v29  ;;  %6882 = vmatprep.subr.mxu1 %v9238_v24 }
0x1629   :  { %6602 = vmatpush1.msra.mxu0 %v9245_v63  ;;  %6647 = vmatprep.mubr.f32.mxu0 %v9995_v29 }
0x162a   :  { %6604 = vmatprep.subr.mxu0 %v9255_v31 }
0x162b   :  { %6606 = vmatpush1.msra.mxu0 %v9264_v14 }
0x162c   :  { %6608 = vmatprep.subr.mxu0 %v9277_v23 }
0x162d   :  { %6610 = vmatpush1.msra.mxu0 %v9290_v37 }
0x162e   :  { %6612 = vmatprep.subr.mxu0 %v9306_v51 }
0x162f   :  { %6614 = vmatpush1.msra.mxu0 %v9322_v1 }
0x1630   :  { %6795 = vmatprep.subr.mxu0 %v10017_v35 }
0x16cc   :  { %v6095_v7 = vpop.f32.mrf.mxu1 }
0x16ce   :  { %v6097_v41 = vpop.f32.mrf.mxu1 }
0x16d4   :  { %v6266_v30 = vpop.f32.mrf.mxu1 }
0x16d5   :  { %v5983_v16 = vpop.f32.mrf.mxu0 }
0x16d6   :  { %v6096_v8 = vadd.f32 %v6095_v7, %v5983_v16  ;;  %v6268_v40 = vpop.f32.mrf.mxu1 }
0x16d7   :  { %v5985_v38 = vpop.f32.mrf.mxu0 }
0x16d8   :  { %v6098_v46 = vadd.f32 %v6097_v41, %v5985_v38 }
0x16dd   :  { %v6184_v25 = vpop.f32.mrf.mxu0 }
0x16de   :  { %v6185_v6 = vadd.f32 %v6184_v25, %v6096_v8  ;;  %v6442_v55 = vpop.f32.mrf.mxu1 }
0x16df   :  { %v6186_v11 = vpop.f32.mrf.mxu0 }
0x16e0   :  { %v6267_v53 = vadd.f32 %v6266_v30, %v6185_v6  ;;  %v6187_v44 = vadd.f32 %v6186_v11, %v6098_v46  ;;  %v6444_v3 = vpop.f32.mrf.mxu1 }
0x16e2   :  { %v6269_v42 = vadd.f32 %v6268_v40, %v6187_v44 }
0x16e6   :  { %v6362_v28 = vpop.f32.mrf.mxu0 }
0x16e7   :  { %v6363_v0 = vadd.f32 %v6362_v28, %v6267_v53 }
0x16e8   :  { %v6364_v17 = vpop.f32.mrf.mxu0 }
0x16e9   :  { %v9844_v9 = vadd.f32 %v6442_v55, %v6363_v0  ;;  %v6365_v4 = vadd.f32 %v6364_v17, %v6269_v42 }
0x16eb   :  { %v6445_v26 = vadd.f32 %v6444_v3, %v6365_v4 }
0x16ed   :  { %v6447_v57 = vadd.f32 %v9849_v32, %v6445_v26 }
0x16ef   :  { %v6448_v48 = vsel %vm4406_vm4, %v6447_v57, -inf }
0x16f0   :  { %6449 = vmax.xlane.f32.xlu1 %v6448_v48 }
0x1779   :  { %v6450_v21 = vpop.xlane.xlu1 %6449 }
0x177a   :  { %vm6451_vm5 = vcmp.ge.f32.partialorder %v6447_v57, %v6450_v21 }
0x177b   :  { %v6452_v59 = vsel %vm6451_vm5, %v10003_v47, 9 }
0x177c   :  { %v6453_v35 = vsel %vm4406_vm4, %v6452_v59, 2147483647 }
0x177d   :  { %v6455_v7 = vshra.s32 %v6453_v35, 16  ;;  %v6454_v8 = vand.u32 65535, %v6453_v35 }
0x177f   :  { %v6457_v16 = vcvt.s32.f32 %v6455_v7  ;;  %v6456_v41 = vcvt.s32.f32 %v6454_v8 }
0x1781   :  { %6458 = vmin.xlane.f32.xlu0 %v6457_v16 }
0x180a   :  { %v6459_v38 = vpop.xlane.xlu0 %6458 }
0x180b   :  { %vm6460_vm6 = vcmp.eq.f32.partialorder %v6457_v16, %v6459_v38  ;;  %v6465_v6 = vcvt.f32.s32 %v6459_v38 }
0x180c   :  { %v6461_v25 = vsel %vm6460_vm6, %v6456_v41, inf }
0x180d   :  { %6462 = vmin.xlane.f32.xlu0 %v6461_v25  ;;  %v6466_v11 = vshll.u32 %v6465_v6, 16 }
0x1896   :  { %v6463_v30 = vpop.xlane.xlu0 %6462 }
0x1897   :  { %v6464_v53 = vcvt.f32.s32 %v6463_v30 }
0x1899   :  { %v6467_v46 = vadd.s32 %v6466_v11, %v6464_v53 }
0x189b   :  { %vm6468_vm8 = vcmp.eq.s32.totalorder %v6452_v59, %v6467_v46  ;;  %v9856_v44 = vsel %vm7173_vm7, %v9754_v27, %v6467_v46 }
0x189c   :  { %v7226_v40 = vsel %vm6468_vm8, 1.0, %v9995_v29 }
0x189d   :  { %v6485_v55 = vrot.slane %v7226_v40, %v10010_v36  ;;  %v6474_v28 = vrot.slane %v7226_v40, %v10006_v58 }
0x189f   :  { %6487 = vbcast.lane.b32.xlu0 %v6485_v55, 256  ;;  %6491 = vbcast.lane.b32.xlu1 %v6485_v55, 264 }
0x18a3   :  { %6480 = vbcast.lane.b32.xlu1 %v6474_v28, 264 }
0x18a7   :  { %6476 = vbcast.lane.b32.xlu1 %v6474_v28, 256 }
0x1911   :  { %v6488_v0 = vpop.permute.xlu0 %6487  ;;  %v6492_v42 = vpop.permute.xlu1 %6491 }
0x1912   :  { %v6495_v17 = vmul.f32 %v6488_v0, %v10015_v12  ;;  %v6496_v4 = vmul.f32 %v6492_v42, %v10016_v43  ;;  %v6514_v43 = vrot.slane %v9844_v9, 1 }
0x1914   :  { %v6505_v3 = vsel %vm1685_vm12, %v6496_v4, 0.0 }
0x1915   :  { %v6506_v27 = vadd.f32 %v6505_v3, %v6495_v17  ;;  %v6481_v26 = vpop.permute.xlu1 %6480 }
0x1916   :  { %v6494_v48 = vmul.f32 %v6481_v26, %v9450_v19 }
0x1917   :  { %v6507_v57 = vrot.slane %v6506_v27, 4 }
0x1918   :  { %v6497_v35 = vsel %vm1685_vm12, %v6494_v48, 0.0  ;;  %vm7155_vm12 = vcmask 1043456  }
0x1919   :  { %v6508_v36 = vadd.f32 %v6507_v57, %v6506_v27  ;;  %v6477_v21 = vpop.permute.xlu1 %6476 }
0x191a   :  { %v6493_v59 = vmul.f32 %v6477_v21, %v9456_v50 }
0x191b   :  { %v6509_v58 = vrot.slane %v6508_v36, 2 }
0x191c   :  { %v6498_v7 = vadd.f32 %v6497_v35, %v6493_v59 }
0x191d   :  { %v6510_v16 = vadd.f32 %v6509_v58, %v6508_v36 }
0x191e   :  { %v6499_v8 = vrot.slane %v6498_v7, 4 }
0x191f   :  { %v6511_v12 = vrot.slane %v6510_v16, 1 }
0x1920   :  { %v6500_v38 = vadd.f32 %v6499_v8, %v6498_v7 }
0x1921   :  { %v6512_v41 = vadd.f32 %v6511_v12, %v6510_v16 }
0x1922   :  { %v6501_v25 = vrot.slane %v6500_v38, 2 }
0x1923   :  { %v6518_v6 = vadd.f32 %v6514_v43, %v6512_v41 }
0x1924   :  { %v6502_v30 = vadd.f32 %v6501_v25, %v6500_v38 }
0x1925   :  { %8115 = vtanh.f32 %v6518_v6  ;;  %v7228_v40 = vmul.f32 -1.442695, %v6518_v6 }
0x1926   :  { %v6503_v19 = vrot.slane %v6502_v30, 1 }
0x1928   :  { %v6504_v11 = vadd.f32 %v6503_v19, %v6502_v30 }
0x192a   :  { %v6517_v53 = vadd.f32 %v6504_v11, %v9844_v9 }
0x192c   :  { %8117 = vtanh.f32 %v6517_v53  ;;  %v7227_v55 = vmul.f32 -1.442695, %v6517_v53 }
0x192d   :  { %8119 = vpow2.f32 %v7228_v40 }
0x192e   :  { %8121 = vpow2.f32 %v7227_v55 }
0x1932   :  { %v8116_v50 = vpop.eup %8115 }
0x1933   :  { %6539 = vrot.lane.b32.xlu0 %v8116_v50, %s8156_s29 }
0x1939   :  { %v8118_v46 = vpop.eup %8117 }
0x193a   :  { %6537 = vrot.lane.b32.xlu1 %v8118_v46, %s8156_s29  ;;  %v8120_v28 = vpop.eup %8119 }
0x193b   :  { %v6526_v0 = vadd.f32 1.0, %v8120_v28  ;;  %v8122_v42 = vpop.eup %8121 }
0x193c   :  { %v6525_v17 = vadd.f32 1.0, %v8122_v42 }
0x193d   :  { %8123 = vrcp.f32 %v6526_v0 }
0x193e   :  { %8125 = vrcp.f32 %v6525_v17 }
0x194a   :  { %v8124_v4 = vpop.eup %8123 }
0x194b   :  { %v8126_v27 = vpop.eup %8125  ;;  %v6534_v48 = vmul.f32 %v8124_v4, %v9772_v2 }
0x194c   :  { %v6533_v59 = vmul.f32 %v8126_v27, %v9776_v5 }
0x19a5   :  { %v6540_v3 = vpop.permute.xlu0 %6539 }
0x19a6   :  { %v6544_v9 = vmul.f32 %v8124_v4, %v6540_v3 }
0x19a8   :  { %6549 = vrot.lane.b32.xlu0 %v6544_v9, %s8155_s2 }
0x19ac   :  { %v6538_v26 = vpop.permute.xlu1 %6537 }
0x19ad   :  { %v6543_v57 = vmul.f32 %v8126_v27, %v6538_v26 }
0x19af   :  { %6547 = vrot.lane.b32.xlu1 %v6543_v57, %s8155_s2 }
0x1a1a   :  { %v6550_v36 = vpop.permute.xlu0 %6549 }
0x1a1b   :  { %v6554_v21 = vadd.f32 %v6550_v36, %v6534_v48 }
0x1a1d   :  { %8127 = vtanh.f32 %v6554_v21 }
0x1a21   :  { %v6548_v58 = vpop.permute.xlu1 %6547 }
0x1a22   :  { %v6553_v35 = vadd.f32 %v6548_v58, %v6533_v59 }
0x1a24   :  { %8129 = vtanh.f32 %v6553_v35 }
0x1a2a   :  { %v8128_v7 = vpop.eup %8127 }
0x1a2b   :  { %6561 = vrot.lane.b32.xlu0 %v8128_v7, %s8156_s29 }
0x1a31   :  { %v8130_v16 = vpop.eup %8129 }
0x1a32   :  { %6559 = vrot.lane.b32.xlu1 %v8130_v16, %s8156_s29 }
0x1a9d   :  { %v6562_v8 = vpop.permute.xlu0 %6561 }
0x1a9e   :  { %v6566_v12 = vmul.f32 %v8124_v4, %v6562_v8 }
0x1aa0   :  { %v7145_v38 = vrot.slane %v6566_v12, 4  ;;  %v6569_v41 = vrot.slane %v6566_v12, 7 }
0x1aa2   :  { %v9878_v2 = vsel %vm7155_vm12, %v9782_v20, %v7145_v38 }
0x1aa4   :  { %v6560_v43 = vpop.permute.xlu1 %6559 }
0x1aa5   :  { %v6565_v25 = vmul.f32 %v8126_v27, %v6560_v43 }
0x1aa7   :  { %v7144_v5 = vrot.slane %v6565_v25, 4  ;;  %v6570_v6 = vsel %vm1681_vm3, %v6569_v41, %v6565_v25  ;;  %vm7166_vm3 = vcmask 258048  }
0x1aa8   :  { %6571 = vrot.lane.b32.xlu0 %v6570_v6, %s8155_s2 }
0x1aa9   :  { %v9883_v30 = vsel %vm7155_vm12, %v9787_v34, %v7144_v5 }
0x1b1a   :  { %v6572_v19 = vpop.permute.xlu0 %6571 }
0x1b1b   :  { %v6573_v11 = vsel %vm826_vm10, %v6572_v19, 0 }
0x1b1c   :  { %v6648_v53 = vand.u32 4294901760, %v6573_v11 }
0x1b1e   :  { %v6649_v50 = vsub.f32 %v6573_v11, %v6648_v53  ;;  %6764 = vmatmul.mubr.f32.vlgmr.msra.gmra.mxu1 %v6648_v53 }
0x1b1f   :  { %6884 = vmatpush1.msra.mxu1 %v9245_v63  ;;  %6929 = vmatprep.mubr.f32.mxu1 %v9995_v29 }
0x1b20   :  { %v6650_v20 = vand.u32 4294901760, %v6649_v50  ;;  %6886 = vmatprep.subr.mxu1 %v9255_v31 }
0x1b21   :  { %6888 = vmatpush1.msra.mxu1 %v9264_v14 }
0x1b22   :  { %v6651_v46 = vsub.f32 %v6649_v50, %v6650_v20  ;;  %6890 = vmatprep.subr.mxu1 %v9277_v23 }
0x1b23   :  { %6892 = vmatpush1.msra.mxu1 %v9290_v37 }
0x1b24   :  { %v6652_v34 = vand.u32 4294901760, %v6651_v46  ;;  %6894 = vmatprep.subr.mxu1 %v9306_v51 }
0x1b25   :  { %6896 = vmatpush1.msra.mxu1 %v9322_v1 }
0x1b26   :  { %6933 = vmatmul.mubr.f32.vlgmr.msra.gmra.mxu1 %v6650_v20  ;;  %7058 = vmatprep.subr.mxu1 %v9238_v24 }
0x1b27   :  { %6653 = vmatmul.mubr.f32.vlgmr.msra.gmra.mxu0 %v6652_v34  ;;  %7060 = vmatpush1.msra.mxu1 %v9245_v63 }
0x1b28   :  { %6798 = vmatpush1.msra.mxu0 %v9262_v13  ;;  %7062 = vmatprep.subr.mxu1 %v9255_v31 }
0x1b29   :  { %6801 = vmatprep.subr.mxu0 %v9275_v22  ;;  %7064 = vmatpush1.msra.mxu1 %v9264_v14 }
0x1b2a   :  { %6804 = vmatpush1.msra.mxu0 %v9288_v18  ;;  %7066 = vmatprep.subr.mxu1 %v9277_v23 }
0x1b2b   :  { %6807 = vmatprep.subr.mxu0 %v9304_v49  ;;  %7068 = vmatpush1.msra.mxu1 %v9290_v37 }
0x1b2c   :  { %6810 = vmatpush1.msra.mxu0 %v9320_v61  ;;  %7070 = vmatprep.subr.mxu1 %v9306_v51 }
0x1b2d   :  { %6813 = vmatprep.subr.mxu0 %v9334_v52  ;;  %6849 = vmatprep.mubr.f32.mxu0 %v9995_v29 }
0x1b2e   :  { %6816 = vmatpush1.msra.mxu0 %v9345_v56  ;;  %7072 = vmatpush1.msra.mxu1 %v9322_v1 }
0x1b2f   :  { %7105 = vmatprep.mubr.f32.mxu1 %v9995_v29  ;;  %6852 = vmatmul.mubr.f32.vlgmr.msra.gmra.mxu0 %v6649_v50 }
0x1b30   :  { %6965 = vmatprep.subr.mxu0 %v9272_v15  ;;  %7107 = vmatmul.mubr.f32.vlgmr.msra.gmra.mxu1 %v6648_v53 }
0x1b31   :  { %6969 = vmatpush1.msra.mxu0 %v9285_v33  ;;  %7026 = vmatprep.mubr.f32.mxu0 %v9995_v29 }
0x1b32   :  { %6973 = vmatprep.subr.mxu0 %v9301_v45 }
0x1b33   :  { %6977 = vmatpush1.msra.mxu0 %v9317_v60 }
0x1b34   :  { %6981 = vmatprep.subr.mxu0 %v9331_v39 }
0x1b35   :  { %6985 = vmatpush1.msra.mxu0 %v9342_v54 }
0x1b36   :  { %6989 = vmatprep.subr.mxu0 %v9355_v62 }
0x1b37   :  { %6993 = vmatpush1.msra.mxu0 %v9364_v10 }
0x1b38   :  { %7028 = vmatmul.mubr.f32.vlgmr.msra.gmra.mxu0 %v6648_v53 }
0x1bde   :  { %v6765_v24 = vpop.f32.mrf.mxu1 }
0x1be0   :  { %v6766_v63 = vpop.f32.mrf.mxu1 }
0x1be6   :  { %v6934_v31 = vpop.f32.mrf.mxu1 }
0x1be7   :  { %v6654_v13 = vpop.f32.mrf.mxu0 }
0x1be8   :  { %v6935_v15 = vpop.f32.mrf.mxu1 }
0x1be9   :  { %v6655_v14 = vpop.f32.mrf.mxu0 }
0x1bea   :  { %v6767_v33 = vadd.f32 %v6766_v63, %v6655_v14 }
0x1bef   :  { %v6853_v29 = vpop.f32.mrf.mxu0 }
0x1bf0   :  { %v7108_v22 = vpop.f32.mrf.mxu1 }
0x1bf1   :  { %v6854_v23 = vpop.f32.mrf.mxu0 }
0x1bf2   :  { %v6855_v18 = vadd.f32 %v6854_v23, %v6767_v33  ;;  %v7109_v60 = vpop.f32.mrf.mxu1 }
0x1bf4   :  { %v6936_v45 = vadd.f32 %v6935_v15, %v6855_v18 }
0x1bf8   :  { %v7029_v37 = vpop.f32.mrf.mxu0 }
0x1bfa   :  { %v7030_v49 = vpop.f32.mrf.mxu0 }
0x1bfb   :  { %v7031_v51 = vadd.f32 %v7030_v49, %v6936_v45 }
0x1bfd   :  { %v7110_v61 = vadd.f32 %v7109_v60, %v7031_v51 }
0x1bff   :  { %v7112_v1 = vadd.f32 %v9849_v32, %v7110_v61 }
0x1c01   :  { %v7113_v39 = vsel %vm4406_vm4, %v7112_v1, -inf }
0x1c02   :  { %7114 = vmax.xlane.f32.xlu1 %v7113_v39 }
0x1c13   :  { %7160 = vrot.lane.b32.xlu1 %v9883_v30, %s8155_s2 }
0x1c8b   :  { %v7115_v52 = vpop.xlane.xlu1 %7114 }
0x1c8c   :  { %vm7116_vm10 = vcmp.ge.f32.partialorder %v7112_v1, %v7115_v52 }
0x1c8d   :  { %v7117_v54 = vsel %vm7116_vm10, %v10003_v47, 9 }
0x1c8e   :  { %v7118_v56 = vsel %vm4406_vm4, %v7117_v54, 2147483647  ;;  %vm7175_vm4 = vcmask 31744  }
0x1c8f   :  { %v7161_v62 = vpop.permute.xlu1 %7160  ;;  %v7120_v10 = vshra.s32 %v7118_v56, 16  ;;  %v7119_v40 = vand.u32 65535, %v7118_v56 }
0x1c90   :  { %7167 = vst.msk [vmem:[%s9951_s11] sm:$0x1f] %vm7166_vm3, %v7161_v62 }
0x1c91   :  { %v7122_v32 = vcvt.s32.f32 %v7120_v10  ;;  %v7121_v28 = vcvt.s32.f32 %v7119_v40 }
0x1c93   :  { %7123 = vmin.xlane.f32.xlu0 %v7122_v32 }
0x1d1c   :  { %v7124_v55 = vpop.xlane.xlu0 %7123 }
0x1d1d   :  { %vm7125_vm9 = vcmp.eq.f32.partialorder %v7122_v32, %v7124_v55  ;;  %v7130_v47 = vcvt.f32.s32 %v7124_v55 }
0x1d1e   :  { %v7126_v0 = vsel %vm7125_vm9, %v7121_v28, inf }
0x1d1f   :  { %7127 = vmin.xlane.f32.xlu0 %v7126_v0  ;;  %v7131_v17 = vshll.u32 %v7130_v47, 16 }
0x1d35   :  { %7162 = vrot.lane.b32.xlu0 %v9878_v2, %s8155_s2  ;;  %s8132_s2 = scalar_lea.vmem %s7188_s23, 32 }
0x1d36   :  { %p8133_p0 = scmp.ne.s32.totalorder %s7188_s23, %s8132_s2  ;;  %p8138_p2 = scmp.lt.s32.totalorder %s8132_s2, %s8132_s2 }
0x1d38   :  { %p8139_p3 = por %p8138_p2, %p8137_p1 }
0x1d3a   :  { %p8140_p4 = pnand %p8139_p3, %p8133_p0 }
0x1da8   :  { %v7128_v42 = vpop.xlane.xlu0 %7127 }
0x1da9   :  { %v7129_v4 = vcvt.f32.s32 %v7128_v42 }
0x1dab   :  { %v7132_v3 = vadd.s32 %v7131_v17, %v7129_v4 }
0x1dac   :  { %v7163_v9 = vpop.permute.xlu0 %7162 }
0x1dad   :  { %7168 = vst.msk [vmem:[%s9951_s11 + $0x8] sm:$0x1f] %vm7166_vm3, %v7163_v9  ;;  %v7176_v27 = vsel %vm7175_vm4, %v9856_v44, %v7132_v3 }
0x1dae   :  { %7178 = vst.msk [vmem:[#allocation2] sm:$0x3] %vm7177_vm11, %v7176_v27 }
0x1daf   :  { %8143 = shalt.err (!%p8140_p4)
}
0x1db0   :  { %7190 = dma.vmem_to_hbm [thread:$0]  %s7188_s23, 32, %s9952_s12, [#allocation3]  }
0x1db1   :  { %8152 = dma.done.wait [#allocation3], 32  }
0x1db2   :  { %8153 = vsyncadd [#allocation3], 4294967264 }
0x1db3   :  { %7196 = vsyncpa [#allocation3], 1 }

</bundles_post_ra>
